<compile_context>
chip_gen: v5e
topology: v5e:2x2
jax: 0.10.0
libtpu: 0.0.40
codegen_flags: <defaults>
</compile_context>

<pallas_src>
import functools

import jax
import jax.numpy as jnp
import numpy as np
from jax import lax
from jax.experimental import pallas as pl
from jax.experimental.pallas import tpu as pltpu

KH = KW = 5        # conv kernel size (both convs)
POOL = 2           # max-pool window / stride
LANE = 128         # TPU lane width
C1, C2 = 6, 16     # real conv output channels (LeNet)
C1P, C2P = 8, 16   # padded conv output channels used inside the kernel
FCP = 128          # padded MLP width (>= 120, 84, num_classes)


# ---------------------------------------------------------------------------
# The single fused kernel
# ---------------------------------------------------------------------------
def _make_kernel(Hh, Hp2):
    """Hh = pooled conv1 rows per parity (Hp1 // 2), Hp2 = pooled conv2 rows."""

    def kernel(x_ref, t1_ref, b1_ref, t2_ref, b2_ref,
               fw1_ref, fb1_ref, fw2_ref, fb2_ref, fw3_ref, fb3_ref, o_ref):
        xin = x_ref[0]                         # (4, H//4, LANE) phase-split input rows

        def in_rows(r):                        # input rows {4*m + r : m in [0, Hh)}
            return xin[r % 4, (r // 4):(r // 4) + Hh, :]

        # ---- conv1 + bias + ReLU + 2x2 max-pool (output split by row parity) ----
        z1 = []                                # z1[rho]: (Hh, Wp1*C1P)
        for rho in range(2):                   # parity of the pooled output row
            pooled = None
            for dh in range(POOL):             # pool-corner row offset
                for dw in range(POOL):         # pool-corner col offset
                    acc = None
                    for i in range(KH):        # conv kernel row
                        r = POOL * rho + dh + i
                        part = jnp.dot(in_rows(r), t1_ref[dw, i],
                                       preferred_element_type=jnp.float32)
                        acc = part if acc is None else acc + part
                    val = jnp.maximum(acc + b1_ref[...], 0.0)
                    pooled = val if pooled is None else jnp.maximum(pooled, val)
            z1.append(pooled)

        # ---- conv2 + bias + ReLU + 2x2 max-pool ----
        pooled2 = None                         # (Hp2, Wp2*C2P)
        for dh in range(POOL):
            for dw in range(POOL):
                acc = None
                for i in range(KH):
                    r = dh + i
                    rows = z1[r % 2][(r // 2):(r // 2) + Hp2, :]
                    part = jnp.dot(rows, t2_ref[dw, i],
                                   preferred_element_type=jnp.float32)
                    acc = part if acc is None else acc + part
                val = jnp.maximum(acc + b2_ref[...], 0.0)
                pooled2 = val if pooled2 is None else jnp.maximum(pooled2, val)

        # ---- flatten (torch NCHW order is baked into the fc1 weight slabs) + MLP ----
        acc = None
        for h in range(Hp2):
            part = jnp.dot(pooled2[h:h + 1, :], fw1_ref[h],
                           preferred_element_type=jnp.float32)
            acc = part if acc is None else acc + part
        h1 = jnp.maximum(acc + fb1_ref[...], 0.0)
        h2 = jnp.maximum(
            jnp.dot(h1, fw2_ref[...], preferred_element_type=jnp.float32) + fb2_ref[...],
            0.0)
        o_ref[0] = (jnp.dot(h2, fw3_ref[...], preferred_element_type=jnp.float32)
                    + fb3_ref[...])

    return kernel


KP_ORDER = ("t1", "b1", "t2", "b2", "fw1", "fb1", "fw2", "fb2", "fw3", "fb3")


# ---------------------------------------------------------------------------
# Wrapper: one pallas_call for the whole forward
# ---------------------------------------------------------------------------
@functools.partial(jax.jit, static_argnames=("num_classes",))
def cnn_forward(x_nchw, kp, *, num_classes):
    N, Cin, H, W = x_nchw.shape
    Ho1 = H - KH + 1
    Hp1 = Ho1 // POOL
    Hh = Hp1 // 2
    Ho2 = Hp1 - KH + 1
    Hp2 = Ho2 // POOL
    assert H % 4 == 0 and Ho1 % POOL == 0 and Hp1 % 2 == 0 and Ho2 % POOL == 0
    assert W * Cin <= LANE

    # NCHW -> NHWC -> one (H, W*Cin) matrix per sample, lane-padded to 128,
    # rows split into 4 phases (row h lands at [h % 4, h // 4]).
    xh = jnp.transpose(x_nchw, (0, 2, 3, 1)).astype(jnp.float32)
    a = xh.reshape(N, H, W * Cin)
    a = jnp.pad(a, ((0, 0), (0, 0), (0, LANE - W * Cin)))
    a = a.reshape(N, H // 4, 4, LANE).transpose(0, 2, 1, 3)   # (N, 4, H//4, LANE)

    weights = [kp[k] for k in KP_ORDER]
    kernel = _make_kernel(Hh, Hp2)

    def full_spec(arr):
        return pl.BlockSpec(arr.shape, lambda n, _nd=arr.ndim: (0,) * _nd)

    out = pl.pallas_call(
        kernel,
        out_shape=jax.ShapeDtypeStruct((N, 1, FCP), jnp.float32),
        grid=(N,),
        in_specs=[pl.BlockSpec((1, 4, H // 4, LANE), lambda n: (n, 0, 0, 0))]
                 + [full_spec(w) for w in weights],
        out_specs=pl.BlockSpec((1, 1, FCP), lambda n: (n, 0, 0)),
        compiler_params=pltpu.CompilerParams(dimension_semantics=("parallel",)),
    )(a, *weights)

    logits = out.reshape(N, FCP)[:, :num_classes]
    return logits, None


# ---------------------------------------------------------------------------
# Host-side (one-time) weight re-layout: block-Toeplitz conv slabs, padded MLP
# ---------------------------------------------------------------------------
def build_kernel_params(tp, in_channels, H, W, num_classes):
    Ho1, Wo1 = H - KH + 1, W - KW + 1
    Hp1, Wp1 = Ho1 // POOL, Wo1 // POOL
    Ho2, Wo2 = Hp1 - KH + 1, Wp1 - KW + 1
    Hp2, Wp2 = Ho2 // POOL, Wo2 // POOL

    w1 = np.asarray(tp["conv1_w"], np.float32)   # (C1, Cin, 5, 5)
    b1 = np.asarray(tp["conv1_b"], np.float32)
    w2 = np.asarray(tp["conv2_w"], np.float32)   # (C2, C1, 5, 5)
    b2 = np.asarray(tp["conv2_b"], np.float32)
    fc1_w = np.asarray(tp["fc1_w"], np.float32)
    fc1_b = np.asarray(tp["fc1_b"], np.float32)
    fc2_w = np.asarray(tp["fc2_w"], np.float32)
    fc2_b = np.asarray(tp["fc2_b"], np.float32)
    fc3_w = np.asarray(tp["fc3_w"], np.float32)
    fc3_b = np.asarray(tp["fc3_b"], np.float32)
    hid1, hid2 = fc1_w.shape[0], fc2_w.shape[0]
    assert fc1_w.shape[1] == C2 * Hp2 * Wp2
    assert max(hid1, hid2, num_classes) <= FCP

    # conv1 slabs: T1[dw, i] maps an input row (W*Cin wide, padded to 128 lanes)
    # to the pooled-width pre-activation row for pool-corner column offset dw.
    t1 = np.zeros((POOL, KH, LANE, Wp1 * C1P), np.float32)
    for dw in range(POOL):
        for i in range(KH):
            for wp in range(Wp1):
                for j in range(KW):
                    w_in = POOL * wp + dw + j
                    t1[dw, i, w_in * in_channels:(w_in + 1) * in_channels,
                       wp * C1P:wp * C1P + C1] = w1[:, :, i, j].T
    b1t = np.zeros((Wp1, C1P), np.float32)
    b1t[:, :C1] = b1
    b1t = b1t.reshape(1, Wp1 * C1P)

    # conv2 slabs over the pooled conv1 layout (Wp1*C1P wide rows).
    t2 = np.zeros((POOL, KH, Wp1 * C1P, Wp2 * C2P), np.float32)
    for dw in range(POOL):
        for i in range(KH):
            for wp in range(Wp2):
                for j in range(KW):
                    w_in = POOL * wp + dw + j
                    t2[dw, i, w_in * C1P:w_in * C1P + C1,
                       wp * C2P:wp * C2P + C2] = w2[:, :, i, j].T
    b2t = np.zeros((Wp2, C2P), np.float32)
    b2t[:, :C2] = b2
    b2t = b2t.reshape(1, Wp2 * C2P)

    # fc1 weight laid out per conv2 output row so that contracting over the
    # kernel's (h, w, c) layout equals torch.flatten of the NCHW (c, h, w) tensor.
    fw1 = np.zeros((Hp2, Wp2, C2P, FCP), np.float32)
    fw1[:, :, :C2, :hid1] = np.transpose(
        fc1_w.reshape(hid1, C2, Hp2, Wp2), (2, 3, 1, 0))
    fw1 = fw1.reshape(Hp2, Wp2 * C2P, FCP)
    fb1 = np.zeros((1, FCP), np.float32); fb1[0, :hid1] = fc1_b
    fw2 = np.zeros((FCP, FCP), np.float32); fw2[:hid1, :hid2] = fc2_w.T
    fb2 = np.zeros((1, FCP), np.float32); fb2[0, :hid2] = fc2_b
    fw3 = np.zeros((FCP, FCP), np.float32); fw3[:hid2, :num_classes] = fc3_w.T
    fb3 = np.zeros((1, FCP), np.float32); fb3[0, :num_classes] = fc3_b

    kp = dict(t1=t1, b1=b1t, t2=t2, b2=b2t, fw1=fw1, fb1=fb1,
              fw2=fw2, fb2=fb2, fw3=fw3, fb3=fb3)
    return {k: jnp.asarray(v) for k, v in kp.items()}


def make_params(key, in_channels, hidden_size, num_classes, H, W):
    ks = jax.random.split(key, 10)
    tp = {
        "conv1_w": 0.1 * jax.random.normal(ks[0], (C1, in_channels, KH, KW), jnp.float32),
        "conv1_b": 0.1 * jax.random.normal(ks[1], (C1,), jnp.float32),
        "conv2_w": 0.1 * jax.random.normal(ks[2], (C2, C1, KH, KW), jnp.float32),
        "conv2_b": 0.1 * jax.random.normal(ks[3], (C2,), jnp.float32),
        "fc1_w": 0.05 * jax.random.normal(ks[4], (120, hidden_size), jnp.float32),
        "fc1_b": 0.05 * jax.random.normal(ks[5], (120,), jnp.float32),
        "fc2_w": 0.05 * jax.random.normal(ks[6], (84, 120), jnp.float32),
        "fc2_b": 0.05 * jax.random.normal(ks[7], (84,), jnp.float32),
        "fc3_w": 0.05 * jax.random.normal(ks[8], (num_classes, 84), jnp.float32),
        "fc3_b": 0.05 * jax.random.normal(ks[9], (num_classes,), jnp.float32),
    }
    kp = build_kernel_params(tp, in_channels, H, W, num_classes)
    return tp, kp


# ---------------------------------------------------------------------------
# Pure-JAX reference (mirrors the PyTorch forward) for a silent correctness check
# ---------------------------------------------------------------------------
def reference_forward(x, tp):
    def conv(h, w, b):
        y = lax.conv_general_dilated(h, w, (1, 1), "VALID",
                                     dimension_numbers=("NCHW", "OIHW", "NCHW"))
        return y + b[None, :, None, None]

    def pool(h):
        return lax.reduce_window(h, -jnp.inf, lax.max, (1, 1, 2, 2), (1, 1, 2, 2), "VALID")

    h = pool(jax.nn.relu(conv(x, tp["conv1_w"], tp["conv1_b"])))
    h = pool(jax.nn.relu(conv(h, tp["conv2_w"], tp["conv2_b"])))
    h = h.reshape(h.shape[0], -1)
    h = jax.nn.relu(h @ tp["fc1_w"].T + tp["fc1_b"])
    h = jax.nn.relu(h @ tp["fc2_w"].T + tp["fc2_b"])
    return h @ tp["fc3_w"].T + tp["fc3_b"]


if __name__ == "__main__":
    # LeNet-style sizes: 32x32 RGB input => hidden_size = 16*5*5 = 400
    N, in_channels, H, W = 2, 3, 32, 32
    hidden_size, num_classes = C2 * 5 * 5, 10

    key = jax.random.PRNGKey(0)
    kx, kparams = jax.random.split(key)
    x = jax.random.normal(kx, (N, in_channels, H, W), jnp.float32)   # NCHW like PyTorch
    tp, kp = make_params(kparams, in_channels, hidden_size, num_classes, H, W)

    logits, aux = cnn_forward(x, kp, num_classes=num_classes)
    logits = jax.block_until_ready(logits)
    assert aux is None
    assert logits.shape == (N, num_classes)

    ref = jax.block_until_ready(reference_forward(x, tp))
    if not np.allclose(np.asarray(logits), np.asarray(ref), atol=1e-3, rtol=1e-3):
        raise AssertionError("Pallas CNN output does not match JAX reference")

    print("KERNEL_OK")
</pallas_src>

<mosaic_0001>
module attributes {stable_mosaic.version = 11 : i64} {
  func.func @kernel(%arg0: i32, %arg1: memref<1x4x8x128xf32, #tpu.memory_space<vmem>>, %arg2: memref<2x5x128x112xf32, #tpu.memory_space<vmem>>, %arg3: memref<1x112xf32, #tpu.memory_space<vmem>>, %arg4: memref<2x5x112x80xf32, #tpu.memory_space<vmem>>, %arg5: memref<1x80xf32, #tpu.memory_space<vmem>>, %arg6: memref<5x80x128xf32, #tpu.memory_space<vmem>>, %arg7: memref<1x128xf32, #tpu.memory_space<vmem>>, %arg8: memref<128x128xf32, #tpu.memory_space<vmem>>, %arg9: memref<1x128xf32, #tpu.memory_space<vmem>>, %arg10: memref<128x128xf32, #tpu.memory_space<vmem>>, %arg11: memref<1x128xf32, #tpu.memory_space<vmem>>, %arg12: memref<1x1x128xf32, #tpu.memory_space<vmem>>) attributes {dimension_semantics = [#tpu.dimension_semantics<parallel>], iteration_bounds = array<i64: 2>, scalar_prefetch = 0 : i64, scratch_operands = 0 : i64, tpu.core_type = #tpu.core_type<tc>, window_params = [{transform_indices = @transform_0, window_bounds = array<i64: 1, 4, 8, 128>}, {pipeline_mode = #tpu.pipeline_mode<synchronous>, transform_indices = @transform_1, window_bounds = array<i64: 2, 5, 128, 112>}, {pipeline_mode = #tpu.pipeline_mode<synchronous>, transform_indices = @transform_2, window_bounds = array<i64: 1, 112>}, {pipeline_mode = #tpu.pipeline_mode<synchronous>, transform_indices = @transform_3, window_bounds = array<i64: 2, 5, 112, 80>}, {pipeline_mode = #tpu.pipeline_mode<synchronous>, transform_indices = @transform_4, window_bounds = array<i64: 1, 80>}, {pipeline_mode = #tpu.pipeline_mode<synchronous>, transform_indices = @transform_5, window_bounds = array<i64: 5, 80, 128>}, {pipeline_mode = #tpu.pipeline_mode<synchronous>, transform_indices = @transform_6, window_bounds = array<i64: 1, 128>}, {pipeline_mode = #tpu.pipeline_mode<synchronous>, transform_indices = @transform_7, window_bounds = array<i64: 128, 128>}, {pipeline_mode = #tpu.pipeline_mode<synchronous>, transform_indices = @transform_8, window_bounds = array<i64: 1, 128>}, {pipeline_mode = #tpu.pipeline_mode<synchronous>, transform_indices = @transform_9, window_bounds = array<i64: 128, 128>}, {pipeline_mode = #tpu.pipeline_mode<synchronous>, transform_indices = @transform_10, window_bounds = array<i64: 1, 128>}, {transform_indices = @transform_11, window_bounds = array<i64: 1, 1, 128>}]} {
    %c0 = arith.constant 0 : index
    %c0_0 = arith.constant 0 : index
    %c0_1 = arith.constant 0 : index
    %c0_2 = arith.constant 0 : index
    %0 = vector.load %arg1[%c0, %c0_0, %c0_1, %c0_2] : memref<1x4x8x128xf32, #tpu.memory_space<vmem>>, vector<1x4x8x128xf32>
    %1 = vector.shape_cast %0 : vector<1x4x8x128xf32> to vector<4x8x128xf32>
    %2 = vector.extract_strided_slice %1 {offsets = [0, 0, 0], sizes = [1, 7, 128], strides = [1, 1, 1]} : vector<4x8x128xf32> to vector<1x7x128xf32>
    %3 = vector.shape_cast %2 : vector<1x7x128xf32> to vector<7x128xf32>
    %c0_3 = arith.constant 0 : index
    %c0_4 = arith.constant 0 : index
    %c0_5 = arith.constant 0 : index
    %c0_6 = arith.constant 0 : index
    %4 = vector.load %arg2[%c0_3, %c0_4, %c0_5, %c0_6] : memref<2x5x128x112xf32, #tpu.memory_space<vmem>>, vector<1x1x128x112xf32>
    %5 = vector.shape_cast %4 : vector<1x1x128x112xf32> to vector<128x112xf32>
    %cst = arith.constant dense<0.000000e+00> : vector<7x112xf32>
    %6 = tpu.matmul %3, %5, %cst {dimension_numbers = #tpu.dot_dimension_numbers<[1], [0], [0], [1], [0, 0, 1, 1], [], []>} : vector<7x128xf32>, vector<128x112xf32>, vector<7x112xf32> -> vector<7x112xf32>
    %7 = vector.extract_strided_slice %1 {offsets = [1, 0, 0], sizes = [1, 7, 128], strides = [1, 1, 1]} : vector<4x8x128xf32> to vector<1x7x128xf32>
    %8 = vector.shape_cast %7 : vector<1x7x128xf32> to vector<7x128xf32>
    %c0_7 = arith.constant 0 : index
    %c1 = arith.constant 1 : index
    %c0_8 = arith.constant 0 : index
    %c0_9 = arith.constant 0 : index
    %9 = vector.load %arg2[%c0_7, %c1, %c0_8, %c0_9] : memref<2x5x128x112xf32, #tpu.memory_space<vmem>>, vector<1x1x128x112xf32>
    %10 = vector.shape_cast %9 : vector<1x1x128x112xf32> to vector<128x112xf32>
    %cst_10 = arith.constant dense<0.000000e+00> : vector<7x112xf32>
    %11 = tpu.matmul %8, %10, %cst_10 {dimension_numbers = #tpu.dot_dimension_numbers<[1], [0], [0], [1], [0, 0, 1, 1], [], []>} : vector<7x128xf32>, vector<128x112xf32>, vector<7x112xf32> -> vector<7x112xf32>
    %12 = arith.addf %6, %11 : vector<7x112xf32>
    %13 = vector.extract_strided_slice %1 {offsets = [2, 0, 0], sizes = [1, 7, 128], strides = [1, 1, 1]} : vector<4x8x128xf32> to vector<1x7x128xf32>
    %14 = vector.shape_cast %13 : vector<1x7x128xf32> to vector<7x128xf32>
    %c0_11 = arith.constant 0 : index
    %c2 = arith.constant 2 : index
    %c0_12 = arith.constant 0 : index
    %c0_13 = arith.constant 0 : index
    %15 = vector.load %arg2[%c0_11, %c2, %c0_12, %c0_13] : memref<2x5x128x112xf32, #tpu.memory_space<vmem>>, vector<1x1x128x112xf32>
    %16 = vector.shape_cast %15 : vector<1x1x128x112xf32> to vector<128x112xf32>
    %cst_14 = arith.constant dense<0.000000e+00> : vector<7x112xf32>
    %17 = tpu.matmul %14, %16, %cst_14 {dimension_numbers = #tpu.dot_dimension_numbers<[1], [0], [0], [1], [0, 0, 1, 1], [], []>} : vector<7x128xf32>, vector<128x112xf32>, vector<7x112xf32> -> vector<7x112xf32>
    %18 = arith.addf %12, %17 : vector<7x112xf32>
    %19 = vector.extract_strided_slice %1 {offsets = [3, 0, 0], sizes = [1, 7, 128], strides = [1, 1, 1]} : vector<4x8x128xf32> to vector<1x7x128xf32>
    %20 = vector.shape_cast %19 : vector<1x7x128xf32> to vector<7x128xf32>
    %c0_15 = arith.constant 0 : index
    %c3 = arith.constant 3 : index
    %c0_16 = arith.constant 0 : index
    %c0_17 = arith.constant 0 : index
    %21 = vector.load %arg2[%c0_15, %c3, %c0_16, %c0_17] : memref<2x5x128x112xf32, #tpu.memory_space<vmem>>, vector<1x1x128x112xf32>
    %22 = vector.shape_cast %21 : vector<1x1x128x112xf32> to vector<128x112xf32>
    %cst_18 = arith.constant dense<0.000000e+00> : vector<7x112xf32>
    %23 = tpu.matmul %20, %22, %cst_18 {dimension_numbers = #tpu.dot_dimension_numbers<[1], [0], [0], [1], [0, 0, 1, 1], [], []>} : vector<7x128xf32>, vector<128x112xf32>, vector<7x112xf32> -> vector<7x112xf32>
    %24 = arith.addf %18, %23 : vector<7x112xf32>
    %25 = vector.extract_strided_slice %1 {offsets = [0, 1, 0], sizes = [1, 7, 128], strides = [1, 1, 1]} : vector<4x8x128xf32> to vector<1x7x128xf32>
    %26 = vector.shape_cast %25 : vector<1x7x128xf32> to vector<7x128xf32>
    %c0_19 = arith.constant 0 : index
    %c4 = arith.constant 4 : index
    %c0_20 = arith.constant 0 : index
    %c0_21 = arith.constant 0 : index
    %27 = vector.load %arg2[%c0_19, %c4, %c0_20, %c0_21] : memref<2x5x128x112xf32, #tpu.memory_space<vmem>>, vector<1x1x128x112xf32>
    %28 = vector.shape_cast %27 : vector<1x1x128x112xf32> to vector<128x112xf32>
    %cst_22 = arith.constant dense<0.000000e+00> : vector<7x112xf32>
    %29 = tpu.matmul %26, %28, %cst_22 {dimension_numbers = #tpu.dot_dimension_numbers<[1], [0], [0], [1], [0, 0, 1, 1], [], []>} : vector<7x128xf32>, vector<128x112xf32>, vector<7x112xf32> -> vector<7x112xf32>
    %30 = arith.addf %24, %29 : vector<7x112xf32>
    %c0_23 = arith.constant 0 : index
    %c0_24 = arith.constant 0 : index
    %31 = vector.load %arg3[%c0_23, %c0_24] : memref<1x112xf32, #tpu.memory_space<vmem>>, vector<1x112xf32>
    %32 = vector.broadcast %31 : vector<1x112xf32> to vector<7x112xf32>
    %33 = arith.addf %30, %32 : vector<7x112xf32>
    %cst_25 = arith.constant 0.000000e+00 : f32
    %34 = vector.broadcast %cst_25 : f32 to vector<7x112xf32>
    %35 = arith.maximumf %33, %34 : vector<7x112xf32>
    %36 = vector.extract_strided_slice %1 {offsets = [0, 0, 0], sizes = [1, 7, 128], strides = [1, 1, 1]} : vector<4x8x128xf32> to vector<1x7x128xf32>
    %37 = vector.shape_cast %36 : vector<1x7x128xf32> to vector<7x128xf32>
    %c1_26 = arith.constant 1 : index
    %c0_27 = arith.constant 0 : index
    %c0_28 = arith.constant 0 : index
    %c0_29 = arith.constant 0 : index
    %38 = vector.load %arg2[%c1_26, %c0_27, %c0_28, %c0_29] : memref<2x5x128x112xf32, #tpu.memory_space<vmem>>, vector<1x1x128x112xf32>
    %39 = vector.shape_cast %38 : vector<1x1x128x112xf32> to vector<128x112xf32>
    %cst_30 = arith.constant dense<0.000000e+00> : vector<7x112xf32>
    %40 = tpu.matmul %37, %39, %cst_30 {dimension_numbers = #tpu.dot_dimension_numbers<[1], [0], [0], [1], [0, 0, 1, 1], [], []>} : vector<7x128xf32>, vector<128x112xf32>, vector<7x112xf32> -> vector<7x112xf32>
    %41 = vector.extract_strided_slice %1 {offsets = [1, 0, 0], sizes = [1, 7, 128], strides = [1, 1, 1]} : vector<4x8x128xf32> to vector<1x7x128xf32>
    %42 = vector.shape_cast %41 : vector<1x7x128xf32> to vector<7x128xf32>
    %c1_31 = arith.constant 1 : index
    %c1_32 = arith.constant 1 : index
    %c0_33 = arith.constant 0 : index
    %c0_34 = arith.constant 0 : index
    %43 = vector.load %arg2[%c1_31, %c1_32, %c0_33, %c0_34] : memref<2x5x128x112xf32, #tpu.memory_space<vmem>>, vector<1x1x128x112xf32>
    %44 = vector.shape_cast %43 : vector<1x1x128x112xf32> to vector<128x112xf32>
    %cst_35 = arith.constant dense<0.000000e+00> : vector<7x112xf32>
    %45 = tpu.matmul %42, %44, %cst_35 {dimension_numbers = #tpu.dot_dimension_numbers<[1], [0], [0], [1], [0, 0, 1, 1], [], []>} : vector<7x128xf32>, vector<128x112xf32>, vector<7x112xf32> -> vector<7x112xf32>
    %46 = arith.addf %40, %45 : vector<7x112xf32>
    %47 = vector.extract_strided_slice %1 {offsets = [2, 0, 0], sizes = [1, 7, 128], strides = [1, 1, 1]} : vector<4x8x128xf32> to vector<1x7x128xf32>
    %48 = vector.shape_cast %47 : vector<1x7x128xf32> to vector<7x128xf32>
    %c1_36 = arith.constant 1 : index
    %c2_37 = arith.constant 2 : index
    %c0_38 = arith.constant 0 : index
    %c0_39 = arith.constant 0 : index
    %49 = vector.load %arg2[%c1_36, %c2_37, %c0_38, %c0_39] : memref<2x5x128x112xf32, #tpu.memory_space<vmem>>, vector<1x1x128x112xf32>
    %50 = vector.shape_cast %49 : vector<1x1x128x112xf32> to vector<128x112xf32>
    %cst_40 = arith.constant dense<0.000000e+00> : vector<7x112xf32>
    %51 = tpu.matmul %48, %50, %cst_40 {dimension_numbers = #tpu.dot_dimension_numbers<[1], [0], [0], [1], [0, 0, 1, 1], [], []>} : vector<7x128xf32>, vector<128x112xf32>, vector<7x112xf32> -> vector<7x112xf32>
    %52 = arith.addf %46, %51 : vector<7x112xf32>
    %53 = vector.extract_strided_slice %1 {offsets = [3, 0, 0], sizes = [1, 7, 128], strides = [1, 1, 1]} : vector<4x8x128xf32> to vector<1x7x128xf32>
    %54 = vector.shape_cast %53 : vector<1x7x128xf32> to vector<7x128xf32>
    %c1_41 = arith.constant 1 : index
    %c3_42 = arith.constant 3 : index
    %c0_43 = arith.constant 0 : index
    %c0_44 = arith.constant 0 : index
    %55 = vector.load %arg2[%c1_41, %c3_42, %c0_43, %c0_44] : memref<2x5x128x112xf32, #tpu.memory_space<vmem>>, vector<1x1x128x112xf32>
    %56 = vector.shape_cast %55 : vector<1x1x128x112xf32> to vector<128x112xf32>
    %cst_45 = arith.constant dense<0.000000e+00> : vector<7x112xf32>
    %57 = tpu.matmul %54, %56, %cst_45 {dimension_numbers = #tpu.dot_dimension_numbers<[1], [0], [0], [1], [0, 0, 1, 1], [], []>} : vector<7x128xf32>, vector<128x112xf32>, vector<7x112xf32> -> vector<7x112xf32>
    %58 = arith.addf %52, %57 : vector<7x112xf32>
    %59 = vector.extract_strided_slice %1 {offsets = [0, 1, 0], sizes = [1, 7, 128], strides = [1, 1, 1]} : vector<4x8x128xf32> to vector<1x7x128xf32>
    %60 = vector.shape_cast %59 : vector<1x7x128xf32> to vector<7x128xf32>
    %c1_46 = arith.constant 1 : index
    %c4_47 = arith.constant 4 : index
    %c0_48 = arith.constant 0 : index
    %c0_49 = arith.constant 0 : index
    %61 = vector.load %arg2[%c1_46, %c4_47, %c0_48, %c0_49] : memref<2x5x128x112xf32, #tpu.memory_space<vmem>>, vector<1x1x128x112xf32>
    %62 = vector.shape_cast %61 : vector<1x1x128x112xf32> to vector<128x112xf32>
    %cst_50 = arith.constant dense<0.000000e+00> : vector<7x112xf32>
    %63 = tpu.matmul %60, %62, %cst_50 {dimension_numbers = #tpu.dot_dimension_numbers<[1], [0], [0], [1], [0, 0, 1, 1], [], []>} : vector<7x128xf32>, vector<128x112xf32>, vector<7x112xf32> -> vector<7x112xf32>
    %64 = arith.addf %58, %63 : vector<7x112xf32>
    %c0_51 = arith.constant 0 : index
    %c0_52 = arith.constant 0 : index
    %65 = vector.load %arg3[%c0_51, %c0_52] : memref<1x112xf32, #tpu.memory_space<vmem>>, vector<1x112xf32>
    %66 = vector.broadcast %65 : vector<1x112xf32> to vector<7x112xf32>
    %67 = arith.addf %64, %66 : vector<7x112xf32>
    %cst_53 = arith.constant 0.000000e+00 : f32
    %68 = vector.broadcast %cst_53 : f32 to vector<7x112xf32>
    %69 = arith.maximumf %67, %68 : vector<7x112xf32>
    %70 = arith.maximumf %35, %69 : vector<7x112xf32>
    %71 = vector.extract_strided_slice %1 {offsets = [1, 0, 0], sizes = [1, 7, 128], strides = [1, 1, 1]} : vector<4x8x128xf32> to vector<1x7x128xf32>
    %72 = vector.shape_cast %71 : vector<1x7x128xf32> to vector<7x128xf32>
    %c0_54 = arith.constant 0 : index
    %c0_55 = arith.constant 0 : index
    %c0_56 = arith.constant 0 : index
    %c0_57 = arith.constant 0 : index
    %73 = vector.load %arg2[%c0_54, %c0_55, %c0_56, %c0_57] : memref<2x5x128x112xf32, #tpu.memory_space<vmem>>, vector<1x1x128x112xf32>
    %74 = vector.shape_cast %73 : vector<1x1x128x112xf32> to vector<128x112xf32>
    %cst_58 = arith.constant dense<0.000000e+00> : vector<7x112xf32>
    %75 = tpu.matmul %72, %74, %cst_58 {dimension_numbers = #tpu.dot_dimension_numbers<[1], [0], [0], [1], [0, 0, 1, 1], [], []>} : vector<7x128xf32>, vector<128x112xf32>, vector<7x112xf32> -> vector<7x112xf32>
    %76 = vector.extract_strided_slice %1 {offsets = [2, 0, 0], sizes = [1, 7, 128], strides = [1, 1, 1]} : vector<4x8x128xf32> to vector<1x7x128xf32>
    %77 = vector.shape_cast %76 : vector<1x7x128xf32> to vector<7x128xf32>
    %c0_59 = arith.constant 0 : index
    %c1_60 = arith.constant 1 : index
    %c0_61 = arith.constant 0 : index
    %c0_62 = arith.constant 0 : index
    %78 = vector.load %arg2[%c0_59, %c1_60, %c0_61, %c0_62] : memref<2x5x128x112xf32, #tpu.memory_space<vmem>>, vector<1x1x128x112xf32>
    %79 = vector.shape_cast %78 : vector<1x1x128x112xf32> to vector<128x112xf32>
    %cst_63 = arith.constant dense<0.000000e+00> : vector<7x112xf32>
    %80 = tpu.matmul %77, %79, %cst_63 {dimension_numbers = #tpu.dot_dimension_numbers<[1], [0], [0], [1], [0, 0, 1, 1], [], []>} : vector<7x128xf32>, vector<128x112xf32>, vector<7x112xf32> -> vector<7x112xf32>
    %81 = arith.addf %75, %80 : vector<7x112xf32>
    %82 = vector.extract_strided_slice %1 {offsets = [3, 0, 0], sizes = [1, 7, 128], strides = [1, 1, 1]} : vector<4x8x128xf32> to vector<1x7x128xf32>
    %83 = vector.shape_cast %82 : vector<1x7x128xf32> to vector<7x128xf32>
    %c0_64 = arith.constant 0 : index
    %c2_65 = arith.constant 2 : index
    %c0_66 = arith.constant 0 : index
    %c0_67 = arith.constant 0 : index
    %84 = vector.load %arg2[%c0_64, %c2_65, %c0_66, %c0_67] : memref<2x5x128x112xf32, #tpu.memory_space<vmem>>, vector<1x1x128x112xf32>
    %85 = vector.shape_cast %84 : vector<1x1x128x112xf32> to vector<128x112xf32>
    %cst_68 = arith.constant dense<0.000000e+00> : vector<7x112xf32>
    %86 = tpu.matmul %83, %85, %cst_68 {dimension_numbers = #tpu.dot_dimension_numbers<[1], [0], [0], [1], [0, 0, 1, 1], [], []>} : vector<7x128xf32>, vector<128x112xf32>, vector<7x112xf32> -> vector<7x112xf32>
    %87 = arith.addf %81, %86 : vector<7x112xf32>
    %88 = vector.extract_strided_slice %1 {offsets = [0, 1, 0], sizes = [1, 7, 128], strides = [1, 1, 1]} : vector<4x8x128xf32> to vector<1x7x128xf32>
    %89 = vector.shape_cast %88 : vector<1x7x128xf32> to vector<7x128xf32>
    %c0_69 = arith.constant 0 : index
    %c3_70 = arith.constant 3 : index
    %c0_71 = arith.constant 0 : index
    %c0_72 = arith.constant 0 : index
    %90 = vector.load %arg2[%c0_69, %c3_70, %c0_71, %c0_72] : memref<2x5x128x112xf32, #tpu.memory_space<vmem>>, vector<1x1x128x112xf32>
    %91 = vector.shape_cast %90 : vector<1x1x128x112xf32> to vector<128x112xf32>
    %cst_73 = arith.constant dense<0.000000e+00> : vector<7x112xf32>
    %92 = tpu.matmul %89, %91, %cst_73 {dimension_numbers = #tpu.dot_dimension_numbers<[1], [0], [0], [1], [0, 0, 1, 1], [], []>} : vector<7x128xf32>, vector<128x112xf32>, vector<7x112xf32> -> vector<7x112xf32>
    %93 = arith.addf %87, %92 : vector<7x112xf32>
    %94 = vector.extract_strided_slice %1 {offsets = [1, 1, 0], sizes = [1, 7, 128], strides = [1, 1, 1]} : vector<4x8x128xf32> to vector<1x7x128xf32>
    %95 = vector.shape_cast %94 : vector<1x7x128xf32> to vector<7x128xf32>
    %c0_74 = arith.constant 0 : index
    %c4_75 = arith.constant 4 : index
    %c0_76 = arith.constant 0 : index
    %c0_77 = arith.constant 0 : index
    %96 = vector.load %arg2[%c0_74, %c4_75, %c0_76, %c0_77] : memref<2x5x128x112xf32, #tpu.memory_space<vmem>>, vector<1x1x128x112xf32>
    %97 = vector.shape_cast %96 : vector<1x1x128x112xf32> to vector<128x112xf32>
    %cst_78 = arith.constant dense<0.000000e+00> : vector<7x112xf32>
    %98 = tpu.matmul %95, %97, %cst_78 {dimension_numbers = #tpu.dot_dimension_numbers<[1], [0], [0], [1], [0, 0, 1, 1], [], []>} : vector<7x128xf32>, vector<128x112xf32>, vector<7x112xf32> -> vector<7x112xf32>
    %99 = arith.addf %93, %98 : vector<7x112xf32>
    %c0_79 = arith.constant 0 : index
    %c0_80 = arith.constant 0 : index
    %100 = vector.load %arg3[%c0_79, %c0_80] : memref<1x112xf32, #tpu.memory_space<vmem>>, vector<1x112xf32>
    %101 = vector.broadcast %100 : vector<1x112xf32> to vector<7x112xf32>
    %102 = arith.addf %99, %101 : vector<7x112xf32>
    %cst_81 = arith.constant 0.000000e+00 : f32
    %103 = vector.broadcast %cst_81 : f32 to vector<7x112xf32>
    %104 = arith.maximumf %102, %103 : vector<7x112xf32>
    %105 = arith.maximumf %70, %104 : vector<7x112xf32>
    %106 = vector.extract_strided_slice %1 {offsets = [1, 0, 0], sizes = [1, 7, 128], strides = [1, 1, 1]} : vector<4x8x128xf32> to vector<1x7x128xf32>
    %107 = vector.shape_cast %106 : vector<1x7x128xf32> to vector<7x128xf32>
    %c1_82 = arith.constant 1 : index
    %c0_83 = arith.constant 0 : index
    %c0_84 = arith.constant 0 : index
    %c0_85 = arith.constant 0 : index
    %108 = vector.load %arg2[%c1_82, %c0_83, %c0_84, %c0_85] : memref<2x5x128x112xf32, #tpu.memory_space<vmem>>, vector<1x1x128x112xf32>
    %109 = vector.shape_cast %108 : vector<1x1x128x112xf32> to vector<128x112xf32>
    %cst_86 = arith.constant dense<0.000000e+00> : vector<7x112xf32>
    %110 = tpu.matmul %107, %109, %cst_86 {dimension_numbers = #tpu.dot_dimension_numbers<[1], [0], [0], [1], [0, 0, 1, 1], [], []>} : vector<7x128xf32>, vector<128x112xf32>, vector<7x112xf32> -> vector<7x112xf32>
    %111 = vector.extract_strided_slice %1 {offsets = [2, 0, 0], sizes = [1, 7, 128], strides = [1, 1, 1]} : vector<4x8x128xf32> to vector<1x7x128xf32>
    %112 = vector.shape_cast %111 : vector<1x7x128xf32> to vector<7x128xf32>
    %c1_87 = arith.constant 1 : index
    %c1_88 = arith.constant 1 : index
    %c0_89 = arith.constant 0 : index
    %c0_90 = arith.constant 0 : index
    %113 = vector.load %arg2[%c1_87, %c1_88, %c0_89, %c0_90] : memref<2x5x128x112xf32, #tpu.memory_space<vmem>>, vector<1x1x128x112xf32>
    %114 = vector.shape_cast %113 : vector<1x1x128x112xf32> to vector<128x112xf32>
    %cst_91 = arith.constant dense<0.000000e+00> : vector<7x112xf32>
    %115 = tpu.matmul %112, %114, %cst_91 {dimension_numbers = #tpu.dot_dimension_numbers<[1], [0], [0], [1], [0, 0, 1, 1], [], []>} : vector<7x128xf32>, vector<128x112xf32>, vector<7x112xf32> -> vector<7x112xf32>
    %116 = arith.addf %110, %115 : vector<7x112xf32>
    %117 = vector.extract_strided_slice %1 {offsets = [3, 0, 0], sizes = [1, 7, 128], strides = [1, 1, 1]} : vector<4x8x128xf32> to vector<1x7x128xf32>
    %118 = vector.shape_cast %117 : vector<1x7x128xf32> to vector<7x128xf32>
    %c1_92 = arith.constant 1 : index
    %c2_93 = arith.constant 2 : index
    %c0_94 = arith.constant 0 : index
    %c0_95 = arith.constant 0 : index
    %119 = vector.load %arg2[%c1_92, %c2_93, %c0_94, %c0_95] : memref<2x5x128x112xf32, #tpu.memory_space<vmem>>, vector<1x1x128x112xf32>
    %120 = vector.shape_cast %119 : vector<1x1x128x112xf32> to vector<128x112xf32>
    %cst_96 = arith.constant dense<0.000000e+00> : vector<7x112xf32>
    %121 = tpu.matmul %118, %120, %cst_96 {dimension_numbers = #tpu.dot_dimension_numbers<[1], [0], [0], [1], [0, 0, 1, 1], [], []>} : vector<7x128xf32>, vector<128x112xf32>, vector<7x112xf32> -> vector<7x112xf32>
    %122 = arith.addf %116, %121 : vector<7x112xf32>
    %123 = vector.extract_strided_slice %1 {offsets = [0, 1, 0], sizes = [1, 7, 128], strides = [1, 1, 1]} : vector<4x8x128xf32> to vector<1x7x128xf32>
    %124 = vector.shape_cast %123 : vector<1x7x128xf32> to vector<7x128xf32>
    %c1_97 = arith.constant 1 : index
    %c3_98 = arith.constant 3 : index
    %c0_99 = arith.constant 0 : index
    %c0_100 = arith.constant 0 : index
    %125 = vector.load %arg2[%c1_97, %c3_98, %c0_99, %c0_100] : memref<2x5x128x112xf32, #tpu.memory_space<vmem>>, vector<1x1x128x112xf32>
    %126 = vector.shape_cast %125 : vector<1x1x128x112xf32> to vector<128x112xf32>
    %cst_101 = arith.constant dense<0.000000e+00> : vector<7x112xf32>
    %127 = tpu.matmul %124, %126, %cst_101 {dimension_numbers = #tpu.dot_dimension_numbers<[1], [0], [0], [1], [0, 0, 1, 1], [], []>} : vector<7x128xf32>, vector<128x112xf32>, vector<7x112xf32> -> vector<7x112xf32>
    %128 = arith.addf %122, %127 : vector<7x112xf32>
    %129 = vector.extract_strided_slice %1 {offsets = [1, 1, 0], sizes = [1, 7, 128], strides = [1, 1, 1]} : vector<4x8x128xf32> to vector<1x7x128xf32>
    %130 = vector.shape_cast %129 : vector<1x7x128xf32> to vector<7x128xf32>
    %c1_102 = arith.constant 1 : index
    %c4_103 = arith.constant 4 : index
    %c0_104 = arith.constant 0 : index
    %c0_105 = arith.constant 0 : index
    %131 = vector.load %arg2[%c1_102, %c4_103, %c0_104, %c0_105] : memref<2x5x128x112xf32, #tpu.memory_space<vmem>>, vector<1x1x128x112xf32>
    %132 = vector.shape_cast %131 : vector<1x1x128x112xf32> to vector<128x112xf32>
    %cst_106 = arith.constant dense<0.000000e+00> : vector<7x112xf32>
    %133 = tpu.matmul %130, %132, %cst_106 {dimension_numbers = #tpu.dot_dimension_numbers<[1], [0], [0], [1], [0, 0, 1, 1], [], []>} : vector<7x128xf32>, vector<128x112xf32>, vector<7x112xf32> -> vector<7x112xf32>
    %134 = arith.addf %128, %133 : vector<7x112xf32>
    %c0_107 = arith.constant 0 : index
    %c0_108 = arith.constant 0 : index
    %135 = vector.load %arg3[%c0_107, %c0_108] : memref<1x112xf32, #tpu.memory_space<vmem>>, vector<1x112xf32>
    %136 = vector.broadcast %135 : vector<1x112xf32> to vector<7x112xf32>
    %137 = arith.addf %134, %136 : vector<7x112xf32>
    %cst_109 = arith.constant 0.000000e+00 : f32
    %138 = vector.broadcast %cst_109 : f32 to vector<7x112xf32>
    %139 = arith.maximumf %137, %138 : vector<7x112xf32>
    %140 = arith.maximumf %105, %139 : vector<7x112xf32>
    %141 = vector.extract_strided_slice %1 {offsets = [2, 0, 0], sizes = [1, 7, 128], strides = [1, 1, 1]} : vector<4x8x128xf32> to vector<1x7x128xf32>
    %142 = vector.shape_cast %141 : vector<1x7x128xf32> to vector<7x128xf32>
    %c0_110 = arith.constant 0 : index
    %c0_111 = arith.constant 0 : index
    %c0_112 = arith.constant 0 : index
    %c0_113 = arith.constant 0 : index
    %143 = vector.load %arg2[%c0_110, %c0_111, %c0_112, %c0_113] : memref<2x5x128x112xf32, #tpu.memory_space<vmem>>, vector<1x1x128x112xf32>
    %144 = vector.shape_cast %143 : vector<1x1x128x112xf32> to vector<128x112xf32>
    %cst_114 = arith.constant dense<0.000000e+00> : vector<7x112xf32>
    %145 = tpu.matmul %142, %144, %cst_114 {dimension_numbers = #tpu.dot_dimension_numbers<[1], [0], [0], [1], [0, 0, 1, 1], [], []>} : vector<7x128xf32>, vector<128x112xf32>, vector<7x112xf32> -> vector<7x112xf32>
    %146 = vector.extract_strided_slice %1 {offsets = [3, 0, 0], sizes = [1, 7, 128], strides = [1, 1, 1]} : vector<4x8x128xf32> to vector<1x7x128xf32>
    %147 = vector.shape_cast %146 : vector<1x7x128xf32> to vector<7x128xf32>
    %c0_115 = arith.constant 0 : index
    %c1_116 = arith.constant 1 : index
    %c0_117 = arith.constant 0 : index
    %c0_118 = arith.constant 0 : index
    %148 = vector.load %arg2[%c0_115, %c1_116, %c0_117, %c0_118] : memref<2x5x128x112xf32, #tpu.memory_space<vmem>>, vector<1x1x128x112xf32>
    %149 = vector.shape_cast %148 : vector<1x1x128x112xf32> to vector<128x112xf32>
    %cst_119 = arith.constant dense<0.000000e+00> : vector<7x112xf32>
    %150 = tpu.matmul %147, %149, %cst_119 {dimension_numbers = #tpu.dot_dimension_numbers<[1], [0], [0], [1], [0, 0, 1, 1], [], []>} : vector<7x128xf32>, vector<128x112xf32>, vector<7x112xf32> -> vector<7x112xf32>
    %151 = arith.addf %145, %150 : vector<7x112xf32>
    %152 = vector.extract_strided_slice %1 {offsets = [0, 1, 0], sizes = [1, 7, 128], strides = [1, 1, 1]} : vector<4x8x128xf32> to vector<1x7x128xf32>
    %153 = vector.shape_cast %152 : vector<1x7x128xf32> to vector<7x128xf32>
    %c0_120 = arith.constant 0 : index
    %c2_121 = arith.constant 2 : index
    %c0_122 = arith.constant 0 : index
    %c0_123 = arith.constant 0 : index
    %154 = vector.load %arg2[%c0_120, %c2_121, %c0_122, %c0_123] : memref<2x5x128x112xf32, #tpu.memory_space<vmem>>, vector<1x1x128x112xf32>
    %155 = vector.shape_cast %154 : vector<1x1x128x112xf32> to vector<128x112xf32>
    %cst_124 = arith.constant dense<0.000000e+00> : vector<7x112xf32>
    %156 = tpu.matmul %153, %155, %cst_124 {dimension_numbers = #tpu.dot_dimension_numbers<[1], [0], [0], [1], [0, 0, 1, 1], [], []>} : vector<7x128xf32>, vector<128x112xf32>, vector<7x112xf32> -> vector<7x112xf32>
    %157 = arith.addf %151, %156 : vector<7x112xf32>
    %158 = vector.extract_strided_slice %1 {offsets = [1, 1, 0], sizes = [1, 7, 128], strides = [1, 1, 1]} : vector<4x8x128xf32> to vector<1x7x128xf32>
    %159 = vector.shape_cast %158 : vector<1x7x128xf32> to vector<7x128xf32>
    %c0_125 = arith.constant 0 : index
    %c3_126 = arith.constant 3 : index
    %c0_127 = arith.constant 0 : index
    %c0_128 = arith.constant 0 : index
    %160 = vector.load %arg2[%c0_125, %c3_126, %c0_127, %c0_128] : memref<2x5x128x112xf32, #tpu.memory_space<vmem>>, vector<1x1x128x112xf32>
    %161 = vector.shape_cast %160 : vector<1x1x128x112xf32> to vector<128x112xf32>
    %cst_129 = arith.constant dense<0.000000e+00> : vector<7x112xf32>
    %162 = tpu.matmul %159, %161, %cst_129 {dimension_numbers = #tpu.dot_dimension_numbers<[1], [0], [0], [1], [0, 0, 1, 1], [], []>} : vector<7x128xf32>, vector<128x112xf32>, vector<7x112xf32> -> vector<7x112xf32>
    %163 = arith.addf %157, %162 : vector<7x112xf32>
    %164 = vector.extract_strided_slice %1 {offsets = [2, 1, 0], sizes = [1, 7, 128], strides = [1, 1, 1]} : vector<4x8x128xf32> to vector<1x7x128xf32>
    %165 = vector.shape_cast %164 : vector<1x7x128xf32> to vector<7x128xf32>
    %c0_130 = arith.constant 0 : index
    %c4_131 = arith.constant 4 : index
    %c0_132 = arith.constant 0 : index
    %c0_133 = arith.constant 0 : index
    %166 = vector.load %arg2[%c0_130, %c4_131, %c0_132, %c0_133] : memref<2x5x128x112xf32, #tpu.memory_space<vmem>>, vector<1x1x128x112xf32>
    %167 = vector.shape_cast %166 : vector<1x1x128x112xf32> to vector<128x112xf32>
    %cst_134 = arith.constant dense<0.000000e+00> : vector<7x112xf32>
    %168 = tpu.matmul %165, %167, %cst_134 {dimension_numbers = #tpu.dot_dimension_numbers<[1], [0], [0], [1], [0, 0, 1, 1], [], []>} : vector<7x128xf32>, vector<128x112xf32>, vector<7x112xf32> -> vector<7x112xf32>
    %169 = arith.addf %163, %168 : vector<7x112xf32>
    %c0_135 = arith.constant 0 : index
    %c0_136 = arith.constant 0 : index
    %170 = vector.load %arg3[%c0_135, %c0_136] : memref<1x112xf32, #tpu.memory_space<vmem>>, vector<1x112xf32>
    %171 = vector.broadcast %170 : vector<1x112xf32> to vector<7x112xf32>
    %172 = arith.addf %169, %171 : vector<7x112xf32>
    %cst_137 = arith.constant 0.000000e+00 : f32
    %173 = vector.broadcast %cst_137 : f32 to vector<7x112xf32>
    %174 = arith.maximumf %172, %173 : vector<7x112xf32>
    %175 = vector.extract_strided_slice %1 {offsets = [2, 0, 0], sizes = [1, 7, 128], strides = [1, 1, 1]} : vector<4x8x128xf32> to vector<1x7x128xf32>
    %176 = vector.shape_cast %175 : vector<1x7x128xf32> to vector<7x128xf32>
    %c1_138 = arith.constant 1 : index
    %c0_139 = arith.constant 0 : index
    %c0_140 = arith.constant 0 : index
    %c0_141 = arith.constant 0 : index
    %177 = vector.load %arg2[%c1_138, %c0_139, %c0_140, %c0_141] : memref<2x5x128x112xf32, #tpu.memory_space<vmem>>, vector<1x1x128x112xf32>
    %178 = vector.shape_cast %177 : vector<1x1x128x112xf32> to vector<128x112xf32>
    %cst_142 = arith.constant dense<0.000000e+00> : vector<7x112xf32>
    %179 = tpu.matmul %176, %178, %cst_142 {dimension_numbers = #tpu.dot_dimension_numbers<[1], [0], [0], [1], [0, 0, 1, 1], [], []>} : vector<7x128xf32>, vector<128x112xf32>, vector<7x112xf32> -> vector<7x112xf32>
    %180 = vector.extract_strided_slice %1 {offsets = [3, 0, 0], sizes = [1, 7, 128], strides = [1, 1, 1]} : vector<4x8x128xf32> to vector<1x7x128xf32>
    %181 = vector.shape_cast %180 : vector<1x7x128xf32> to vector<7x128xf32>
    %c1_143 = arith.constant 1 : index
    %c1_144 = arith.constant 1 : index
    %c0_145 = arith.constant 0 : index
    %c0_146 = arith.constant 0 : index
    %182 = vector.load %arg2[%c1_143, %c1_144, %c0_145, %c0_146] : memref<2x5x128x112xf32, #tpu.memory_space<vmem>>, vector<1x1x128x112xf32>
    %183 = vector.shape_cast %182 : vector<1x1x128x112xf32> to vector<128x112xf32>
    %cst_147 = arith.constant dense<0.000000e+00> : vector<7x112xf32>
    %184 = tpu.matmul %181, %183, %cst_147 {dimension_numbers = #tpu.dot_dimension_numbers<[1], [0], [0], [1], [0, 0, 1, 1], [], []>} : vector<7x128xf32>, vector<128x112xf32>, vector<7x112xf32> -> vector<7x112xf32>
    %185 = arith.addf %179, %184 : vector<7x112xf32>
    %186 = vector.extract_strided_slice %1 {offsets = [0, 1, 0], sizes = [1, 7, 128], strides = [1, 1, 1]} : vector<4x8x128xf32> to vector<1x7x128xf32>
    %187 = vector.shape_cast %186 : vector<1x7x128xf32> to vector<7x128xf32>
    %c1_148 = arith.constant 1 : index
    %c2_149 = arith.constant 2 : index
    %c0_150 = arith.constant 0 : index
    %c0_151 = arith.constant 0 : index
    %188 = vector.load %arg2[%c1_148, %c2_149, %c0_150, %c0_151] : memref<2x5x128x112xf32, #tpu.memory_space<vmem>>, vector<1x1x128x112xf32>
    %189 = vector.shape_cast %188 : vector<1x1x128x112xf32> to vector<128x112xf32>
    %cst_152 = arith.constant dense<0.000000e+00> : vector<7x112xf32>
    %190 = tpu.matmul %187, %189, %cst_152 {dimension_numbers = #tpu.dot_dimension_numbers<[1], [0], [0], [1], [0, 0, 1, 1], [], []>} : vector<7x128xf32>, vector<128x112xf32>, vector<7x112xf32> -> vector<7x112xf32>
    %191 = arith.addf %185, %190 : vector<7x112xf32>
    %192 = vector.extract_strided_slice %1 {offsets = [1, 1, 0], sizes = [1, 7, 128], strides = [1, 1, 1]} : vector<4x8x128xf32> to vector<1x7x128xf32>
    %193 = vector.shape_cast %192 : vector<1x7x128xf32> to vector<7x128xf32>
    %c1_153 = arith.constant 1 : index
    %c3_154 = arith.constant 3 : index
    %c0_155 = arith.constant 0 : index
    %c0_156 = arith.constant 0 : index
    %194 = vector.load %arg2[%c1_153, %c3_154, %c0_155, %c0_156] : memref<2x5x128x112xf32, #tpu.memory_space<vmem>>, vector<1x1x128x112xf32>
    %195 = vector.shape_cast %194 : vector<1x1x128x112xf32> to vector<128x112xf32>
    %cst_157 = arith.constant dense<0.000000e+00> : vector<7x112xf32>
    %196 = tpu.matmul %193, %195, %cst_157 {dimension_numbers = #tpu.dot_dimension_numbers<[1], [0], [0], [1], [0, 0, 1, 1], [], []>} : vector<7x128xf32>, vector<128x112xf32>, vector<7x112xf32> -> vector<7x112xf32>
    %197 = arith.addf %191, %196 : vector<7x112xf32>
    %198 = vector.extract_strided_slice %1 {offsets = [2, 1, 0], sizes = [1, 7, 128], strides = [1, 1, 1]} : vector<4x8x128xf32> to vector<1x7x128xf32>
    %199 = vector.shape_cast %198 : vector<1x7x128xf32> to vector<7x128xf32>
    %c1_158 = arith.constant 1 : index
    %c4_159 = arith.constant 4 : index
    %c0_160 = arith.constant 0 : index
    %c0_161 = arith.constant 0 : index
    %200 = vector.load %arg2[%c1_158, %c4_159, %c0_160, %c0_161] : memref<2x5x128x112xf32, #tpu.memory_space<vmem>>, vector<1x1x128x112xf32>
    %201 = vector.shape_cast %200 : vector<1x1x128x112xf32> to vector<128x112xf32>
    %cst_162 = arith.constant dense<0.000000e+00> : vector<7x112xf32>
    %202 = tpu.matmul %199, %201, %cst_162 {dimension_numbers = #tpu.dot_dimension_numbers<[1], [0], [0], [1], [0, 0, 1, 1], [], []>} : vector<7x128xf32>, vector<128x112xf32>, vector<7x112xf32> -> vector<7x112xf32>
    %203 = arith.addf %197, %202 : vector<7x112xf32>
    %c0_163 = arith.constant 0 : index
    %c0_164 = arith.constant 0 : index
    %204 = vector.load %arg3[%c0_163, %c0_164] : memref<1x112xf32, #tpu.memory_space<vmem>>, vector<1x112xf32>
    %205 = vector.broadcast %204 : vector<1x112xf32> to vector<7x112xf32>
    %206 = arith.addf %203, %205 : vector<7x112xf32>
    %cst_165 = arith.constant 0.000000e+00 : f32
    %207 = vector.broadcast %cst_165 : f32 to vector<7x112xf32>
    %208 = arith.maximumf %206, %207 : vector<7x112xf32>
    %209 = arith.maximumf %174, %208 : vector<7x112xf32>
    %210 = vector.extract_strided_slice %1 {offsets = [3, 0, 0], sizes = [1, 7, 128], strides = [1, 1, 1]} : vector<4x8x128xf32> to vector<1x7x128xf32>
    %211 = vector.shape_cast %210 : vector<1x7x128xf32> to vector<7x128xf32>
    %c0_166 = arith.constant 0 : index
    %c0_167 = arith.constant 0 : index
    %c0_168 = arith.constant 0 : index
    %c0_169 = arith.constant 0 : index
    %212 = vector.load %arg2[%c0_166, %c0_167, %c0_168, %c0_169] : memref<2x5x128x112xf32, #tpu.memory_space<vmem>>, vector<1x1x128x112xf32>
    %213 = vector.shape_cast %212 : vector<1x1x128x112xf32> to vector<128x112xf32>
    %cst_170 = arith.constant dense<0.000000e+00> : vector<7x112xf32>
    %214 = tpu.matmul %211, %213, %cst_170 {dimension_numbers = #tpu.dot_dimension_numbers<[1], [0], [0], [1], [0, 0, 1, 1], [], []>} : vector<7x128xf32>, vector<128x112xf32>, vector<7x112xf32> -> vector<7x112xf32>
    %215 = vector.extract_strided_slice %1 {offsets = [0, 1, 0], sizes = [1, 7, 128], strides = [1, 1, 1]} : vector<4x8x128xf32> to vector<1x7x128xf32>
    %216 = vector.shape_cast %215 : vector<1x7x128xf32> to vector<7x128xf32>
    %c0_171 = arith.constant 0 : index
    %c1_172 = arith.constant 1 : index
    %c0_173 = arith.constant 0 : index
    %c0_174 = arith.constant 0 : index
    %217 = vector.load %arg2[%c0_171, %c1_172, %c0_173, %c0_174] : memref<2x5x128x112xf32, #tpu.memory_space<vmem>>, vector<1x1x128x112xf32>
    %218 = vector.shape_cast %217 : vector<1x1x128x112xf32> to vector<128x112xf32>
    %cst_175 = arith.constant dense<0.000000e+00> : vector<7x112xf32>
    %219 = tpu.matmul %216, %218, %cst_175 {dimension_numbers = #tpu.dot_dimension_numbers<[1], [0], [0], [1], [0, 0, 1, 1], [], []>} : vector<7x128xf32>, vector<128x112xf32>, vector<7x112xf32> -> vector<7x112xf32>
    %220 = arith.addf %214, %219 : vector<7x112xf32>
    %221 = vector.extract_strided_slice %1 {offsets = [1, 1, 0], sizes = [1, 7, 128], strides = [1, 1, 1]} : vector<4x8x128xf32> to vector<1x7x128xf32>
    %222 = vector.shape_cast %221 : vector<1x7x128xf32> to vector<7x128xf32>
    %c0_176 = arith.constant 0 : index
    %c2_177 = arith.constant 2 : index
    %c0_178 = arith.constant 0 : index
    %c0_179 = arith.constant 0 : index
    %223 = vector.load %arg2[%c0_176, %c2_177, %c0_178, %c0_179] : memref<2x5x128x112xf32, #tpu.memory_space<vmem>>, vector<1x1x128x112xf32>
    %224 = vector.shape_cast %223 : vector<1x1x128x112xf32> to vector<128x112xf32>
    %cst_180 = arith.constant dense<0.000000e+00> : vector<7x112xf32>
    %225 = tpu.matmul %222, %224, %cst_180 {dimension_numbers = #tpu.dot_dimension_numbers<[1], [0], [0], [1], [0, 0, 1, 1], [], []>} : vector<7x128xf32>, vector<128x112xf32>, vector<7x112xf32> -> vector<7x112xf32>
    %226 = arith.addf %220, %225 : vector<7x112xf32>
    %227 = vector.extract_strided_slice %1 {offsets = [2, 1, 0], sizes = [1, 7, 128], strides = [1, 1, 1]} : vector<4x8x128xf32> to vector<1x7x128xf32>
    %228 = vector.shape_cast %227 : vector<1x7x128xf32> to vector<7x128xf32>
    %c0_181 = arith.constant 0 : index
    %c3_182 = arith.constant 3 : index
    %c0_183 = arith.constant 0 : index
    %c0_184 = arith.constant 0 : index
    %229 = vector.load %arg2[%c0_181, %c3_182, %c0_183, %c0_184] : memref<2x5x128x112xf32, #tpu.memory_space<vmem>>, vector<1x1x128x112xf32>
    %230 = vector.shape_cast %229 : vector<1x1x128x112xf32> to vector<128x112xf32>
    %cst_185 = arith.constant dense<0.000000e+00> : vector<7x112xf32>
    %231 = tpu.matmul %228, %230, %cst_185 {dimension_numbers = #tpu.dot_dimension_numbers<[1], [0], [0], [1], [0, 0, 1, 1], [], []>} : vector<7x128xf32>, vector<128x112xf32>, vector<7x112xf32> -> vector<7x112xf32>
    %232 = arith.addf %226, %231 : vector<7x112xf32>
    %233 = vector.extract_strided_slice %1 {offsets = [3, 1, 0], sizes = [1, 7, 128], strides = [1, 1, 1]} : vector<4x8x128xf32> to vector<1x7x128xf32>
    %234 = vector.shape_cast %233 : vector<1x7x128xf32> to vector<7x128xf32>
    %c0_186 = arith.constant 0 : index
    %c4_187 = arith.constant 4 : index
    %c0_188 = arith.constant 0 : index
    %c0_189 = arith.constant 0 : index
    %235 = vector.load %arg2[%c0_186, %c4_187, %c0_188, %c0_189] : memref<2x5x128x112xf32, #tpu.memory_space<vmem>>, vector<1x1x128x112xf32>
    %236 = vector.shape_cast %235 : vector<1x1x128x112xf32> to vector<128x112xf32>
    %cst_190 = arith.constant dense<0.000000e+00> : vector<7x112xf32>
    %237 = tpu.matmul %234, %236, %cst_190 {dimension_numbers = #tpu.dot_dimension_numbers<[1], [0], [0], [1], [0, 0, 1, 1], [], []>} : vector<7x128xf32>, vector<128x112xf32>, vector<7x112xf32> -> vector<7x112xf32>
    %238 = arith.addf %232, %237 : vector<7x112xf32>
    %c0_191 = arith.constant 0 : index
    %c0_192 = arith.constant 0 : index
    %239 = vector.load %arg3[%c0_191, %c0_192] : memref<1x112xf32, #tpu.memory_space<vmem>>, vector<1x112xf32>
    %240 = vector.broadcast %239 : vector<1x112xf32> to vector<7x112xf32>
    %241 = arith.addf %238, %240 : vector<7x112xf32>
    %cst_193 = arith.constant 0.000000e+00 : f32
    %242 = vector.broadcast %cst_193 : f32 to vector<7x112xf32>
    %243 = arith.maximumf %241, %242 : vector<7x112xf32>
    %244 = arith.maximumf %209, %243 : vector<7x112xf32>
    %245 = vector.extract_strided_slice %1 {offsets = [3, 0, 0], sizes = [1, 7, 128], strides = [1, 1, 1]} : vector<4x8x128xf32> to vector<1x7x128xf32>
    %246 = vector.shape_cast %245 : vector<1x7x128xf32> to vector<7x128xf32>
    %c1_194 = arith.constant 1 : index
    %c0_195 = arith.constant 0 : index
    %c0_196 = arith.constant 0 : index
    %c0_197 = arith.constant 0 : index
    %247 = vector.load %arg2[%c1_194, %c0_195, %c0_196, %c0_197] : memref<2x5x128x112xf32, #tpu.memory_space<vmem>>, vector<1x1x128x112xf32>
    %248 = vector.shape_cast %247 : vector<1x1x128x112xf32> to vector<128x112xf32>
    %cst_198 = arith.constant dense<0.000000e+00> : vector<7x112xf32>
    %249 = tpu.matmul %246, %248, %cst_198 {dimension_numbers = #tpu.dot_dimension_numbers<[1], [0], [0], [1], [0, 0, 1, 1], [], []>} : vector<7x128xf32>, vector<128x112xf32>, vector<7x112xf32> -> vector<7x112xf32>
    %250 = vector.extract_strided_slice %1 {offsets = [0, 1, 0], sizes = [1, 7, 128], strides = [1, 1, 1]} : vector<4x8x128xf32> to vector<1x7x128xf32>
    %251 = vector.shape_cast %250 : vector<1x7x128xf32> to vector<7x128xf32>
    %c1_199 = arith.constant 1 : index
    %c1_200 = arith.constant 1 : index
    %c0_201 = arith.constant 0 : index
    %c0_202 = arith.constant 0 : index
    %252 = vector.load %arg2[%c1_199, %c1_200, %c0_201, %c0_202] : memref<2x5x128x112xf32, #tpu.memory_space<vmem>>, vector<1x1x128x112xf32>
    %253 = vector.shape_cast %252 : vector<1x1x128x112xf32> to vector<128x112xf32>
    %cst_203 = arith.constant dense<0.000000e+00> : vector<7x112xf32>
    %254 = tpu.matmul %251, %253, %cst_203 {dimension_numbers = #tpu.dot_dimension_numbers<[1], [0], [0], [1], [0, 0, 1, 1], [], []>} : vector<7x128xf32>, vector<128x112xf32>, vector<7x112xf32> -> vector<7x112xf32>
    %255 = arith.addf %249, %254 : vector<7x112xf32>
    %256 = vector.extract_strided_slice %1 {offsets = [1, 1, 0], sizes = [1, 7, 128], strides = [1, 1, 1]} : vector<4x8x128xf32> to vector<1x7x128xf32>
    %257 = vector.shape_cast %256 : vector<1x7x128xf32> to vector<7x128xf32>
    %c1_204 = arith.constant 1 : index
    %c2_205 = arith.constant 2 : index
    %c0_206 = arith.constant 0 : index
    %c0_207 = arith.constant 0 : index
    %258 = vector.load %arg2[%c1_204, %c2_205, %c0_206, %c0_207] : memref<2x5x128x112xf32, #tpu.memory_space<vmem>>, vector<1x1x128x112xf32>
    %259 = vector.shape_cast %258 : vector<1x1x128x112xf32> to vector<128x112xf32>
    %cst_208 = arith.constant dense<0.000000e+00> : vector<7x112xf32>
    %260 = tpu.matmul %257, %259, %cst_208 {dimension_numbers = #tpu.dot_dimension_numbers<[1], [0], [0], [1], [0, 0, 1, 1], [], []>} : vector<7x128xf32>, vector<128x112xf32>, vector<7x112xf32> -> vector<7x112xf32>
    %261 = arith.addf %255, %260 : vector<7x112xf32>
    %262 = vector.extract_strided_slice %1 {offsets = [2, 1, 0], sizes = [1, 7, 128], strides = [1, 1, 1]} : vector<4x8x128xf32> to vector<1x7x128xf32>
    %263 = vector.shape_cast %262 : vector<1x7x128xf32> to vector<7x128xf32>
    %c1_209 = arith.constant 1 : index
    %c3_210 = arith.constant 3 : index
    %c0_211 = arith.constant 0 : index
    %c0_212 = arith.constant 0 : index
    %264 = vector.load %arg2[%c1_209, %c3_210, %c0_211, %c0_212] : memref<2x5x128x112xf32, #tpu.memory_space<vmem>>, vector<1x1x128x112xf32>
    %265 = vector.shape_cast %264 : vector<1x1x128x112xf32> to vector<128x112xf32>
    %cst_213 = arith.constant dense<0.000000e+00> : vector<7x112xf32>
    %266 = tpu.matmul %263, %265, %cst_213 {dimension_numbers = #tpu.dot_dimension_numbers<[1], [0], [0], [1], [0, 0, 1, 1], [], []>} : vector<7x128xf32>, vector<128x112xf32>, vector<7x112xf32> -> vector<7x112xf32>
    %267 = arith.addf %261, %266 : vector<7x112xf32>
    %268 = vector.extract_strided_slice %1 {offsets = [3, 1, 0], sizes = [1, 7, 128], strides = [1, 1, 1]} : vector<4x8x128xf32> to vector<1x7x128xf32>
    %269 = vector.shape_cast %268 : vector<1x7x128xf32> to vector<7x128xf32>
    %c1_214 = arith.constant 1 : index
    %c4_215 = arith.constant 4 : index
    %c0_216 = arith.constant 0 : index
    %c0_217 = arith.constant 0 : index
    %270 = vector.load %arg2[%c1_214, %c4_215, %c0_216, %c0_217] : memref<2x5x128x112xf32, #tpu.memory_space<vmem>>, vector<1x1x128x112xf32>
    %271 = vector.shape_cast %270 : vector<1x1x128x112xf32> to vector<128x112xf32>
    %cst_218 = arith.constant dense<0.000000e+00> : vector<7x112xf32>
    %272 = tpu.matmul %269, %271, %cst_218 {dimension_numbers = #tpu.dot_dimension_numbers<[1], [0], [0], [1], [0, 0, 1, 1], [], []>} : vector<7x128xf32>, vector<128x112xf32>, vector<7x112xf32> -> vector<7x112xf32>
    %273 = arith.addf %267, %272 : vector<7x112xf32>
    %c0_219 = arith.constant 0 : index
    %c0_220 = arith.constant 0 : index
    %274 = vector.load %arg3[%c0_219, %c0_220] : memref<1x112xf32, #tpu.memory_space<vmem>>, vector<1x112xf32>
    %275 = vector.broadcast %274 : vector<1x112xf32> to vector<7x112xf32>
    %276 = arith.addf %273, %275 : vector<7x112xf32>
    %cst_221 = arith.constant 0.000000e+00 : f32
    %277 = vector.broadcast %cst_221 : f32 to vector<7x112xf32>
    %278 = arith.maximumf %276, %277 : vector<7x112xf32>
    %279 = arith.maximumf %244, %278 : vector<7x112xf32>
    %280 = vector.extract_strided_slice %140 {offsets = [0, 0], sizes = [5, 112], strides = [1, 1]} : vector<7x112xf32> to vector<5x112xf32>
    %c0_222 = arith.constant 0 : index
    %c0_223 = arith.constant 0 : index
    %c0_224 = arith.constant 0 : index
    %c0_225 = arith.constant 0 : index
    %281 = vector.load %arg4[%c0_222, %c0_223, %c0_224, %c0_225] : memref<2x5x112x80xf32, #tpu.memory_space<vmem>>, vector<1x1x112x80xf32>
    %282 = vector.shape_cast %281 : vector<1x1x112x80xf32> to vector<112x80xf32>
    %cst_226 = arith.constant dense<0.000000e+00> : vector<5x80xf32>
    %283 = tpu.matmul %280, %282, %cst_226 {dimension_numbers = #tpu.dot_dimension_numbers<[1], [0], [0], [1], [0, 0, 1, 1], [], []>} : vector<5x112xf32>, vector<112x80xf32>, vector<5x80xf32> -> vector<5x80xf32>
    %284 = vector.extract_strided_slice %279 {offsets = [0, 0], sizes = [5, 112], strides = [1, 1]} : vector<7x112xf32> to vector<5x112xf32>
    %c0_227 = arith.constant 0 : index
    %c1_228 = arith.constant 1 : index
    %c0_229 = arith.constant 0 : index
    %c0_230 = arith.constant 0 : index
    %285 = vector.load %arg4[%c0_227, %c1_228, %c0_229, %c0_230] : memref<2x5x112x80xf32, #tpu.memory_space<vmem>>, vector<1x1x112x80xf32>
    %286 = vector.shape_cast %285 : vector<1x1x112x80xf32> to vector<112x80xf32>
    %cst_231 = arith.constant dense<0.000000e+00> : vector<5x80xf32>
    %287 = tpu.matmul %284, %286, %cst_231 {dimension_numbers = #tpu.dot_dimension_numbers<[1], [0], [0], [1], [0, 0, 1, 1], [], []>} : vector<5x112xf32>, vector<112x80xf32>, vector<5x80xf32> -> vector<5x80xf32>
    %288 = arith.addf %283, %287 : vector<5x80xf32>
    %289 = vector.extract_strided_slice %140 {offsets = [1, 0], sizes = [5, 112], strides = [1, 1]} : vector<7x112xf32> to vector<5x112xf32>
    %c0_232 = arith.constant 0 : index
    %c2_233 = arith.constant 2 : index
    %c0_234 = arith.constant 0 : index
    %c0_235 = arith.constant 0 : index
    %290 = vector.load %arg4[%c0_232, %c2_233, %c0_234, %c0_235] : memref<2x5x112x80xf32, #tpu.memory_space<vmem>>, vector<1x1x112x80xf32>
    %291 = vector.shape_cast %290 : vector<1x1x112x80xf32> to vector<112x80xf32>
    %cst_236 = arith.constant dense<0.000000e+00> : vector<5x80xf32>
    %292 = tpu.matmul %289, %291, %cst_236 {dimension_numbers = #tpu.dot_dimension_numbers<[1], [0], [0], [1], [0, 0, 1, 1], [], []>} : vector<5x112xf32>, vector<112x80xf32>, vector<5x80xf32> -> vector<5x80xf32>
    %293 = arith.addf %288, %292 : vector<5x80xf32>
    %294 = vector.extract_strided_slice %279 {offsets = [1, 0], sizes = [5, 112], strides = [1, 1]} : vector<7x112xf32> to vector<5x112xf32>
    %c0_237 = arith.constant 0 : index
    %c3_238 = arith.constant 3 : index
    %c0_239 = arith.constant 0 : index
    %c0_240 = arith.constant 0 : index
    %295 = vector.load %arg4[%c0_237, %c3_238, %c0_239, %c0_240] : memref<2x5x112x80xf32, #tpu.memory_space<vmem>>, vector<1x1x112x80xf32>
    %296 = vector.shape_cast %295 : vector<1x1x112x80xf32> to vector<112x80xf32>
    %cst_241 = arith.constant dense<0.000000e+00> : vector<5x80xf32>
    %297 = tpu.matmul %294, %296, %cst_241 {dimension_numbers = #tpu.dot_dimension_numbers<[1], [0], [0], [1], [0, 0, 1, 1], [], []>} : vector<5x112xf32>, vector<112x80xf32>, vector<5x80xf32> -> vector<5x80xf32>
    %298 = arith.addf %293, %297 : vector<5x80xf32>
    %299 = vector.extract_strided_slice %140 {offsets = [2, 0], sizes = [5, 112], strides = [1, 1]} : vector<7x112xf32> to vector<5x112xf32>
    %c0_242 = arith.constant 0 : index
    %c4_243 = arith.constant 4 : index
    %c0_244 = arith.constant 0 : index
    %c0_245 = arith.constant 0 : index
    %300 = vector.load %arg4[%c0_242, %c4_243, %c0_244, %c0_245] : memref<2x5x112x80xf32, #tpu.memory_space<vmem>>, vector<1x1x112x80xf32>
    %301 = vector.shape_cast %300 : vector<1x1x112x80xf32> to vector<112x80xf32>
    %cst_246 = arith.constant dense<0.000000e+00> : vector<5x80xf32>
    %302 = tpu.matmul %299, %301, %cst_246 {dimension_numbers = #tpu.dot_dimension_numbers<[1], [0], [0], [1], [0, 0, 1, 1], [], []>} : vector<5x112xf32>, vector<112x80xf32>, vector<5x80xf32> -> vector<5x80xf32>
    %303 = arith.addf %298, %302 : vector<5x80xf32>
    %c0_247 = arith.constant 0 : index
    %c0_248 = arith.constant 0 : index
    %304 = vector.load %arg5[%c0_247, %c0_248] : memref<1x80xf32, #tpu.memory_space<vmem>>, vector<1x80xf32>
    %305 = vector.broadcast %304 : vector<1x80xf32> to vector<5x80xf32>
    %306 = arith.addf %303, %305 : vector<5x80xf32>
    %cst_249 = arith.constant 0.000000e+00 : f32
    %307 = vector.broadcast %cst_249 : f32 to vector<5x80xf32>
    %308 = arith.maximumf %306, %307 : vector<5x80xf32>
    %309 = vector.extract_strided_slice %140 {offsets = [0, 0], sizes = [5, 112], strides = [1, 1]} : vector<7x112xf32> to vector<5x112xf32>
    %c1_250 = arith.constant 1 : index
    %c0_251 = arith.constant 0 : index
    %c0_252 = arith.constant 0 : index
    %c0_253 = arith.constant 0 : index
    %310 = vector.load %arg4[%c1_250, %c0_251, %c0_252, %c0_253] : memref<2x5x112x80xf32, #tpu.memory_space<vmem>>, vector<1x1x112x80xf32>
    %311 = vector.shape_cast %310 : vector<1x1x112x80xf32> to vector<112x80xf32>
    %cst_254 = arith.constant dense<0.000000e+00> : vector<5x80xf32>
    %312 = tpu.matmul %309, %311, %cst_254 {dimension_numbers = #tpu.dot_dimension_numbers<[1], [0], [0], [1], [0, 0, 1, 1], [], []>} : vector<5x112xf32>, vector<112x80xf32>, vector<5x80xf32> -> vector<5x80xf32>
    %313 = vector.extract_strided_slice %279 {offsets = [0, 0], sizes = [5, 112], strides = [1, 1]} : vector<7x112xf32> to vector<5x112xf32>
    %c1_255 = arith.constant 1 : index
    %c1_256 = arith.constant 1 : index
    %c0_257 = arith.constant 0 : index
    %c0_258 = arith.constant 0 : index
    %314 = vector.load %arg4[%c1_255, %c1_256, %c0_257, %c0_258] : memref<2x5x112x80xf32, #tpu.memory_space<vmem>>, vector<1x1x112x80xf32>
    %315 = vector.shape_cast %314 : vector<1x1x112x80xf32> to vector<112x80xf32>
    %cst_259 = arith.constant dense<0.000000e+00> : vector<5x80xf32>
    %316 = tpu.matmul %313, %315, %cst_259 {dimension_numbers = #tpu.dot_dimension_numbers<[1], [0], [0], [1], [0, 0, 1, 1], [], []>} : vector<5x112xf32>, vector<112x80xf32>, vector<5x80xf32> -> vector<5x80xf32>
    %317 = arith.addf %312, %316 : vector<5x80xf32>
    %318 = vector.extract_strided_slice %140 {offsets = [1, 0], sizes = [5, 112], strides = [1, 1]} : vector<7x112xf32> to vector<5x112xf32>
    %c1_260 = arith.constant 1 : index
    %c2_261 = arith.constant 2 : index
    %c0_262 = arith.constant 0 : index
    %c0_263 = arith.constant 0 : index
    %319 = vector.load %arg4[%c1_260, %c2_261, %c0_262, %c0_263] : memref<2x5x112x80xf32, #tpu.memory_space<vmem>>, vector<1x1x112x80xf32>
    %320 = vector.shape_cast %319 : vector<1x1x112x80xf32> to vector<112x80xf32>
    %cst_264 = arith.constant dense<0.000000e+00> : vector<5x80xf32>
    %321 = tpu.matmul %318, %320, %cst_264 {dimension_numbers = #tpu.dot_dimension_numbers<[1], [0], [0], [1], [0, 0, 1, 1], [], []>} : vector<5x112xf32>, vector<112x80xf32>, vector<5x80xf32> -> vector<5x80xf32>
    %322 = arith.addf %317, %321 : vector<5x80xf32>
    %323 = vector.extract_strided_slice %279 {offsets = [1, 0], sizes = [5, 112], strides = [1, 1]} : vector<7x112xf32> to vector<5x112xf32>
    %c1_265 = arith.constant 1 : index
    %c3_266 = arith.constant 3 : index
    %c0_267 = arith.constant 0 : index
    %c0_268 = arith.constant 0 : index
    %324 = vector.load %arg4[%c1_265, %c3_266, %c0_267, %c0_268] : memref<2x5x112x80xf32, #tpu.memory_space<vmem>>, vector<1x1x112x80xf32>
    %325 = vector.shape_cast %324 : vector<1x1x112x80xf32> to vector<112x80xf32>
    %cst_269 = arith.constant dense<0.000000e+00> : vector<5x80xf32>
    %326 = tpu.matmul %323, %325, %cst_269 {dimension_numbers = #tpu.dot_dimension_numbers<[1], [0], [0], [1], [0, 0, 1, 1], [], []>} : vector<5x112xf32>, vector<112x80xf32>, vector<5x80xf32> -> vector<5x80xf32>
    %327 = arith.addf %322, %326 : vector<5x80xf32>
    %328 = vector.extract_strided_slice %140 {offsets = [2, 0], sizes = [5, 112], strides = [1, 1]} : vector<7x112xf32> to vector<5x112xf32>
    %c1_270 = arith.constant 1 : index
    %c4_271 = arith.constant 4 : index
    %c0_272 = arith.constant 0 : index
    %c0_273 = arith.constant 0 : index
    %329 = vector.load %arg4[%c1_270, %c4_271, %c0_272, %c0_273] : memref<2x5x112x80xf32, #tpu.memory_space<vmem>>, vector<1x1x112x80xf32>
    %330 = vector.shape_cast %329 : vector<1x1x112x80xf32> to vector<112x80xf32>
    %cst_274 = arith.constant dense<0.000000e+00> : vector<5x80xf32>
    %331 = tpu.matmul %328, %330, %cst_274 {dimension_numbers = #tpu.dot_dimension_numbers<[1], [0], [0], [1], [0, 0, 1, 1], [], []>} : vector<5x112xf32>, vector<112x80xf32>, vector<5x80xf32> -> vector<5x80xf32>
    %332 = arith.addf %327, %331 : vector<5x80xf32>
    %c0_275 = arith.constant 0 : index
    %c0_276 = arith.constant 0 : index
    %333 = vector.load %arg5[%c0_275, %c0_276] : memref<1x80xf32, #tpu.memory_space<vmem>>, vector<1x80xf32>
    %334 = vector.broadcast %333 : vector<1x80xf32> to vector<5x80xf32>
    %335 = arith.addf %332, %334 : vector<5x80xf32>
    %cst_277 = arith.constant 0.000000e+00 : f32
    %336 = vector.broadcast %cst_277 : f32 to vector<5x80xf32>
    %337 = arith.maximumf %335, %336 : vector<5x80xf32>
    %338 = arith.maximumf %308, %337 : vector<5x80xf32>
    %339 = vector.extract_strided_slice %279 {offsets = [0, 0], sizes = [5, 112], strides = [1, 1]} : vector<7x112xf32> to vector<5x112xf32>
    %c0_278 = arith.constant 0 : index
    %c0_279 = arith.constant 0 : index
    %c0_280 = arith.constant 0 : index
    %c0_281 = arith.constant 0 : index
    %340 = vector.load %arg4[%c0_278, %c0_279, %c0_280, %c0_281] : memref<2x5x112x80xf32, #tpu.memory_space<vmem>>, vector<1x1x112x80xf32>
    %341 = vector.shape_cast %340 : vector<1x1x112x80xf32> to vector<112x80xf32>
    %cst_282 = arith.constant dense<0.000000e+00> : vector<5x80xf32>
    %342 = tpu.matmul %339, %341, %cst_282 {dimension_numbers = #tpu.dot_dimension_numbers<[1], [0], [0], [1], [0, 0, 1, 1], [], []>} : vector<5x112xf32>, vector<112x80xf32>, vector<5x80xf32> -> vector<5x80xf32>
    %343 = vector.extract_strided_slice %140 {offsets = [1, 0], sizes = [5, 112], strides = [1, 1]} : vector<7x112xf32> to vector<5x112xf32>
    %c0_283 = arith.constant 0 : index
    %c1_284 = arith.constant 1 : index
    %c0_285 = arith.constant 0 : index
    %c0_286 = arith.constant 0 : index
    %344 = vector.load %arg4[%c0_283, %c1_284, %c0_285, %c0_286] : memref<2x5x112x80xf32, #tpu.memory_space<vmem>>, vector<1x1x112x80xf32>
    %345 = vector.shape_cast %344 : vector<1x1x112x80xf32> to vector<112x80xf32>
    %cst_287 = arith.constant dense<0.000000e+00> : vector<5x80xf32>
    %346 = tpu.matmul %343, %345, %cst_287 {dimension_numbers = #tpu.dot_dimension_numbers<[1], [0], [0], [1], [0, 0, 1, 1], [], []>} : vector<5x112xf32>, vector<112x80xf32>, vector<5x80xf32> -> vector<5x80xf32>
    %347 = arith.addf %342, %346 : vector<5x80xf32>
    %348 = vector.extract_strided_slice %279 {offsets = [1, 0], sizes = [5, 112], strides = [1, 1]} : vector<7x112xf32> to vector<5x112xf32>
    %c0_288 = arith.constant 0 : index
    %c2_289 = arith.constant 2 : index
    %c0_290 = arith.constant 0 : index
    %c0_291 = arith.constant 0 : index
    %349 = vector.load %arg4[%c0_288, %c2_289, %c0_290, %c0_291] : memref<2x5x112x80xf32, #tpu.memory_space<vmem>>, vector<1x1x112x80xf32>
    %350 = vector.shape_cast %349 : vector<1x1x112x80xf32> to vector<112x80xf32>
    %cst_292 = arith.constant dense<0.000000e+00> : vector<5x80xf32>
    %351 = tpu.matmul %348, %350, %cst_292 {dimension_numbers = #tpu.dot_dimension_numbers<[1], [0], [0], [1], [0, 0, 1, 1], [], []>} : vector<5x112xf32>, vector<112x80xf32>, vector<5x80xf32> -> vector<5x80xf32>
    %352 = arith.addf %347, %351 : vector<5x80xf32>
    %353 = vector.extract_strided_slice %140 {offsets = [2, 0], sizes = [5, 112], strides = [1, 1]} : vector<7x112xf32> to vector<5x112xf32>
    %c0_293 = arith.constant 0 : index
    %c3_294 = arith.constant 3 : index
    %c0_295 = arith.constant 0 : index
    %c0_296 = arith.constant 0 : index
    %354 = vector.load %arg4[%c0_293, %c3_294, %c0_295, %c0_296] : memref<2x5x112x80xf32, #tpu.memory_space<vmem>>, vector<1x1x112x80xf32>
    %355 = vector.shape_cast %354 : vector<1x1x112x80xf32> to vector<112x80xf32>
    %cst_297 = arith.constant dense<0.000000e+00> : vector<5x80xf32>
    %356 = tpu.matmul %353, %355, %cst_297 {dimension_numbers = #tpu.dot_dimension_numbers<[1], [0], [0], [1], [0, 0, 1, 1], [], []>} : vector<5x112xf32>, vector<112x80xf32>, vector<5x80xf32> -> vector<5x80xf32>
    %357 = arith.addf %352, %356 : vector<5x80xf32>
    %358 = vector.extract_strided_slice %279 {offsets = [2, 0], sizes = [5, 112], strides = [1, 1]} : vector<7x112xf32> to vector<5x112xf32>
    %c0_298 = arith.constant 0 : index
    %c4_299 = arith.constant 4 : index
    %c0_300 = arith.constant 0 : index
    %c0_301 = arith.constant 0 : index
    %359 = vector.load %arg4[%c0_298, %c4_299, %c0_300, %c0_301] : memref<2x5x112x80xf32, #tpu.memory_space<vmem>>, vector<1x1x112x80xf32>
    %360 = vector.shape_cast %359 : vector<1x1x112x80xf32> to vector<112x80xf32>
    %cst_302 = arith.constant dense<0.000000e+00> : vector<5x80xf32>
    %361 = tpu.matmul %358, %360, %cst_302 {dimension_numbers = #tpu.dot_dimension_numbers<[1], [0], [0], [1], [0, 0, 1, 1], [], []>} : vector<5x112xf32>, vector<112x80xf32>, vector<5x80xf32> -> vector<5x80xf32>
    %362 = arith.addf %357, %361 : vector<5x80xf32>
    %c0_303 = arith.constant 0 : index
    %c0_304 = arith.constant 0 : index
    %363 = vector.load %arg5[%c0_303, %c0_304] : memref<1x80xf32, #tpu.memory_space<vmem>>, vector<1x80xf32>
    %364 = vector.broadcast %363 : vector<1x80xf32> to vector<5x80xf32>
    %365 = arith.addf %362, %364 : vector<5x80xf32>
    %cst_305 = arith.constant 0.000000e+00 : f32
    %366 = vector.broadcast %cst_305 : f32 to vector<5x80xf32>
    %367 = arith.maximumf %365, %366 : vector<5x80xf32>
    %368 = arith.maximumf %338, %367 : vector<5x80xf32>
    %369 = vector.extract_strided_slice %279 {offsets = [0, 0], sizes = [5, 112], strides = [1, 1]} : vector<7x112xf32> to vector<5x112xf32>
    %c1_306 = arith.constant 1 : index
    %c0_307 = arith.constant 0 : index
    %c0_308 = arith.constant 0 : index
    %c0_309 = arith.constant 0 : index
    %370 = vector.load %arg4[%c1_306, %c0_307, %c0_308, %c0_309] : memref<2x5x112x80xf32, #tpu.memory_space<vmem>>, vector<1x1x112x80xf32>
    %371 = vector.shape_cast %370 : vector<1x1x112x80xf32> to vector<112x80xf32>
    %cst_310 = arith.constant dense<0.000000e+00> : vector<5x80xf32>
    %372 = tpu.matmul %369, %371, %cst_310 {dimension_numbers = #tpu.dot_dimension_numbers<[1], [0], [0], [1], [0, 0, 1, 1], [], []>} : vector<5x112xf32>, vector<112x80xf32>, vector<5x80xf32> -> vector<5x80xf32>
    %373 = vector.extract_strided_slice %140 {offsets = [1, 0], sizes = [5, 112], strides = [1, 1]} : vector<7x112xf32> to vector<5x112xf32>
    %c1_311 = arith.constant 1 : index
    %c1_312 = arith.constant 1 : index
    %c0_313 = arith.constant 0 : index
    %c0_314 = arith.constant 0 : index
    %374 = vector.load %arg4[%c1_311, %c1_312, %c0_313, %c0_314] : memref<2x5x112x80xf32, #tpu.memory_space<vmem>>, vector<1x1x112x80xf32>
    %375 = vector.shape_cast %374 : vector<1x1x112x80xf32> to vector<112x80xf32>
    %cst_315 = arith.constant dense<0.000000e+00> : vector<5x80xf32>
    %376 = tpu.matmul %373, %375, %cst_315 {dimension_numbers = #tpu.dot_dimension_numbers<[1], [0], [0], [1], [0, 0, 1, 1], [], []>} : vector<5x112xf32>, vector<112x80xf32>, vector<5x80xf32> -> vector<5x80xf32>
    %377 = arith.addf %372, %376 : vector<5x80xf32>
    %378 = vector.extract_strided_slice %279 {offsets = [1, 0], sizes = [5, 112], strides = [1, 1]} : vector<7x112xf32> to vector<5x112xf32>
    %c1_316 = arith.constant 1 : index
    %c2_317 = arith.constant 2 : index
    %c0_318 = arith.constant 0 : index
    %c0_319 = arith.constant 0 : index
    %379 = vector.load %arg4[%c1_316, %c2_317, %c0_318, %c0_319] : memref<2x5x112x80xf32, #tpu.memory_space<vmem>>, vector<1x1x112x80xf32>
    %380 = vector.shape_cast %379 : vector<1x1x112x80xf32> to vector<112x80xf32>
    %cst_320 = arith.constant dense<0.000000e+00> : vector<5x80xf32>
    %381 = tpu.matmul %378, %380, %cst_320 {dimension_numbers = #tpu.dot_dimension_numbers<[1], [0], [0], [1], [0, 0, 1, 1], [], []>} : vector<5x112xf32>, vector<112x80xf32>, vector<5x80xf32> -> vector<5x80xf32>
    %382 = arith.addf %377, %381 : vector<5x80xf32>
    %383 = vector.extract_strided_slice %140 {offsets = [2, 0], sizes = [5, 112], strides = [1, 1]} : vector<7x112xf32> to vector<5x112xf32>
    %c1_321 = arith.constant 1 : index
    %c3_322 = arith.constant 3 : index
    %c0_323 = arith.constant 0 : index
    %c0_324 = arith.constant 0 : index
    %384 = vector.load %arg4[%c1_321, %c3_322, %c0_323, %c0_324] : memref<2x5x112x80xf32, #tpu.memory_space<vmem>>, vector<1x1x112x80xf32>
    %385 = vector.shape_cast %384 : vector<1x1x112x80xf32> to vector<112x80xf32>
    %cst_325 = arith.constant dense<0.000000e+00> : vector<5x80xf32>
    %386 = tpu.matmul %383, %385, %cst_325 {dimension_numbers = #tpu.dot_dimension_numbers<[1], [0], [0], [1], [0, 0, 1, 1], [], []>} : vector<5x112xf32>, vector<112x80xf32>, vector<5x80xf32> -> vector<5x80xf32>
    %387 = arith.addf %382, %386 : vector<5x80xf32>
    %388 = vector.extract_strided_slice %279 {offsets = [2, 0], sizes = [5, 112], strides = [1, 1]} : vector<7x112xf32> to vector<5x112xf32>
    %c1_326 = arith.constant 1 : index
    %c4_327 = arith.constant 4 : index
    %c0_328 = arith.constant 0 : index
    %c0_329 = arith.constant 0 : index
    %389 = vector.load %arg4[%c1_326, %c4_327, %c0_328, %c0_329] : memref<2x5x112x80xf32, #tpu.memory_space<vmem>>, vector<1x1x112x80xf32>
    %390 = vector.shape_cast %389 : vector<1x1x112x80xf32> to vector<112x80xf32>
    %cst_330 = arith.constant dense<0.000000e+00> : vector<5x80xf32>
    %391 = tpu.matmul %388, %390, %cst_330 {dimension_numbers = #tpu.dot_dimension_numbers<[1], [0], [0], [1], [0, 0, 1, 1], [], []>} : vector<5x112xf32>, vector<112x80xf32>, vector<5x80xf32> -> vector<5x80xf32>
    %392 = arith.addf %387, %391 : vector<5x80xf32>
    %c0_331 = arith.constant 0 : index
    %c0_332 = arith.constant 0 : index
    %393 = vector.load %arg5[%c0_331, %c0_332] : memref<1x80xf32, #tpu.memory_space<vmem>>, vector<1x80xf32>
    %394 = vector.broadcast %393 : vector<1x80xf32> to vector<5x80xf32>
    %395 = arith.addf %392, %394 : vector<5x80xf32>
    %cst_333 = arith.constant 0.000000e+00 : f32
    %396 = vector.broadcast %cst_333 : f32 to vector<5x80xf32>
    %397 = arith.maximumf %395, %396 : vector<5x80xf32>
    %398 = arith.maximumf %368, %397 : vector<5x80xf32>
    %399 = vector.extract_strided_slice %398 {offsets = [0, 0], sizes = [1, 80], strides = [1, 1]} : vector<5x80xf32> to vector<1x80xf32>
    %c0_334 = arith.constant 0 : index
    %c0_335 = arith.constant 0 : index
    %c0_336 = arith.constant 0 : index
    %400 = vector.load %arg6[%c0_334, %c0_335, %c0_336] : memref<5x80x128xf32, #tpu.memory_space<vmem>>, vector<1x80x128xf32>
    %401 = vector.shape_cast %400 : vector<1x80x128xf32> to vector<80x128xf32>
    %cst_337 = arith.constant dense<0.000000e+00> : vector<1x128xf32>
    %402 = tpu.matmul %399, %401, %cst_337 {dimension_numbers = #tpu.dot_dimension_numbers<[1], [0], [0], [1], [0, 0, 1, 1], [], []>} : vector<1x80xf32>, vector<80x128xf32>, vector<1x128xf32> -> vector<1x128xf32>
    %403 = vector.extract_strided_slice %398 {offsets = [1, 0], sizes = [1, 80], strides = [1, 1]} : vector<5x80xf32> to vector<1x80xf32>
    %c1_338 = arith.constant 1 : index
    %c0_339 = arith.constant 0 : index
    %c0_340 = arith.constant 0 : index
    %404 = vector.load %arg6[%c1_338, %c0_339, %c0_340] : memref<5x80x128xf32, #tpu.memory_space<vmem>>, vector<1x80x128xf32>
    %405 = vector.shape_cast %404 : vector<1x80x128xf32> to vector<80x128xf32>
    %cst_341 = arith.constant dense<0.000000e+00> : vector<1x128xf32>
    %406 = tpu.matmul %403, %405, %cst_341 {dimension_numbers = #tpu.dot_dimension_numbers<[1], [0], [0], [1], [0, 0, 1, 1], [], []>} : vector<1x80xf32>, vector<80x128xf32>, vector<1x128xf32> -> vector<1x128xf32>
    %407 = arith.addf %402, %406 : vector<1x128xf32>
    %408 = vector.extract_strided_slice %398 {offsets = [2, 0], sizes = [1, 80], strides = [1, 1]} : vector<5x80xf32> to vector<1x80xf32>
    %c2_342 = arith.constant 2 : index
    %c0_343 = arith.constant 0 : index
    %c0_344 = arith.constant 0 : index
    %409 = vector.load %arg6[%c2_342, %c0_343, %c0_344] : memref<5x80x128xf32, #tpu.memory_space<vmem>>, vector<1x80x128xf32>
    %410 = vector.shape_cast %409 : vector<1x80x128xf32> to vector<80x128xf32>
    %cst_345 = arith.constant dense<0.000000e+00> : vector<1x128xf32>
    %411 = tpu.matmul %408, %410, %cst_345 {dimension_numbers = #tpu.dot_dimension_numbers<[1], [0], [0], [1], [0, 0, 1, 1], [], []>} : vector<1x80xf32>, vector<80x128xf32>, vector<1x128xf32> -> vector<1x128xf32>
    %412 = arith.addf %407, %411 : vector<1x128xf32>
    %413 = vector.extract_strided_slice %398 {offsets = [3, 0], sizes = [1, 80], strides = [1, 1]} : vector<5x80xf32> to vector<1x80xf32>
    %c3_346 = arith.constant 3 : index
    %c0_347 = arith.constant 0 : index
    %c0_348 = arith.constant 0 : index
    %414 = vector.load %arg6[%c3_346, %c0_347, %c0_348] : memref<5x80x128xf32, #tpu.memory_space<vmem>>, vector<1x80x128xf32>
    %415 = vector.shape_cast %414 : vector<1x80x128xf32> to vector<80x128xf32>
    %cst_349 = arith.constant dense<0.000000e+00> : vector<1x128xf32>
    %416 = tpu.matmul %413, %415, %cst_349 {dimension_numbers = #tpu.dot_dimension_numbers<[1], [0], [0], [1], [0, 0, 1, 1], [], []>} : vector<1x80xf32>, vector<80x128xf32>, vector<1x128xf32> -> vector<1x128xf32>
    %417 = arith.addf %412, %416 : vector<1x128xf32>
    %418 = vector.extract_strided_slice %398 {offsets = [4, 0], sizes = [1, 80], strides = [1, 1]} : vector<5x80xf32> to vector<1x80xf32>
    %c4_350 = arith.constant 4 : index
    %c0_351 = arith.constant 0 : index
    %c0_352 = arith.constant 0 : index
    %419 = vector.load %arg6[%c4_350, %c0_351, %c0_352] : memref<5x80x128xf32, #tpu.memory_space<vmem>>, vector<1x80x128xf32>
    %420 = vector.shape_cast %419 : vector<1x80x128xf32> to vector<80x128xf32>
    %cst_353 = arith.constant dense<0.000000e+00> : vector<1x128xf32>
    %421 = tpu.matmul %418, %420, %cst_353 {dimension_numbers = #tpu.dot_dimension_numbers<[1], [0], [0], [1], [0, 0, 1, 1], [], []>} : vector<1x80xf32>, vector<80x128xf32>, vector<1x128xf32> -> vector<1x128xf32>
    %422 = arith.addf %417, %421 : vector<1x128xf32>
    %c0_354 = arith.constant 0 : index
    %c0_355 = arith.constant 0 : index
    %423 = vector.load %arg7[%c0_354, %c0_355] : memref<1x128xf32, #tpu.memory_space<vmem>>, vector<1x128xf32>
    %424 = arith.addf %422, %423 : vector<1x128xf32>
    %cst_356 = arith.constant 0.000000e+00 : f32
    %425 = vector.broadcast %cst_356 : f32 to vector<1x128xf32>
    %426 = arith.maximumf %424, %425 : vector<1x128xf32>
    %c0_357 = arith.constant 0 : index
    %c0_358 = arith.constant 0 : index
    %427 = vector.load %arg8[%c0_357, %c0_358] : memref<128x128xf32, #tpu.memory_space<vmem>>, vector<128x128xf32>
    %cst_359 = arith.constant dense<0.000000e+00> : vector<1x128xf32>
    %428 = tpu.matmul %426, %427, %cst_359 {dimension_numbers = #tpu.dot_dimension_numbers<[1], [0], [0], [1], [0, 0, 1, 1], [], []>} : vector<1x128xf32>, vector<128x128xf32>, vector<1x128xf32> -> vector<1x128xf32>
    %c0_360 = arith.constant 0 : index
    %c0_361 = arith.constant 0 : index
    %429 = vector.load %arg9[%c0_360, %c0_361] : memref<1x128xf32, #tpu.memory_space<vmem>>, vector<1x128xf32>
    %430 = arith.addf %428, %429 : vector<1x128xf32>
    %cst_362 = arith.constant 0.000000e+00 : f32
    %431 = vector.broadcast %cst_362 : f32 to vector<1x128xf32>
    %432 = arith.maximumf %430, %431 : vector<1x128xf32>
    %c0_363 = arith.constant 0 : index
    %c0_364 = arith.constant 0 : index
    %433 = vector.load %arg10[%c0_363, %c0_364] : memref<128x128xf32, #tpu.memory_space<vmem>>, vector<128x128xf32>
    %cst_365 = arith.constant dense<0.000000e+00> : vector<1x128xf32>
    %434 = tpu.matmul %432, %433, %cst_365 {dimension_numbers = #tpu.dot_dimension_numbers<[1], [0], [0], [1], [0, 0, 1, 1], [], []>} : vector<1x128xf32>, vector<128x128xf32>, vector<1x128xf32> -> vector<1x128xf32>
    %c0_366 = arith.constant 0 : index
    %c0_367 = arith.constant 0 : index
    %435 = vector.load %arg11[%c0_366, %c0_367] : memref<1x128xf32, #tpu.memory_space<vmem>>, vector<1x128xf32>
    %436 = arith.addf %434, %435 : vector<1x128xf32>
    %c0_368 = arith.constant 0 : index
    %c0_369 = arith.constant 0 : index
    %c0_370 = arith.constant 0 : index
    %437 = vector.load %arg12[%c0_368, %c0_369, %c0_370] : memref<1x1x128xf32, #tpu.memory_space<vmem>>, vector<1x1x128xf32>
    %438 = vector.shape_cast %437 : vector<1x1x128xf32> to vector<1x128xf32>
    %439 = vector.shape_cast %436 : vector<1x128xf32> to vector<1x1x128xf32>
    tpu.vector_store %arg12[%c0_368, %c0_369, %c0_370], %439 {strides = array<i32>} : memref<1x1x128xf32, #tpu.memory_space<vmem>>, vector<1x1x128xf32>,
    return
  }
  func.func @transform_0(%arg0: i32) -> (i32, i32, i32, i32) {
    %c0_i32 = arith.constant 0 : i32
    %c0_i32_0 = arith.constant 0 : i32
    %c0_i32_1 = arith.constant 0 : i32
    %c0_i32_2 = arith.constant 0 : i32
    return %arg0, %c0_i32, %c0_i32_0, %c0_i32_1 : i32, i32, i32, i32
  }
  func.func @transform_1(%arg0: i32) -> (i32, i32, i32, i32) {
    %c0_i32 = arith.constant 0 : i32
    %c0_i32_0 = arith.constant 0 : i32
    %c0_i32_1 = arith.constant 0 : i32
    %c0_i32_2 = arith.constant 0 : i32
    %c0_i32_3 = arith.constant 0 : i32
    return %c0_i32, %c0_i32_0, %c0_i32_1, %c0_i32_2 : i32, i32, i32, i32
  }
  func.func @transform_2(%arg0: i32) -> (i32, i32) {
    %c0_i32 = arith.constant 0 : i32
    %c0_i32_0 = arith.constant 0 : i32
    %c0_i32_1 = arith.constant 0 : i32
    return %c0_i32, %c0_i32_0 : i32, i32
  }
  func.func @transform_3(%arg0: i32) -> (i32, i32, i32, i32) {
    %c0_i32 = arith.constant 0 : i32
    %c0_i32_0 = arith.constant 0 : i32
    %c0_i32_1 = arith.constant 0 : i32
    %c0_i32_2 = arith.constant 0 : i32
    %c0_i32_3 = arith.constant 0 : i32
    return %c0_i32, %c0_i32_0, %c0_i32_1, %c0_i32_2 : i32, i32, i32, i32
  }
  func.func @transform_4(%arg0: i32) -> (i32, i32) {
    %c0_i32 = arith.constant 0 : i32
    %c0_i32_0 = arith.constant 0 : i32
    %c0_i32_1 = arith.constant 0 : i32
    return %c0_i32, %c0_i32_0 : i32, i32
  }
  func.func @transform_5(%arg0: i32) -> (i32, i32, i32) {
    %c0_i32 = arith.constant 0 : i32
    %c0_i32_0 = arith.constant 0 : i32
    %c0_i32_1 = arith.constant 0 : i32
    %c0_i32_2 = arith.constant 0 : i32
    return %c0_i32, %c0_i32_0, %c0_i32_1 : i32, i32, i32
  }
  func.func @transform_6(%arg0: i32) -> (i32, i32) {
    %c0_i32 = arith.constant 0 : i32
    %c0_i32_0 = arith.constant 0 : i32
    %c0_i32_1 = arith.constant 0 : i32
    return %c0_i32, %c0_i32_0 : i32, i32
  }
  func.func @transform_7(%arg0: i32) -> (i32, i32) {
    %c0_i32 = arith.constant 0 : i32
    %c0_i32_0 = arith.constant 0 : i32
    %c0_i32_1 = arith.constant 0 : i32
    return %c0_i32, %c0_i32_0 : i32, i32
  }
  func.func @transform_8(%arg0: i32) -> (i32, i32) {
    %c0_i32 = arith.constant 0 : i32
    %c0_i32_0 = arith.constant 0 : i32
    %c0_i32_1 = arith.constant 0 : i32
    return %c0_i32, %c0_i32_0 : i32, i32
  }
  func.func @transform_9(%arg0: i32) -> (i32, i32) {
    %c0_i32 = arith.constant 0 : i32
    %c0_i32_0 = arith.constant 0 : i32
    %c0_i32_1 = arith.constant 0 : i32
    return %c0_i32, %c0_i32_0 : i32, i32
  }
  func.func @transform_10(%arg0: i32) -> (i32, i32) {
    %c0_i32 = arith.constant 0 : i32
    %c0_i32_0 = arith.constant 0 : i32
    %c0_i32_1 = arith.constant 0 : i32
    return %c0_i32, %c0_i32_0 : i32, i32
  }
  func.func @transform_11(%arg0: i32) -> (i32, i32, i32) {
    %c0_i32 = arith.constant 0 : i32
    %c0_i32_0 = arith.constant 0 : i32
    %c0_i32_1 = arith.constant 0 : i32
    return %arg0, %c0_i32, %c0_i32_0 : i32, i32, i32
  }
}

</mosaic_0001>

<bundles_post_ra>
// kernel: cnn_forward.1
= control target key start
LH: loop header
LB: loop body
LE: loop exit
PB: predicated region body
PF: predicated region fallthrough
CT: control target
= control target key end

     0   :  { %s6188_s0 = inlined_call_operand.vmem [shape: f32[2,4,8,128], index: 0, kind: input, shape index: {}]   ;;  %s6189_s1 = inlined_call_operand.vmem [shape: f32[2,5,128,112], index: 1, kind: input, shape index: {}]   ;;  %s6190_s2 = inlined_call_operand.vmem [shape: f32[1,112], index: 2, kind: input, shape index: {}]   ;;  %s6191_s3 = inlined_call_operand.vmem [shape: f32[2,5,112,80], index: 3, kind: input, shape index: {}]   ;;  %s6192_s4 = inlined_call_operand.vmem [shape: f32[1,80], index: 4, kind: input, shape index: {}]   ;;  %s6193_s5 = inlined_call_operand.vmem [shape: f32[5,80,128], index: 5, kind: input, shape index: {}]   ;;  %s6194_s6 = inlined_call_operand.vmem [shape: f32[1,128], index: 6, kind: input, shape index: {}]   ;;  %s6195_s7 = inlined_call_operand.vmem [shape: f32[128,128], index: 7, kind: input, shape index: {}]   ;;  %s6196_s8 = inlined_call_operand.vmem [shape: f32[1,128], index: 8, kind: input, shape index: {}]   ;;  %s6197_s9 = inlined_call_operand.vmem [shape: f32[128,128], index: 9, kind: input, shape index: {}]   ;;  %s6198_s10 = inlined_call_operand.vmem [shape: f32[1,128], index: 10, kind: input, shape index: {}]   ;;  %s6199_s11 = inlined_call_operand.hbm [shape: f32[2,1,128], index: 11, kind: output, shape index: {}]  }
   0x1   :  { %6490 = sst [smem:[#allocation148_spill]] %s6188_s0 }
   0x2   :  { %6491 = sst [smem:[#allocation149_spill]] %s6189_s1 }
   0x3   :  { %16 = vsyncpa [#allocation3], 0 }
   0x4   :  { %18 = vsyncpa [#allocation3 + $0x1], 0  ;;  %s2996_s17 = smov 0   ;;  %s2998_s18 = smov 0  }
   0x5   :  { %s3000_s19 = smov 0   ;;  %s3002_s20 = smov 0  }
   0x6 LB: > { %s3017_s21 = sadd.s32 4294967295, %s2934_s20   ;;  %s2334_s22 = sadd.s32 4294967294, %s2934_s20   ;;  %s2934_s20 = sphi %s3002_s20, %s6951_s20   ;;  %s2930_s19 = sphi %s3000_s19, %s6950_s19   ;;  %s2926_s18 = sphi %s2998_s18, %s6949_s18   ;;  %s2922_s17 = sphi %s2996_s17, %s6948_s17  }
   0x7   : > { %s3021_s23 = sadd.s32 1, %s2934_s20   ;;  %s267_s24 = sadd.s32 1, %s2930_s19 }
   0x8   : > { %s264_s25 = ssub.s32 %s2934_s20, %s3021_s23  ;;  %p277_p0 = scmp.ne.s32.totalorder %s2930_s19, %s2926_s18 }
   0x9   : > { %p265_p1 = scmp.eq.s32.totalorder %s264_s25, 0  ;;  %p278_p2 = scmp.eq.s32.totalorder %s3017_s21, 1 }
   0xa   : > { %p283_p3 = scmp.ne.s32.totalorder %s2926_s18, %s2922_s17  ;;  %p284_p4 = scmp.eq.s32.totalorder %s2334_s22, 1 }
   0xb   : > { %s3032_s26 = scalar_select %p265_p1, %s2930_s19, %s267_s24  }
   0xc   : > { %p3034_p5 = por %p278_p2, %p277_p0  ;;  %p3038_p6 = por %p284_p4, %p283_p3 }
   0xd   : > { %p2337_p7 = scmp.ge.s32.totalorder %s2934_s20, 1  ;;  %p340_p8 = scmp.lt.s32.totalorder %s2934_s20, 3 }
   0xf   : > { %p341_p9 = pnand %p2337_p7, %p340_p8 }
  0x11   : > { %344 = sbr.rel (%p341_p9) target bundleno = 1196 (0x4ac), region = 64 }
  0x16   : > { %s6494_s1 = sld [smem:[#allocation149_spill]]  ;;  %p379_p10 = scmp.lt.s32.totalorder %s3017_s21, 1  ;;  %vm1448_vm0 = vcmask 916480   ;;  %vm2037_vm1 = vcmask 654336  }
  0x17   : > { %s6601_s0 = sld [smem:[#allocation148_spill]]  ;;  %s377_s25 = sand.u32 1, %s2926_s18  }
  0x18   : > { %s3672_s29 = scalar_select %p379_p10, %s3017_s21, 1 }
  0x19   : > { %s2275_s30 = scalar_lea.hbm %s6199_s11, %s3017_s21  ;;  %s378_s13 = scalar_lea.vmem [#allocation2], %s377_s25 }
  0x1a   : > { %s2677_s24 = sshll.u32 %s3672_s29, 5  ;;  %s2277_s14 = sshll.u32 %s378_s13, 4  ;;  %s2278_s14 = int_to_ptr.vmem [resolvable:$true] %s2277_s14 }
  0x1b   : > { %s2279_s15 = sshll.u32 %s2275_s30, 4  ;;  %s2267_s16 = scalar_lea.sflag [#allocation3], %s377_s25  ;;  %s2280_s15 = int_to_ptr.hbm [resolvable:$true] %s2279_s15 }
  0x1c   : > { %v3047_v0 = vld [vmem:[%s6494_s1 + $0xf8] sm:$0xff]  ;;  %v3064_v3 = vld [vmem:[%s6494_s1 + $0xf0] sm:$0xff]  ;;  %v3085_v7 = vld [vmem:[%s6494_s1 + $0xe8] sm:$0xff]  ;;  %s2886_s22 = sshra.s32 %s2280_s15, 4  ;;  %s2887_s22 = int_to_ptr.hbm [resolvable:$true] %s2886_s22 }
  0x1d   : > { %6495 = vst [vmem:[#allocation5_spill] sm:$0xff] %v3047_v0  ;;  %v3052_v1 = vld [vmem:[%s6494_s1 + $0x78] sm:$0xff]  ;;  %421 = vmatpush.msra.mxu0 %v3047_v0  ;;  %v3069_v4 = vld [vmem:[%s6494_s1 + $0x70] sm:$0xff]  ;;  %v3090_v8 = vld [vmem:[%s6494_s1 + $0x68] sm:$0xff]  ;;  %s3762_s29 = scalar_lea.vmem %s6601_s0, %s2677_s24  ;;  %s2892_s24 = scalar_lea.hbm %s6199_s11, 2 }
  0x1e   : > { %6496 = vst [vmem:[#allocation6_spill] sm:$0xff] %v3052_v1  ;;  %v3057_v2 = vld [vmem:[%s6494_s1 + $0x178] sm:$0xff]  ;;  %441 = vmatpush.msra.mxu1 %v3052_v1  ;;  %v3074_v5 = vld [vmem:[%s6494_s1 + $0x170] sm:$0xff]  ;;  %v3097_v9 = vld [vmem:[%s6494_s1 + $0x168] sm:$0xff]  ;;  %p2893_p0 = scmp.lt.s32.totalorder %s2887_s22, %s6199_s11 }
  0x1f   : > { %6497 = vst [vmem:[#allocation7_spill] sm:$0xff] %v3064_v3  ;;  %478 = vmatpush.msra.mxu2 %v3057_v2  ;;  %v3080_v6 = vld [vmem:[%s6494_s1 + $0x1f8] sm:$0xff]  ;;  %422 = vmatpush.msra.mxu0 %v3064_v3  ;;  %v3102_v10 = vld [vmem:[%s6494_s1 + $0x1f0] sm:$0xff]  ;;  %v3109_v11 = vld [vmem:[%s6494_s1 + $0xe0] sm:$0xff] }
  0x20   : > { %6498 = vst [vmem:[#allocation8_spill] sm:$0xff] %v3069_v4  ;;  %442 = vmatpush.msra.mxu1 %v3069_v4  ;;  %516 = vmatpush.msra.mxu3 %v3080_v6  ;;  %v3114_v12 = vld [vmem:[%s6494_s1 + $0x60] sm:$0xff]  ;;  %v3126_v14 = vld [vmem:[%s6494_s1 + $0x1e8] sm:$0xff]  ;;  %v3133_v15 = vld [vmem:[%s6494_s1 + $0xd8] sm:$0xff] }
  0x21   : > { %6499 = vst [vmem:[#allocation9_spill] sm:$0xff] %v3085_v7  ;;  %479 = vmatpush.msra.mxu2 %v3074_v5  ;;  %423 = vmatpush.msra.mxu0 %v3085_v7  ;;  %v3121_v13 = vld [vmem:[%s6494_s1 + $0x160] sm:$0xff]  ;;  %v3138_v16 = vld [vmem:[%s6494_s1 + $0x58] sm:$0xff]  ;;  %v3157_v19 = vld [vmem:[%s6494_s1 + $0xd0] sm:$0xff] }
  0x22   : > { %6500 = vst [vmem:[#allocation10_spill] sm:$0xff] %v3090_v8  ;;  %443 = vmatpush.msra.mxu1 %v3090_v8  ;;  %517 = vmatpush.msra.mxu3 %v3102_v10  ;;  %v3145_v17 = vld [vmem:[%s6494_s1 + $0x158] sm:$0xff]  ;;  %v3150_v18 = vld [vmem:[%s6494_s1 + $0x1e0] sm:$0xff]  ;;  %v3162_v20 = vld [vmem:[%s6494_s1 + $0x50] sm:$0xff] }
  0x23   : > { %6501 = vst [vmem:[#allocation11_spill] sm:$0xff] %v3109_v11  ;;  %480 = vmatpush.msra.mxu2 %v3097_v9  ;;  %424 = vmatpush.msra.mxu0 %v3109_v11  ;;  %v3169_v21 = vld [vmem:[%s6494_s1 + $0x150] sm:$0xff]  ;;  %v3174_v22 = vld [vmem:[%s6494_s1 + $0x1d8] sm:$0xff]  ;;  %v3181_v23 = vld [vmem:[%s6494_s1 + $0xc8] sm:$0xff] }
  0x24   : > { %6502 = vst [vmem:[#allocation12_spill] sm:$0xff] %v3114_v12  ;;  %444 = vmatpush.msra.mxu1 %v3114_v12  ;;  %518 = vmatpush.msra.mxu3 %v3126_v14  ;;  %v3186_v24 = vld [vmem:[%s6494_s1 + $0x48] sm:$0xff]  ;;  %v3198_v26 = vld [vmem:[%s6494_s1 + $0x1d0] sm:$0xff]  ;;  %v3205_v27 = vld [vmem:[%s6494_s1 + $0xc0] sm:$0xff] }
  0x25   : > { %6503 = vst [vmem:[#allocation13_spill] sm:$0xff] %v3133_v15  ;;  %481 = vmatpush.msra.mxu2 %v3121_v13  ;;  %425 = vmatpush.msra.mxu0 %v3133_v15  ;;  %v3193_v25 = vld [vmem:[%s6494_s1 + $0x148] sm:$0xff]  ;;  %v3210_v28 = vld [vmem:[%s6494_s1 + $0x40] sm:$0xff]  ;;  %v3229_v31 = vld [vmem:[%s6494_s1 + $0xb8] sm:$0xff] }
  0x26   : > { %6504 = vst [vmem:[#allocation14_spill] sm:$0xff] %v3138_v16  ;;  %445 = vmatpush.msra.mxu1 %v3138_v16  ;;  %519 = vmatpush.msra.mxu3 %v3150_v18  ;;  %v3217_v29 = vld [vmem:[%s6494_s1 + $0x140] sm:$0xff]  ;;  %v3222_v30 = vld [vmem:[%s6494_s1 + $0x1c8] sm:$0xff]  ;;  %v3234_v32 = vld [vmem:[%s6494_s1 + $0x38] sm:$0xff] }
  0x27   : > { %6505 = vst [vmem:[#allocation15_spill] sm:$0xff] %v3157_v19  ;;  %482 = vmatpush.msra.mxu2 %v3145_v17  ;;  %426 = vmatpush.msra.mxu0 %v3157_v19  ;;  %v3241_v33 = vld [vmem:[%s6494_s1 + $0x138] sm:$0xff]  ;;  %v3246_v34 = vld [vmem:[%s6494_s1 + $0x1c0] sm:$0xff]  ;;  %v3253_v35 = vld [vmem:[%s6494_s1 + $0xb0] sm:$0xff] }
  0x28   : > { %6506 = vst [vmem:[#allocation16_spill] sm:$0xff] %v3162_v20  ;;  %446 = vmatpush.msra.mxu1 %v3162_v20  ;;  %520 = vmatpush.msra.mxu3 %v3174_v22  ;;  %v3258_v36 = vld [vmem:[%s6494_s1 + $0x30] sm:$0xff]  ;;  %v3270_v38 = vld [vmem:[%s6494_s1 + $0x1b8] sm:$0xff]  ;;  %v3277_v39 = vld [vmem:[%s6494_s1 + $0xa8] sm:$0xff] }
  0x29   : > { %6507 = vst [vmem:[#allocation17_spill] sm:$0xff] %v3181_v23  ;;  %483 = vmatpush.msra.mxu2 %v3169_v21  ;;  %427 = vmatpush.msra.mxu0 %v3181_v23  ;;  %v3265_v37 = vld [vmem:[%s6494_s1 + $0x130] sm:$0xff]  ;;  %v3282_v40 = vld [vmem:[%s6494_s1 + $0x28] sm:$0xff]  ;;  %v3301_v43 = vld [vmem:[%s6494_s1 + $0xa0] sm:$0xff] }
  0x2a   : > { %6508 = vst [vmem:[#allocation18_spill] sm:$0xff] %v3186_v24  ;;  %447 = vmatpush.msra.mxu1 %v3186_v24  ;;  %521 = vmatpush.msra.mxu3 %v3198_v26  ;;  %v3289_v41 = vld [vmem:[%s6494_s1 + $0x128] sm:$0xff]  ;;  %v3294_v42 = vld [vmem:[%s6494_s1 + $0x1b0] sm:$0xff]  ;;  %v3306_v44 = vld [vmem:[%s6494_s1 + $0x20] sm:$0xff] }
  0x2b   : > { %6509 = vst [vmem:[#allocation19_spill] sm:$0xff] %v3193_v25  ;;  %484 = vmatpush.msra.mxu2 %v3193_v25  ;;  %428 = vmatpush.msra.mxu0 %v3205_v27  ;;  %v3313_v45 = vld [vmem:[%s6494_s1 + $0x120] sm:$0xff]  ;;  %v3318_v46 = vld [vmem:[%s6494_s1 + $0x1a8] sm:$0xff]  ;;  %v3325_v47 = vld [vmem:[%s6494_s1 + $0x98] sm:$0xff] }
  0x2c   : > { %6510 = vst [vmem:[#allocation20_spill] sm:$0xff] %v3205_v27  ;;  %448 = vmatpush.msra.mxu1 %v3210_v28  ;;  %522 = vmatpush.msra.mxu3 %v3222_v30  ;;  %v3330_v48 = vld [vmem:[%s6494_s1 + $0x18] sm:$0xff]  ;;  %v3342_v50 = vld [vmem:[%s6494_s1 + $0x1a0] sm:$0xff]  ;;  %v3349_v51 = vld [vmem:[%s6494_s1 + $0x90] sm:$0xff] }
  0x2d   : > { %6511 = vst [vmem:[#allocation21_spill] sm:$0xff] %v3210_v28  ;;  %485 = vmatpush.msra.mxu2 %v3217_v29  ;;  %429 = vmatpush.msra.mxu0 %v3229_v31  ;;  %v3337_v49 = vld [vmem:[%s6494_s1 + $0x118] sm:$0xff]  ;;  %v3354_v52 = vld [vmem:[%s6494_s1 + $0x10] sm:$0xff]  ;;  %v3373_v55 = vld [vmem:[%s6494_s1 + $0x88] sm:$0xff] }
  0x2e   : > { %6512 = vst [vmem:[#allocation22_spill] sm:$0xff] %v3217_v29  ;;  %449 = vmatpush.msra.mxu1 %v3234_v32  ;;  %523 = vmatpush.msra.mxu3 %v3246_v34  ;;  %v3361_v53 = vld [vmem:[%s6494_s1 + $0x110] sm:$0xff]  ;;  %v3366_v54 = vld [vmem:[%s6494_s1 + $0x198] sm:$0xff]  ;;  %v3378_v56 = vld [vmem:[%s6494_s1 + $0x8] sm:$0xff] }
  0x2f   : > { %6513 = vst [vmem:[#allocation23_spill] sm:$0xff] %v3222_v30  ;;  %486 = vmatpush.msra.mxu2 %v3241_v33  ;;  %430 = vmatpush.msra.mxu0 %v3253_v35  ;;  %v3385_v57 = vld [vmem:[%s6494_s1 + $0x108] sm:$0xff]  ;;  %v3390_v58 = vld [vmem:[%s6494_s1 + $0x190] sm:$0xff]  ;;  %v3397_v59 = vld [vmem:[%s6494_s1 + $0x80] sm:$0xff] }
  0x30   : > { %6514 = vst [vmem:[#allocation24_spill] sm:$0xff] %v3229_v31  ;;  %450 = vmatpush.msra.mxu1 %v3258_v36  ;;  %524 = vmatpush.msra.mxu3 %v3270_v38  ;;  %v3402_v60 = vld [vmem:[%s6494_s1] sm:$0xff]  ;;  %v3414_v62 = vld [vmem:[%s6494_s1 + $0x188] sm:$0xff]  ;;  %v3421_v63 = vld [vmem:[%s6494_s1 + $0x278] sm:$0xff] }
  0x31   : > { %6515 = vst [vmem:[#allocation25_spill] sm:$0xff] %v3234_v32  ;;  %487 = vmatpush.msra.mxu2 %v3265_v37  ;;  %431 = vmatpush.msra.mxu0 %v3277_v39  ;;  %v3409_v61 = vld [vmem:[%s6494_s1 + $0x100] sm:$0xff]  ;;  %v3570_v29 = vld [vmem:[%s6494_s1 + $0x348] sm:$0xff]  ;;  %v3791_v25 = vld [vmem:[%s3762_s29 + $0x10] sm:$0xff] }
  0x32   : > { %6516 = vst [vmem:[#allocation26_spill] sm:$0xff] %v3241_v33  ;;  %451 = vmatpush.msra.mxu1 %v3282_v40  ;;  %525 = vmatpush.msra.mxu3 %v3294_v42  ;;  %v3546_v33 = vld [vmem:[%s6494_s1 + $0x350] sm:$0xff]  ;;  %v3589_v30 = vld [vmem:[%s6494_s1 + $0x240] sm:$0xff] }
  0x33   : > { %6517 = vst [vmem:[#allocation27_spill] sm:$0xff] %v3246_v34  ;;  %488 = vmatpush.msra.mxu2 %v3289_v41  ;;  %432 = vmatpush.msra.mxu0 %v3301_v43  ;;  %v3565_v34 = vld [vmem:[%s6494_s1 + $0x248] sm:$0xff] }
  0x34   : > { %6518 = vst [vmem:[#allocation28_spill] sm:$0xff] %v3253_v35  ;;  %452 = vmatpush.msra.mxu1 %v3306_v44  ;;  %526 = vmatpush.msra.mxu3 %v3318_v46 }
  0x35   : > { %6519 = vst [vmem:[#allocation29_spill] sm:$0xff] %v3265_v37  ;;  %489 = vmatpush.msra.mxu2 %v3313_v45  ;;  %433 = vmatpush.msra.mxu0 %v3325_v47  ;;  %v3522_v37 = vld [vmem:[%s6494_s1 + $0x358] sm:$0xff] }
  0x36   : > { %6520 = vst [vmem:[#allocation30_spill] sm:$0xff] %v3270_v38  ;;  %453 = vmatpush.msra.mxu1 %v3330_v48  ;;  %527 = vmatpush.msra.mxu3 %v3342_v50  ;;  %v3541_v38 = vld [vmem:[%s6494_s1 + $0x250] sm:$0xff] }
  0x37   : > { %6521 = vst [vmem:[#allocation31_spill] sm:$0xff] %v3277_v39  ;;  %490 = vmatpush.msra.mxu2 %v3337_v49  ;;  %434 = vmatpush.msra.mxu0 %v3349_v51 }
  0x38   : > { %6522 = vst [vmem:[#allocation32_spill] sm:$0xff] %v3282_v40  ;;  %454 = vmatpush.msra.mxu1 %v3354_v52  ;;  %528 = vmatpush.msra.mxu3 %v3366_v54 }
  0x39   : > { %6523 = vst [vmem:[#allocation33_spill] sm:$0xff] %v3289_v41  ;;  %491 = vmatpush.msra.mxu2 %v3361_v53  ;;  %435 = vmatpush.msra.mxu0 %v3373_v55  ;;  %v3498_v41 = vld [vmem:[%s6494_s1 + $0x360] sm:$0xff] }
  0x3a   : > { %6524 = vst [vmem:[#allocation34_spill] sm:$0xff] %v3294_v42  ;;  %455 = vmatpush.msra.mxu1 %v3378_v56  ;;  %529 = vmatpush.msra.mxu3 %v3390_v58  ;;  %v3517_v42 = vld [vmem:[%s6494_s1 + $0x258] sm:$0xff] }
  0x3b   : > { %6525 = vst [vmem:[#allocation35_spill] sm:$0xff] %v3301_v43  ;;  %492 = vmatpush.msra.mxu2 %v3385_v57  ;;  %436 = vmatpush.msra.mxu0 %v3397_v59 }
  0x3c   : > { %6526 = vst [vmem:[#allocation36_spill] sm:$0xff] %v3306_v44  ;;  %456 = vmatpush.msra.mxu1 %v3402_v60  ;;  %530 = vmatpush.msra.mxu3 %v3414_v62 }
  0x3d   : > { %6527 = vst [vmem:[#allocation37_spill] sm:$0xff] %v3313_v45  ;;  %493 = vmatpush.msra.mxu2 %v3409_v61  ;;  %557 = vmatpush.msrb.mxu0 %v3421_v63  ;;  %v3474_v45 = vld [vmem:[%s6494_s1 + $0x368] sm:$0xff] }
  0x3e   : > { %6528 = vst [vmem:[#allocation38_spill] sm:$0xff] %v3318_v46  ;;  %v3493_v46 = vld [vmem:[%s6494_s1 + $0x260] sm:$0xff]  ;;  %494 = vmatmul.f32.vlgmr.msra.gmra.mxu2 %v3791_v25 }
  0x3f   : > { %6529 = vst [vmem:[#allocation39_spill] sm:$0xff] %v3325_v47 }
  0x40   : > { %6530 = vst [vmem:[#allocation40_spill] sm:$0xff] %v3330_v48 }
  0x41   : > { %6531 = vst [vmem:[#allocation41_spill] sm:$0xff] %v3337_v49  ;;  %v3450_v49 = vld [vmem:[%s6494_s1 + $0x370] sm:$0xff] }
  0x42   : > { %6532 = vst [vmem:[#allocation42_spill] sm:$0xff] %v3342_v50  ;;  %v3469_v50 = vld [vmem:[%s6494_s1 + $0x268] sm:$0xff] }
  0x43   : > { %6533 = vst [vmem:[#allocation43_spill] sm:$0xff] %v3349_v51 }
  0x44   : > { %6534 = vst [vmem:[#allocation44_spill] sm:$0xff] %v3354_v52 }
  0x45   : > { %6535 = vst [vmem:[#allocation45_spill] sm:$0xff] %v3361_v53  ;;  %v3426_v53 = vld [vmem:[%s6494_s1 + $0x378] sm:$0xff] }
  0x46   : > { %6536 = vst [vmem:[#allocation46_spill] sm:$0xff] %v3366_v54  ;;  %v3445_v54 = vld [vmem:[%s6494_s1 + $0x270] sm:$0xff]  ;;  %618 = vmatpush.msrb.mxu1 %v3426_v53 }
  0x47   : > { %6537 = vst [vmem:[#allocation47_spill] sm:$0xff] %v3373_v55  ;;  %558 = vmatpush.msrb.mxu0 %v3445_v54 }
  0x48   : > { %6538 = vst [vmem:[#allocation48_spill] sm:$0xff] %v3378_v56  ;;  %619 = vmatpush.msrb.mxu1 %v3450_v49 }
  0x49   : > { %6539 = vst [vmem:[#allocation49_spill] sm:$0xff] %v3385_v57  ;;  %v3433_v57 = vld [vmem:[%s6494_s1 + $0x2f8] sm:$0xff]  ;;  %559 = vmatpush.msrb.mxu0 %v3469_v50 }
  0x4a   : > { %6540 = vst [vmem:[#allocation50_spill] sm:$0xff] %v3390_v58  ;;  %v3438_v58 = vld [vmem:[%s6494_s1 + $0x180] sm:$0xff]  ;;  %638 = vmatpush.msrb.mxu2 %v3433_v57  ;;  %620 = vmatpush.msrb.mxu1 %v3474_v45 }
  0x4b   : > { %6541 = vst [vmem:[#allocation51_spill] sm:$0xff] %v3397_v59  ;;  %531 = vmatpush.msra.mxu3 %v3438_v58  ;;  %560 = vmatpush.msrb.mxu0 %v3493_v46 }
  0x4c   : > { %6542 = vst [vmem:[#allocation52_spill] sm:$0xff] %v3402_v60  ;;  %621 = vmatpush.msrb.mxu1 %v3498_v41 }
  0x4d   : > { %6543 = vst [vmem:[#allocation53_spill] sm:$0xff] %v3409_v61  ;;  %v3457_v61 = vld [vmem:[%s6494_s1 + $0x2f0] sm:$0xff]  ;;  %561 = vmatpush.msrb.mxu0 %v3517_v42 }
  0x4e   : > { %6544 = vst [vmem:[#allocation54_spill] sm:$0xff] %v3414_v62  ;;  %v3462_v62 = vld [vmem:[%s6494_s1 + $0x3f8] sm:$0xff]  ;;  %639 = vmatpush.msrb.mxu2 %v3457_v61  ;;  %622 = vmatpush.msrb.mxu1 %v3522_v37 }
  0x4f   : > { %6545 = vst [vmem:[#allocation55_spill] sm:$0xff] %v3421_v63  ;;  %675 = vmatpush.msrb.mxu3 %v3462_v62  ;;  %562 = vmatpush.msrb.mxu0 %v3541_v38 }
  0x50   : > { %6546 = vst [vmem:[#allocation56_spill] sm:$0xff] %v3426_v53  ;;  %623 = vmatpush.msrb.mxu1 %v3546_v33 }
  0x51   : > { %6547 = vst [vmem:[#allocation57_spill] sm:$0xff] %v3433_v57  ;;  %v3481_v57 = vld [vmem:[%s6494_s1 + $0x2e8] sm:$0xff]  ;;  %563 = vmatpush.msrb.mxu0 %v3565_v34 }
  0x52   : > { %6548 = vst [vmem:[#allocation58_spill] sm:$0xff] %v3438_v58  ;;  %v3486_v58 = vld [vmem:[%s6494_s1 + $0x3f0] sm:$0xff]  ;;  %640 = vmatpush.msrb.mxu2 %v3481_v57  ;;  %624 = vmatpush.msrb.mxu1 %v3570_v29 }
  0x53   : > { %6549 = vst [vmem:[#allocation59_spill] sm:$0xff] %v3445_v54  ;;  %676 = vmatpush.msrb.mxu3 %v3486_v58  ;;  %564 = vmatpush.msrb.mxu0 %v3589_v30 }
  0x54   : > { %6550 = vst [vmem:[#allocation60_spill] sm:$0xff] %v3450_v49 }
  0x55   : > { %6551 = vst [vmem:[#allocation61_spill] sm:$0xff] %v3457_v61  ;;  %v3505_v61 = vld [vmem:[%s6494_s1 + $0x2e0] sm:$0xff] }
  0x56   : > { %6552 = vst [vmem:[#allocation62_spill] sm:$0xff] %v3462_v62  ;;  %v3510_v62 = vld [vmem:[%s6494_s1 + $0x3e8] sm:$0xff]  ;;  %641 = vmatpush.msrb.mxu2 %v3505_v61 }
  0x57   : > { %6553 = vst [vmem:[#allocation63_spill] sm:$0xff] %v3469_v50  ;;  %677 = vmatpush.msrb.mxu3 %v3510_v62 }
  0x58   : > { %6554 = vst [vmem:[#allocation64_spill] sm:$0xff] %v3474_v45 }
  0x59   : > { %6555 = vst [vmem:[#allocation65_spill] sm:$0xff] %v3481_v57  ;;  %v3529_v57 = vld [vmem:[%s6494_s1 + $0x2d8] sm:$0xff] }
  0x5a   : > { %6556 = vst [vmem:[#allocation66_spill] sm:$0xff] %v3486_v58  ;;  %v3534_v58 = vld [vmem:[%s6494_s1 + $0x3e0] sm:$0xff]  ;;  %642 = vmatpush.msrb.mxu2 %v3529_v57 }
  0x5b   : > { %6557 = vst [vmem:[#allocation67_spill] sm:$0xff] %v3493_v46  ;;  %678 = vmatpush.msrb.mxu3 %v3534_v58 }
  0x5c   : > { %6558 = vst [vmem:[#allocation68_spill] sm:$0xff] %v3498_v41 }
  0x5d   : > { %6559 = vst [vmem:[#allocation69_spill] sm:$0xff] %v3505_v61  ;;  %v3553_v61 = vld [vmem:[%s6494_s1 + $0x2d0] sm:$0xff] }
  0x5e   : > { %6560 = vst [vmem:[#allocation70_spill] sm:$0xff] %v3510_v62  ;;  %v3558_v62 = vld [vmem:[%s6494_s1 + $0x3d8] sm:$0xff]  ;;  %643 = vmatpush.msrb.mxu2 %v3553_v61 }
  0x5f   : > { %6561 = vst [vmem:[#allocation71_spill] sm:$0xff] %v3517_v42  ;;  %679 = vmatpush.msrb.mxu3 %v3558_v62 }
  0x60   : > { %6562 = vst [vmem:[#allocation72_spill] sm:$0xff] %v3522_v37  ;;  %v3826_v37 = vld [vmem:[%s3762_s29 + $0x18] sm:$0xff] }
  0x61   : > { %6563 = vst [vmem:[#allocation73_spill] sm:$0xff] %v3529_v57  ;;  %v3577_v57 = vld [vmem:[%s6494_s1 + $0x2c8] sm:$0xff]  ;;  %532 = vmatmul.f32.vlgmr.msra.gmra.mxu3 %v3826_v37 }
  0x62   : > { %6564 = vst [vmem:[#allocation74_spill] sm:$0xff] %v3534_v58  ;;  %v3582_v58 = vld [vmem:[%s6494_s1 + $0x3d0] sm:$0xff]  ;;  %644 = vmatpush.msrb.mxu2 %v3577_v57 }
  0x63   : > { %6565 = vst [vmem:[#allocation75_spill] sm:$0xff] %v3541_v38  ;;  %680 = vmatpush.msrb.mxu3 %v3582_v58  ;;  %v3871_v38 = vld [vmem:[%s6494_s1 + $0x4e8] sm:$0xff] }
  0x64   : > { %6566 = vst [vmem:[#allocation76_spill] sm:$0xff] %v3546_v33  ;;  %v3594_v33 = vld [vmem:[%s6494_s1 + $0x340] sm:$0xff] }
  0x65   : > { %6567 = vst [vmem:[#allocation77_spill] sm:$0xff] %v3553_v61  ;;  %v3601_v61 = vld [vmem:[%s6494_s1 + $0x2c0] sm:$0xff]  ;;  %625 = vmatpush.msrb.mxu1 %v3594_v33 }
  0x66   : > { %6568 = vst [vmem:[#allocation78_spill] sm:$0xff] %v3558_v62  ;;  %v3606_v62 = vld [vmem:[%s6494_s1 + $0x3c8] sm:$0xff]  ;;  %645 = vmatpush.msrb.mxu2 %v3601_v61 }
  0x67   : > { %6569 = vst [vmem:[#allocation79_spill] sm:$0xff] %v3565_v34  ;;  %v3613_v34 = vld [vmem:[%s6494_s1 + $0x238] sm:$0xff]  ;;  %681 = vmatpush.msrb.mxu3 %v3606_v62 }
  0x68   : > { %6570 = vst [vmem:[#allocation80_spill] sm:$0xff] %v3570_v29  ;;  %v3618_v29 = vld [vmem:[%s6494_s1 + $0x338] sm:$0xff]  ;;  %565 = vmatpush.msrb.mxu0 %v3613_v34 }
  0x69   : > { %6571 = vst [vmem:[#allocation81_spill] sm:$0xff] %v3577_v57  ;;  %v3626_v57 = vld [vmem:[%s6494_s1 + $0x2b8] sm:$0xff]  ;;  %626 = vmatpush.msrb.mxu1 %v3618_v29 }
  0x6a   : > { %6572 = vst [vmem:[#allocation82_spill] sm:$0xff] %v3582_v58  ;;  %v3631_v58 = vld [vmem:[%s6494_s1 + $0x3c0] sm:$0xff]  ;;  %646 = vmatpush.msrb.mxu2 %v3626_v57 }
  0x6b   : > { %6573 = vst [vmem:[#allocation83_spill] sm:$0xff] %v3589_v30  ;;  %v3638_v30 = vld [vmem:[%s6494_s1 + $0x230] sm:$0xff]  ;;  %682 = vmatpush.msrb.mxu3 %v3631_v58 }
  0x6c   : > { %6574 = vst [vmem:[#allocation84_spill] sm:$0xff] %v3594_v33  ;;  %v3643_v33 = vld [vmem:[%s6494_s1 + $0x330] sm:$0xff]  ;;  %566 = vmatpush.msrb.mxu0 %v3638_v30 }
  0x6d   : > { %6575 = vst [vmem:[#allocation85_spill] sm:$0xff] %v3601_v61  ;;  %v3650_v61 = vld [vmem:[%s6494_s1 + $0x2b0] sm:$0xff]  ;;  %627 = vmatpush.msrb.mxu1 %v3643_v33 }
  0x6e   : > { %6576 = vst [vmem:[#allocation86_spill] sm:$0xff] %v3606_v62  ;;  %v3655_v62 = vld [vmem:[%s6494_s1 + $0x3b8] sm:$0xff]  ;;  %647 = vmatpush.msrb.mxu2 %v3650_v61 }
  0x6f   : > { %6577 = vst [vmem:[#allocation87_spill] sm:$0xff] %v3613_v34  ;;  %v3662_v34 = vld [vmem:[%s6494_s1 + $0x228] sm:$0xff]  ;;  %683 = vmatpush.msrb.mxu3 %v3655_v62 }
  0x70   : > { %6578 = vst [vmem:[#allocation88_spill] sm:$0xff] %v3618_v29  ;;  %v3667_v29 = vld [vmem:[%s6494_s1 + $0x328] sm:$0xff]  ;;  %567 = vmatpush.msrb.mxu0 %v3662_v34 }
  0x71   : > { %6579 = vst [vmem:[#allocation89_spill] sm:$0xff] %v3626_v57  ;;  %v3679_v57 = vld [vmem:[%s6494_s1 + $0x2a8] sm:$0xff]  ;;  %628 = vmatpush.msrb.mxu1 %v3667_v29 }
  0x72   : > { %6580 = vst [vmem:[#allocation90_spill] sm:$0xff] %v3631_v58  ;;  %v3684_v58 = vld [vmem:[%s6494_s1 + $0x3b0] sm:$0xff]  ;;  %648 = vmatpush.msrb.mxu2 %v3679_v57 }
  0x73   : > { %6581 = vst [vmem:[#allocation91_spill] sm:$0xff] %v3638_v30  ;;  %v3691_v30 = vld [vmem:[%s6494_s1 + $0x220] sm:$0xff]  ;;  %684 = vmatpush.msrb.mxu3 %v3684_v58 }
  0x74   : > { %6582 = vst [vmem:[#allocation92_spill] sm:$0xff] %v3643_v33  ;;  %v3696_v33 = vld [vmem:[%s6494_s1 + $0x320] sm:$0xff]  ;;  %568 = vmatpush.msrb.mxu0 %v3691_v30 }
  0x75   : > { %6583 = vst [vmem:[#allocation93_spill] sm:$0xff] %v3650_v61  ;;  %v3703_v61 = vld [vmem:[%s6494_s1 + $0x2a0] sm:$0xff]  ;;  %629 = vmatpush.msrb.mxu1 %v3696_v33 }
  0x76   : > { %6584 = vst [vmem:[#allocation94_spill] sm:$0xff] %v3655_v62  ;;  %v3708_v62 = vld [vmem:[%s6494_s1 + $0x3a8] sm:$0xff]  ;;  %649 = vmatpush.msrb.mxu2 %v3703_v61 }
  0x77   : > { %6585 = vst [vmem:[#allocation95_spill] sm:$0xff] %v3662_v34  ;;  %v3715_v34 = vld [vmem:[%s6494_s1 + $0x218] sm:$0xff]  ;;  %685 = vmatpush.msrb.mxu3 %v3708_v62 }
  0x78   : > { %6586 = vst [vmem:[#allocation96_spill] sm:$0xff] %v3667_v29  ;;  %v3720_v29 = vld [vmem:[%s6494_s1 + $0x318] sm:$0xff]  ;;  %569 = vmatpush.msrb.mxu0 %v3715_v34 }
  0x79   : > { %6587 = vst [vmem:[#allocation97_spill] sm:$0xff] %v3679_v57  ;;  %v3728_v57 = vld [vmem:[%s6494_s1 + $0x298] sm:$0xff]  ;;  %630 = vmatpush.msrb.mxu1 %v3720_v29 }
  0x7a   : > { %6588 = vst [vmem:[#allocation98_spill] sm:$0xff] %v3684_v58  ;;  %v3733_v58 = vld [vmem:[%s6494_s1 + $0x3a0] sm:$0xff]  ;;  %650 = vmatpush.msrb.mxu2 %v3728_v57 }
  0x7b   : > { %6589 = vst [vmem:[#allocation99_spill] sm:$0xff] %v3691_v30  ;;  %v3740_v30 = vld [vmem:[%s6494_s1 + $0x210] sm:$0xff]  ;;  %686 = vmatpush.msrb.mxu3 %v3733_v58 }
  0x7c   : > { %6590 = vst [vmem:[#allocation100_spill] sm:$0xff] %v3696_v33  ;;  %v3745_v33 = vld [vmem:[%s6494_s1 + $0x310] sm:$0xff]  ;;  %570 = vmatpush.msrb.mxu0 %v3740_v30 }
  0x7d   : > { %6591 = vst [vmem:[#allocation101_spill] sm:$0xff] %v3703_v61  ;;  %v3752_v61 = vld [vmem:[%s6494_s1 + $0x290] sm:$0xff]  ;;  %631 = vmatpush.msrb.mxu1 %v3745_v33 }
  0x7e   : > { %6592 = vst [vmem:[#allocation102_spill] sm:$0xff] %v3708_v62  ;;  %v3757_v62 = vld [vmem:[%s6494_s1 + $0x398] sm:$0xff]  ;;  %651 = vmatpush.msrb.mxu2 %v3752_v61 }
  0x7f   : > { %6593 = vst [vmem:[#allocation103_spill] sm:$0xff] %v3715_v34  ;;  %v3774_v34 = vld [vmem:[%s6494_s1 + $0x308] sm:$0xff]  ;;  %687 = vmatpush.msrb.mxu3 %v3757_v62 }
  0x80   : > { %6594 = vst [vmem:[#allocation104_spill] sm:$0xff] %v3720_v29  ;;  %v3769_v29 = vld [vmem:[%s6494_s1 + $0x208] sm:$0xff]  ;;  %632 = vmatpush.msrb.mxu1 %v3774_v34 }
  0x81   : > { %6595 = vst [vmem:[#allocation105_spill] sm:$0xff] %v3728_v57  ;;  %v3781_v57 = vld [vmem:[%s6494_s1 + $0x288] sm:$0xff]  ;;  %571 = vmatpush.msrb.mxu0 %v3769_v29 }
  0x82   : > { %6596 = vst [vmem:[#allocation106_spill] sm:$0xff] %v3733_v58  ;;  %v3786_v58 = vld [vmem:[%s6494_s1 + $0x390] sm:$0xff]  ;;  %652 = vmatpush.msrb.mxu2 %v3781_v57 }
  0x83   : > { %6597 = vst [vmem:[#allocation107_spill] sm:$0xff] %v3740_v30  ;;  %v3803_v30 = vld [vmem:[%s6494_s1 + $0x300] sm:$0xff]  ;;  %688 = vmatpush.msrb.mxu3 %v3786_v58 }
  0x84   : > { %6598 = vst [vmem:[#allocation108_spill] sm:$0xff] %v3745_v33  ;;  %v3796_v33 = vld [vmem:[%s6494_s1 + $0x200] sm:$0xff]  ;;  %633 = vmatpush.msrb.mxu1 %v3803_v30 }
  0x85   : > { %6599 = vst [vmem:[#allocation109_spill] sm:$0xff] %v3752_v61  ;;  %v3808_v61 = vld [vmem:[%s6494_s1 + $0x280] sm:$0xff]  ;;  %572 = vmatpush.msrb.mxu0 %v3796_v33 }
  0x86   : > { %6600 = vst [vmem:[#allocation110_spill] sm:$0xff] %v3757_v62  ;;  %v3815_v62 = vld [vmem:[%s6494_s1 + $0x388] sm:$0xff]  ;;  %653 = vmatpush.msrb.mxu2 %v3808_v61 }
  0x87   : > { %6602 = vst [vmem:[#allocation111_spill] sm:$0xff] %v3769_v29  ;;  %v3823_v29 = vld [vmem:[%s3762_s29] sm:$0xff]  ;;  %689 = vmatpush.msrb.mxu3 %v3815_v62 }
  0x88   : > { %6603 = vst [vmem:[#allocation112_spill] sm:$0xff] %v3774_v34  ;;  %v3818_v34 = vld [vmem:[%s3762_s29 + $0x8] sm:$0xff]  ;;  %457 = vmatmul.f32.vlgmr.msra.gmra.mxu1 %v3823_v29  ;;  %775 = vmatpush.msra.mxu2 %v3047_v0  ;;  %v3880_v0 = vld [vmem:[%s6494_s1 + $0x460] sm:$0xff] }
  0x89   : > { %6604 = vst [vmem:[#allocation113_spill] sm:$0xff] %v3781_v57  ;;  %v3833_v57 = vld [vmem:[%s6494_s1 + $0x478] sm:$0xff]  ;;  %437 = vmatmul.f32.vlgmr.msra.gmra.mxu0 %v3818_v34  ;;  %654 = vmatmul.f32.vlgmr.msrb.gmra.mxu2 %v3823_v29 }
  0x8a   : > { %6605 = vst [vmem:[#allocation114_spill] sm:$0xff] %v3786_v58  ;;  %v3838_v58 = vld [vmem:[%s6494_s1 + $0x4f8] sm:$0xff]  ;;  %713 = vmatpush.msra.mxu0 %v3833_v57  ;;  %776 = vmatpush.msra.mxu2 %v3064_v3 }
  0x8b   : > { %6606 = vst [vmem:[#allocation115_spill] sm:$0xff] %v3796_v33  ;;  %751 = vmatpush.msra.mxu1 %v3838_v58  ;;  %v3866_v33 = vld [vmem:[%s6494_s1 + $0x468] sm:$0xff]  ;;  %v3897_v3 = vld [vmem:[%s6494_s1 + $0x4d8] sm:$0xff] }
  0x8c   : > { %6607 = vst [vmem:[#allocation116_spill] sm:$0xff] %v3803_v30  ;;  %v3845_v30 = vld [vmem:[%s6494_s1 + $0x380] sm:$0xff]  ;;  %777 = vmatpush.msra.mxu2 %v3085_v7  ;;  %v3911_v7 = vld [vmem:[%s6494_s1 + $0x4d0] sm:$0xff] }
  0x8d   : > { %6608 = vst [vmem:[#allocation117_spill] sm:$0xff] %v3808_v61  ;;  %v3852_v61 = vld [vmem:[%s6494_s1 + $0x470] sm:$0xff]  ;;  %690 = vmatpush.msrb.mxu3 %v3845_v30 }
  0x8e   : > { %6609 = vst [vmem:[#allocation118_spill] sm:$0xff] %v3815_v62  ;;  %v3857_v62 = vld [vmem:[%s6494_s1 + $0x4f0] sm:$0xff]  ;;  %714 = vmatpush.msra.mxu0 %v3852_v61  ;;  %778 = vmatpush.msra.mxu2 %v3109_v11  ;;  %v3925_v11 = vld [vmem:[%s6494_s1 + $0x4c8] sm:$0xff] }
  0x8f   : > { %6610 = vst [vmem:[#allocation119_spill] sm:$0xff] %v3833_v57  ;;  %752 = vmatpush.msra.mxu1 %v3857_v62  ;;  %795 = vmatpush.msra.mxu3 %v3052_v1  ;;  %v3904_v1 = vld [vmem:[%s6494_s1 + $0x458] sm:$0xff] }
  0x90   : > { %6611 = vst [vmem:[#allocation120_spill] sm:$0xff] %v3838_v58  ;;  %v3888_v58 = vrot.slane %v3823_v29, 1  ;;  %715 = vmatpush.msra.mxu0 %v3866_v33  ;;  %779 = vmatpush.msra.mxu2 %v3133_v15  ;;  %v3939_v15 = vld [vmem:[%s6494_s1 + $0x4c0] sm:$0xff]  ;;  %v4027_v29 = vld [vmem:[%s6494_s1 + $0x410] sm:$0xff] }
  0x91   : > { %6612 = vst [vmem:[#allocation121_spill] sm:$0xff] %v3845_v30  ;;  %v3885_v30 = vld [vmem:[%s6494_s1 + $0x4e0] sm:$0xff]  ;;  %753 = vmatpush.msra.mxu1 %v3871_v38  ;;  %796 = vmatpush.msra.mxu3 %v3069_v4  ;;  %v3918_v4 = vld [vmem:[%s6494_s1 + $0x450] sm:$0xff] }
  0x92   : > { %6613 = vst [vmem:[#allocation122_spill] sm:$0xff] %v3852_v61  ;;  %716 = vmatpush.msra.mxu0 %v3880_v0  ;;  %780 = vmatpush.msra.mxu2 %v3157_v19  ;;  %v3953_v19 = vld [vmem:[%s6494_s1 + $0x4b8] sm:$0xff] }
  0x93   : > { %6614 = vst [vmem:[#allocation123_spill] sm:$0xff] %v3857_v62  ;;  %754 = vmatpush.msra.mxu1 %v3885_v30  ;;  %797 = vmatpush.msra.mxu3 %v3090_v8  ;;  %v3932_v8 = vld [vmem:[%s6494_s1 + $0x448] sm:$0xff] }
  0x94   : > { %6615 = vst [vmem:[#allocation124_spill] sm:$0xff] %v3866_v33  ;;  %573 = vmatmul.f32.vlgmr.msrb.gmra.mxu0 %v3888_v58  ;;  %781 = vmatpush.msra.mxu2 %v3181_v23  ;;  %v3967_v23 = vld [vmem:[%s6494_s1 + $0x4b0] sm:$0xff] }
  0x95   : > { %6616 = vst [vmem:[#allocation125_spill] sm:$0xff] %v3871_v38  ;;  %755 = vmatpush.msra.mxu1 %v3897_v3  ;;  %717 = vmatpush.msra.mxu0 %v3904_v1 }
  0x96   : > { %6617 = vst [vmem:[#allocation126_spill] sm:$0xff] %v3880_v0  ;;  %798 = vmatpush.msra.mxu3 %v3114_v12  ;;  %v3946_v12 = vld [vmem:[%s6494_s1 + $0x440] sm:$0xff]  ;;  %782 = vmatpush.msra.mxu2 %v3205_v27  ;;  %v3981_v27 = vld [vmem:[%s6494_s1 + $0x4a8] sm:$0xff] }
  0x97   : > { %6618 = vst [vmem:[#allocation127_spill] sm:$0xff] %v3885_v30  ;;  %756 = vmatpush.msra.mxu1 %v3911_v7  ;;  %718 = vmatpush.msra.mxu0 %v3918_v4 }
  0x98   : > { %6619 = vst [vmem:[#allocation128_spill] sm:$0xff] %v3897_v3  ;;  %799 = vmatpush.msra.mxu3 %v3138_v16  ;;  %v3960_v16 = vld [vmem:[%s6494_s1 + $0x438] sm:$0xff]  ;;  %783 = vmatpush.msra.mxu2 %v3229_v31  ;;  %v3997_v31 = vld [vmem:[%s6494_s1 + $0x420] sm:$0xff] }
  0x99   : > { %6620 = vst [vmem:[#allocation129_spill] sm:$0xff] %v3904_v1  ;;  %757 = vmatpush.msra.mxu1 %v3925_v11  ;;  %719 = vmatpush.msra.mxu0 %v3932_v8 }
  0x9a   : > { %6621 = vst [vmem:[#allocation130_spill] sm:$0xff] %v3911_v7  ;;  %800 = vmatpush.msra.mxu3 %v3162_v20  ;;  %v3974_v20 = vld [vmem:[%s6494_s1 + $0x430] sm:$0xff]  ;;  %784 = vmatpush.msra.mxu2 %v3253_v35  ;;  %v4011_v35 = vld [vmem:[%s6494_s1 + $0x418] sm:$0xff] }
  0x9b   : > { %6622 = vst [vmem:[#allocation131_spill] sm:$0xff] %v3918_v4  ;;  %758 = vmatpush.msra.mxu1 %v3939_v15  ;;  %720 = vmatpush.msra.mxu0 %v3946_v12 }
  0x9c   : > { %6623 = vst [vmem:[#allocation132_spill] sm:$0xff] %v3925_v11  ;;  %801 = vmatpush.msra.mxu3 %v3186_v24  ;;  %v3988_v24 = vld [vmem:[%s6494_s1 + $0x428] sm:$0xff]  ;;  %785 = vmatpush.msra.mxu2 %v3277_v39  ;;  %v4032_v39 = vld [vmem:[%s6494_s1 + $0x490] sm:$0xff] }
  0x9d   : > { %6624 = vst [vmem:[#allocation133_spill] sm:$0xff] %v3932_v8  ;;  %759 = vmatpush.msra.mxu1 %v3953_v19  ;;  %721 = vmatpush.msra.mxu0 %v3960_v16 }
  0x9e   : > { %6625 = vst [vmem:[#allocation134_spill] sm:$0xff] %v3939_v15  ;;  %802 = vmatpush.msra.mxu3 %v3210_v28  ;;  %v4002_v28 = vld [vmem:[%s6494_s1 + $0x4a0] sm:$0xff]  ;;  %786 = vmatpush.msra.mxu2 %v3301_v43  ;;  %v4041_v43 = vld [vmem:[%s6494_s1 + $0x408] sm:$0xff] }
  0x9f   : > { %6626 = vst [vmem:[#allocation135_spill] sm:$0xff] %v3946_v12  ;;  %760 = vmatpush.msra.mxu1 %v3967_v23  ;;  %722 = vmatpush.msra.mxu0 %v3974_v20 }
  0xa0   : > { %6627 = vst [vmem:[#allocation136_spill] sm:$0xff] %v3953_v19  ;;  %803 = vmatpush.msra.mxu3 %v3234_v32  ;;  %v4018_v32 = vld [vmem:[%s6494_s1 + $0x498] sm:$0xff]  ;;  %787 = vmatpush.msra.mxu2 %v3325_v47  ;;  %v4055_v47 = vld [vmem:[%s6494_s1 + $0x400] sm:$0xff] }
  0xa1   : > { %6628 = vst [vmem:[#allocation137_spill] sm:$0xff] %v3960_v16  ;;  %761 = vmatpush.msra.mxu1 %v3981_v27  ;;  %723 = vmatpush.msra.mxu0 %v3988_v24 }
  0xa2   : > { %6629 = vst [vmem:[#allocation138_spill] sm:$0xff] %v3974_v20  ;;  %804 = vmatpush.msra.mxu3 %v3258_v36  ;;  %634 = vmatmul.f32.vlgmr.msrb.gmra.mxu1 %v3818_v34 }
  0xa3   : > { %6630 = vst [vmem:[#allocation139_spill] sm:$0xff] %v3981_v27  ;;  %724 = vmatpush.msra.mxu0 %v3997_v31  ;;  %762 = vmatpush.msra.mxu1 %v4002_v28 }
  0xa4   : > { %6631 = vst [vmem:[#allocation140_spill] sm:$0xff] %v3988_v24  ;;  %805 = vmatpush.msra.mxu3 %v3282_v40  ;;  %v4046_v40 = vld [vmem:[%s6494_s1 + $0x488] sm:$0xff]  ;;  %788 = vmatpush.msra.mxu2 %v3349_v51 }
  0xa5   : > { %6632 = vst [vmem:[#allocation141_spill] sm:$0xff] %v3997_v31  ;;  %691 = vmatmul.f32.vlgmr.msrb.gmra.mxu3 %v3791_v25  ;;  %725 = vmatpush.msra.mxu0 %v4011_v35  ;;  %v6657_v51 = vld [vmem:[#allocation33_spill] sm:$0xff] }
  0xa6   : > { %6633 = vst [vmem:[#allocation142_spill] sm:$0xff] %v4002_v28  ;;  %763 = vmatpush.msra.mxu1 %v4018_v32  ;;  %806 = vmatpush.msra.mxu3 %v3306_v44  ;;  %v4060_v44 = vld [vmem:[%s6494_s1 + $0x480] sm:$0xff] }
  0xa7   : > { %6634 = vst [vmem:[#allocation143_spill] sm:$0xff] %v4011_v35  ;;  %726 = vmatpush.msra.mxu0 %v4027_v29  ;;  %789 = vmatpush.msra.mxu2 %v3373_v55  ;;  %v6653_v55 = vld [vmem:[#allocation29_spill] sm:$0xff] }
  0xa8   : > { %6635 = vst [vmem:[#allocation144_spill] sm:$0xff] %v4018_v32  ;;  %764 = vmatpush.msra.mxu1 %v4032_v39  ;;  %807 = vmatpush.msra.mxu3 %v3330_v48  ;;  %v6660_v48 = vld [vmem:[#allocation92_spill] sm:$0xff] }
  0xa9   : > { %6636 = vst [vmem:[#allocation145_spill] sm:$0xff] %v4027_v29  ;;  %727 = vmatpush.msra.mxu0 %v4041_v43  ;;  %790 = vmatpush.msra.mxu2 %v3397_v59  ;;  %v6649_v59 = vld [vmem:[#allocation26_spill] sm:$0xff] }
  0xaa   : > { %6637 = vst [vmem:[#allocation146_spill] sm:$0xff] %v4032_v39  ;;  %765 = vmatpush.msra.mxu1 %v4046_v40  ;;  %808 = vmatpush.msra.mxu3 %v3354_v52  ;;  %v6656_v52 = vld [vmem:[#allocation88_spill] sm:$0xff] }
  0xab   : > { %6638 = vst [vmem:[#allocation147_spill] sm:$0xff] %v4041_v43  ;;  %728 = vmatpush.msra.mxu0 %v4055_v47  ;;  %860 = vmatpush.msrb.mxu2 %v3421_v63  ;;  %v6645_v63 = vld [vmem:[#allocation22_spill] sm:$0xff] }
  0xac   : > { %766 = vmatpush.msra.mxu1 %v4060_v44  ;;  %809 = vmatpush.msra.mxu3 %v3378_v56  ;;  %v6652_v56 = vld [vmem:[#allocation84_spill] sm:$0xff] }
  0xad   : > { %729 = vmatmul.f32.vlgmr.msra.gmra.mxu0 %v3826_v37  ;;  %767 = vmatmul.f32.vlgmr.msra.gmra.mxu1 %v3888_v58 }
  0xae   : > { %836 = vmatpush.msrb.mxu1 %v3080_v6  ;;  %815 = vmatpush.msrb.mxu0 %v3057_v2 }
  0xaf   : > { %810 = vmatpush.msra.mxu3 %v3402_v60  ;;  %861 = vmatpush.msrb.mxu2 %v3445_v54  ;;  %v6641_v54 = vld [vmem:[#allocation19_spill] sm:$0xff]  ;;  %v6648_v60 = vld [vmem:[#allocation80_spill] sm:$0xff] }
  0xb0   : > { %816 = vmatpush.msrb.mxu0 %v3074_v5  ;;  %837 = vmatpush.msrb.mxu1 %v3102_v10 }
  0xb1   : > { %884 = vmatpush.msrb.mxu3 %v3426_v53  ;;  %862 = vmatpush.msrb.mxu2 %v3469_v50  ;;  %v6639_v50 = vld [vmem:[#allocation75_spill] sm:$0xff]  ;;  %v6644_v53 = vld [vmem:[#allocation76_spill] sm:$0xff] }
  0xb2   : > { %817 = vmatpush.msrb.mxu0 %v3097_v9  ;;  %838 = vmatpush.msrb.mxu1 %v3126_v14 }
  0xb3   : > { %885 = vmatpush.msrb.mxu3 %v3450_v49  ;;  %863 = vmatpush.msrb.mxu2 %v3493_v46  ;;  %v6640_v49 = vld [vmem:[#allocation72_spill] sm:$0xff]  ;;  %v6642_v46 = vld [vmem:[#allocation23_spill] sm:$0xff] }
  0xb4   : > { %818 = vmatpush.msrb.mxu0 %v3121_v13  ;;  %839 = vmatpush.msrb.mxu1 %v3150_v18 }
  0xb5   : > { %886 = vmatpush.msrb.mxu3 %v3474_v45  ;;  %864 = vmatpush.msrb.mxu2 %v3517_v42  ;;  %v6643_v45 = vld [vmem:[#allocation79_spill] sm:$0xff] }
  0xb6   : > { %819 = vmatpush.msrb.mxu0 %v3145_v17  ;;  %840 = vmatpush.msrb.mxu1 %v3174_v22  ;;  %v6646_v42 = vld [vmem:[#allocation27_spill] sm:$0xff] }
  0xb7   : > { %887 = vmatpush.msrb.mxu3 %v3498_v41  ;;  %865 = vmatpush.msrb.mxu2 %v6639_v50  ;;  %v6647_v41 = vld [vmem:[#allocation83_spill] sm:$0xff]  ;;  %v6650_v50 = vld [vmem:[#allocation30_spill] sm:$0xff] }
  0xb8   : > { %820 = vmatpush.msrb.mxu0 %v3169_v21  ;;  %841 = vmatpush.msrb.mxu1 %v3198_v26 }
  0xb9   : > { %888 = vmatpush.msrb.mxu3 %v6640_v49  ;;  %866 = vmatpush.msrb.mxu2 %v6643_v45  ;;  %v6651_v49 = vld [vmem:[#allocation87_spill] sm:$0xff]  ;;  %v6654_v45 = vld [vmem:[#allocation34_spill] sm:$0xff] }
  0xba   : > { %821 = vmatpush.msrb.mxu0 %v6641_v54  ;;  %842 = vmatpush.msrb.mxu1 %v6642_v46 }
  0xbb   : > { %889 = vmatpush.msrb.mxu3 %v6644_v53  ;;  %867 = vmatpush.msrb.mxu2 %v6647_v41  ;;  %v6655_v53 = vld [vmem:[#allocation91_spill] sm:$0xff]  ;;  %v6658_v41 = vld [vmem:[#allocation38_spill] sm:$0xff] }
  0xbc   : > { %822 = vmatpush.msrb.mxu0 %v6645_v63  ;;  %843 = vmatpush.msrb.mxu1 %v6646_v42 }
  0xbd   : > { %890 = vmatpush.msrb.mxu3 %v6648_v60  ;;  %868 = vmatpush.msrb.mxu2 %v6651_v49  ;;  %v6659_v60 = vld [vmem:[#allocation95_spill] sm:$0xff]  ;;  %v6662_v49 = vld [vmem:[#allocation42_spill] sm:$0xff] }
  0xbe   : > { %823 = vmatpush.msrb.mxu0 %v6649_v59  ;;  %844 = vmatpush.msrb.mxu1 %v6650_v50  ;;  %v6661_v50 = vld [vmem:[#allocation37_spill] sm:$0xff] }
  0xbf   : > { %891 = vmatpush.msrb.mxu3 %v6652_v56  ;;  %869 = vmatpush.msrb.mxu2 %v6655_v53  ;;  %v6663_v56 = vld [vmem:[#allocation99_spill] sm:$0xff]  ;;  %v6665_v53 = vld [vmem:[#allocation41_spill] sm:$0xff] }
  0xc0   : > { %824 = vmatpush.msrb.mxu0 %v6653_v55  ;;  %845 = vmatpush.msrb.mxu1 %v6654_v45  ;;  %v6664_v55 = vld [vmem:[#allocation96_spill] sm:$0xff]  ;;  %v6667_v45 = vld [vmem:[#allocation103_spill] sm:$0xff] }
  0xc1   : > { %892 = vmatpush.msrb.mxu3 %v6656_v52  ;;  %870 = vmatpush.msrb.mxu2 %v6659_v60  ;;  %v6666_v52 = vld [vmem:[#allocation46_spill] sm:$0xff]  ;;  %v6669_v60 = vld [vmem:[#allocation45_spill] sm:$0xff] }
  0xc2   : > { %825 = vmatpush.msrb.mxu0 %v6657_v51  ;;  %846 = vmatpush.msrb.mxu1 %v6658_v41  ;;  %v6668_v41 = vld [vmem:[#allocation100_spill] sm:$0xff]  ;;  %v6682_v51 = vld [vmem:[#allocation62_spill] sm:$0xff] }
  0xc3   : > { %893 = vmatpush.msrb.mxu3 %v6660_v48  ;;  %871 = vmatpush.msrb.mxu2 %v6663_v56  ;;  %v6670_v48 = vld [vmem:[#allocation50_spill] sm:$0xff]  ;;  %v6672_v56 = vld [vmem:[#allocation104_spill] sm:$0xff] }
  0xc4   : > { %826 = vmatpush.msrb.mxu0 %v6661_v50  ;;  %847 = vmatpush.msrb.mxu1 %v6662_v49  ;;  %v6671_v49 = vld [vmem:[#allocation107_spill] sm:$0xff]  ;;  %v6678_v50 = vld [vmem:[#allocation58_spill] sm:$0xff] }
  0xc5   : > { %894 = vmatpush.msrb.mxu3 %v6664_v55  ;;  %791 = vmatmul.f32.vlgmr.msra.gmra.mxu2 %v3791_v25  ;;  %v4131_v55 = vrot.slane %v3818_v34, 1 }
  0xc6   : > { %827 = vmatpush.msrb.mxu0 %v6665_v53  ;;  %848 = vmatpush.msrb.mxu1 %v6666_v52  ;;  %v6673_v53 = vld [vmem:[#allocation49_spill] sm:$0xff]  ;;  %v6674_v52 = vld [vmem:[#allocation54_spill] sm:$0xff] }
  0xc7   : > { %872 = vmatpush.msrb.mxu2 %v6667_v45  ;;  %895 = vmatpush.msrb.mxu3 %v6668_v41  ;;  %v6675_v45 = vld [vmem:[#allocation111_spill] sm:$0xff]  ;;  %v6676_v41 = vld [vmem:[#allocation108_spill] sm:$0xff] }
  0xc8   : > { %828 = vmatpush.msrb.mxu0 %v6669_v60  ;;  %811 = vmatmul.f32.vlgmr.msra.gmra.mxu3 %v3818_v34  ;;  %v6677_v60 = vld [vmem:[#allocation53_spill] sm:$0xff] }
  0xc9   : > { %849 = vmatpush.msrb.mxu1 %v6670_v48  ;;  %873 = vmatpush.msrb.mxu2 %v6671_v49  ;;  %v6679_v48 = vld [vmem:[#allocation115_spill] sm:$0xff]  ;;  %v6680_v49 = vld [vmem:[#allocation112_spill] sm:$0xff] }
  0xca   : > { %896 = vmatpush.msrb.mxu3 %v6672_v56  ;;  %829 = vmatpush.msrb.mxu0 %v6673_v53  ;;  %v6681_v56 = vld [vmem:[#allocation57_spill] sm:$0xff] }
  0xcb   : > { %850 = vmatpush.msrb.mxu1 %v6674_v52  ;;  %874 = vmatpush.msrb.mxu2 %v6675_v45  ;;  %v6683_v52 = vld [vmem:[#allocation116_spill] sm:$0xff]  ;;  %v6684_v45 = vld [vmem:[#allocation61_spill] sm:$0xff] }
  0xcc   : > { %897 = vmatpush.msrb.mxu3 %v6676_v41  ;;  %830 = vmatpush.msrb.mxu0 %v6677_v60  ;;  %v6685_v41 = vld [vmem:[#allocation66_spill] sm:$0xff] }
  0xcd   : > { %851 = vmatpush.msrb.mxu1 %v6678_v50  ;;  %875 = vmatpush.msrb.mxu2 %v6679_v48  ;;  %v6686_v48 = vld [vmem:[#allocation120_spill] sm:$0xff]  ;;  %v6688_v50 = vld [vmem:[#allocation70_spill] sm:$0xff] }
  0xce   : > { %898 = vmatpush.msrb.mxu3 %v6680_v49  ;;  %876 = vmatmul.f32.vlgmr.msrb.gmra.mxu2 %v4131_v55  ;;  %v6687_v49 = vld [vmem:[#allocation65_spill] sm:$0xff] }
  0xcf   : > { %904 = vmatpush.msra.mxu0 %v6681_v56  ;;  %924 = vmatpush.msra.mxu1 %v6682_v51 }
  0xd0   : > { %945 = vmatpush.msra.mxu2 %v3833_v57  ;;  %899 = vmatpush.msrb.mxu3 %v6683_v52  ;;  %v6689_v57 = vld [vmem:[#allocation69_spill] sm:$0xff]  ;;  %v6690_v52 = vld [vmem:[#allocation74_spill] sm:$0xff] }
  0xd1   : > { %831 = vmatmul.f32.vlgmr.msrb.gmra.mxu0 %v3826_v37  ;;  %925 = vmatpush.msra.mxu1 %v6685_v41 }
  0xd2   : > { %905 = vmatpush.msra.mxu0 %v6684_v45  ;;  %946 = vmatpush.msra.mxu2 %v3852_v61  ;;  %v6691_v61 = vld [vmem:[#allocation73_spill] sm:$0xff] }
  0xd3   : > { %966 = vmatpush.msra.mxu3 %v6686_v48  ;;  %852 = vmatmul.f32.vlgmr.msrb.gmra.mxu1 %v3888_v58  ;;  %v6692_v48 = vld [vmem:[#allocation78_spill] sm:$0xff] }
  0xd4   : > { %906 = vmatpush.msra.mxu0 %v6687_v49  ;;  %926 = vmatpush.msra.mxu1 %v6688_v50  ;;  %v6693_v50 = vld [vmem:[#allocation77_spill] sm:$0xff] }
  0xd5   : > { %947 = vmatpush.msra.mxu2 %v3866_v33  ;;  %967 = vmatpush.msra.mxu3 %v3857_v62  ;;  %v6694_v33 = vld [vmem:[#allocation82_spill] sm:$0xff]  ;;  %v6695_v62 = vld [vmem:[#allocation81_spill] sm:$0xff] }
  0xd6   : > { %907 = vmatpush.msra.mxu0 %v6689_v57  ;;  %927 = vmatpush.msra.mxu1 %v6690_v52 }
  0xd7   : > { %948 = vmatpush.msra.mxu2 %v3880_v0  ;;  %968 = vmatpush.msra.mxu3 %v3871_v38  ;;  %v6696_v0 = vld [vmem:[#allocation86_spill] sm:$0xff]  ;;  %v6697_v38 = vld [vmem:[#allocation85_spill] sm:$0xff] }
  0xd8   : > { %908 = vmatpush.msra.mxu0 %v6691_v61  ;;  %928 = vmatpush.msra.mxu1 %v6692_v48 }
  0xd9   : > { %949 = vmatpush.msra.mxu2 %v3904_v1  ;;  %969 = vmatpush.msra.mxu3 %v3885_v30  ;;  %v6698_v1 = vld [vmem:[#allocation90_spill] sm:$0xff]  ;;  %v6699_v30 = vld [vmem:[#allocation89_spill] sm:$0xff] }
  0xda   : > { %909 = vmatpush.msra.mxu0 %v6693_v50  ;;  %929 = vmatpush.msra.mxu1 %v6694_v33 }
  0xdb   : > { %950 = vmatpush.msra.mxu2 %v3918_v4  ;;  %970 = vmatpush.msra.mxu3 %v3897_v3  ;;  %v6700_v4 = vld [vmem:[#allocation94_spill] sm:$0xff]  ;;  %v6701_v3 = vld [vmem:[#allocation93_spill] sm:$0xff] }
  0xdc   : > { %910 = vmatpush.msra.mxu0 %v6695_v62  ;;  %930 = vmatpush.msra.mxu1 %v6696_v0 }
  0xdd   : > { %951 = vmatpush.msra.mxu2 %v3932_v8  ;;  %971 = vmatpush.msra.mxu3 %v3911_v7  ;;  %v6702_v8 = vld [vmem:[#allocation98_spill] sm:$0xff]  ;;  %v6703_v7 = vld [vmem:[#allocation97_spill] sm:$0xff] }
  0xde   : > { %911 = vmatpush.msra.mxu0 %v6697_v38  ;;  %931 = vmatpush.msra.mxu1 %v6698_v1 }
  0xdf   : > { %952 = vmatpush.msra.mxu2 %v3946_v12  ;;  %972 = vmatpush.msra.mxu3 %v3925_v11  ;;  %v6704_v12 = vld [vmem:[#allocation102_spill] sm:$0xff]  ;;  %v6705_v11 = vld [vmem:[#allocation101_spill] sm:$0xff] }
  0xe0   : > { %912 = vmatpush.msra.mxu0 %v6699_v30  ;;  %932 = vmatpush.msra.mxu1 %v6700_v4 }
  0xe1   : > { %953 = vmatpush.msra.mxu2 %v3960_v16  ;;  %973 = vmatpush.msra.mxu3 %v3939_v15  ;;  %v6706_v16 = vld [vmem:[#allocation106_spill] sm:$0xff]  ;;  %v6707_v15 = vld [vmem:[#allocation105_spill] sm:$0xff] }
  0xe2   : > { %913 = vmatpush.msra.mxu0 %v6701_v3  ;;  %933 = vmatpush.msra.mxu1 %v6702_v8 }
  0xe3   : > { %954 = vmatpush.msra.mxu2 %v3974_v20  ;;  %974 = vmatpush.msra.mxu3 %v3953_v19  ;;  %v6708_v20 = vld [vmem:[#allocation110_spill] sm:$0xff]  ;;  %v6709_v19 = vld [vmem:[#allocation109_spill] sm:$0xff] }
  0xe4   : > { %914 = vmatpush.msra.mxu0 %v6703_v7  ;;  %934 = vmatpush.msra.mxu1 %v6704_v12 }
  0xe5   : > { %955 = vmatpush.msra.mxu2 %v3988_v24  ;;  %975 = vmatpush.msra.mxu3 %v3967_v23  ;;  %v6710_v24 = vld [vmem:[#allocation114_spill] sm:$0xff] }
  0xe6   : > { %915 = vmatpush.msra.mxu0 %v6705_v11  ;;  %935 = vmatpush.msra.mxu1 %v6706_v16 }
  0xe7   : > { %956 = vmatpush.msra.mxu2 %v3997_v31  ;;  %976 = vmatpush.msra.mxu3 %v3981_v27  ;;  %v6711_v31 = vld [vmem:[#allocation113_spill] sm:$0xff]  ;;  %v6712_v27 = vld [vmem:[#allocation118_spill] sm:$0xff] }
  0xe8   : > { %916 = vmatpush.msra.mxu0 %v6707_v15  ;;  %936 = vmatpush.msra.mxu1 %v6708_v20 }
  0xe9   : > { %957 = vmatpush.msra.mxu2 %v4011_v35  ;;  %977 = vmatpush.msra.mxu3 %v4002_v28  ;;  %v6713_v35 = vld [vmem:[#allocation117_spill] sm:$0xff] }
  0xea   : > { %917 = vmatpush.msra.mxu0 %v6709_v19  ;;  %900 = vmatmul.f32.vlgmr.msrb.gmra.mxu3 %v3791_v25  ;;  %v6714_v28 = vld [vmem:[#allocation121_spill] sm:$0xff] }
  0xeb   : > { %937 = vmatpush.msra.mxu1 %v6710_v24  ;;  %958 = vmatpush.msra.mxu2 %v4027_v29  ;;  %v6715_v29 = vld [vmem:[#allocation5_spill] sm:$0xff] }
  0xec   : > { %978 = vmatpush.msra.mxu3 %v4018_v32  ;;  %918 = vmatpush.msra.mxu0 %v6711_v31  ;;  %v6716_v32 = vld [vmem:[#allocation6_spill] sm:$0xff] }
  0xed   : > { %938 = vmatpush.msra.mxu1 %v6712_v27  ;;  %959 = vmatpush.msra.mxu2 %v4041_v43  ;;  %v6717_v43 = vld [vmem:[#allocation7_spill] sm:$0xff] }
  0xee   : > { %979 = vmatpush.msra.mxu3 %v4032_v39  ;;  %919 = vmatpush.msra.mxu0 %v6713_v35  ;;  %v6718_v39 = vld [vmem:[#allocation8_spill] sm:$0xff] }
  0xef   : > { %939 = vmatpush.msra.mxu1 %v6714_v28  ;;  %960 = vmatpush.msra.mxu2 %v4055_v47 }
  0xf0   : > { %980 = vmatpush.msra.mxu3 %v4046_v40  ;;  %961 = vmatmul.f32.vlgmr.msra.gmra.mxu2 %v3888_v58 }
  0xf1   : > { %990 = vmatpush.msrb.mxu0 %v6715_v29  ;;  %1010 = vmatpush.msrb.mxu1 %v6716_v32  ;;  %v6719_v29 = vld [vmem:[#allocation9_spill] sm:$0xff]  ;;  %v6720_v32 = vld [vmem:[#allocation10_spill] sm:$0xff] }
  0xf2   : > { %1030 = vmatpush.msrb.mxu2 %v3057_v2  ;;  %981 = vmatpush.msra.mxu3 %v4060_v44  ;;  %v6721_v2 = vld [vmem:[#allocation11_spill] sm:$0xff] }
  0xf3   : > { %920 = vmatmul.f32.vlgmr.msra.gmra.mxu0 %v3818_v34  ;;  %982 = vmatmul.f32.vlgmr.msra.gmra.mxu3 %v4131_v55  ;;  %v6722_v34 = vld [vmem:[#allocation12_spill] sm:$0xff] }
  0xf4   : > { %991 = vmatpush.msrb.mxu0 %v6717_v43  ;;  %1011 = vmatpush.msrb.mxu1 %v6718_v39  ;;  %v6725_v39 = vld [vmem:[#allocation15_spill] sm:$0xff]  ;;  %v6735_v43 = vld [vmem:[#allocation30_spill] sm:$0xff] }
  0xf5   : > { %1031 = vmatpush.msrb.mxu2 %v3074_v5  ;;  %1051 = vmatpush.msrb.mxu3 %v3080_v6  ;;  %v6723_v5 = vld [vmem:[#allocation13_spill] sm:$0xff]  ;;  %v6724_v6 = vld [vmem:[#allocation14_spill] sm:$0xff] }
  0xf6   : > { %940 = vmatmul.f32.vlgmr.msra.gmra.mxu1 %v3826_v37  ;;  %992 = vmatpush.msrb.mxu0 %v6719_v29  ;;  %v6739_v29 = vld [vmem:[#allocation34_spill] sm:$0xff] }
  0xf7   : > { %1012 = vmatpush.msrb.mxu1 %v6720_v32  ;;  %1032 = vmatpush.msrb.mxu2 %v3097_v9  ;;  %v6726_v9 = vld [vmem:[#allocation16_spill] sm:$0xff]  ;;  %v6740_v32 = vld [vmem:[#allocation35_spill] sm:$0xff] }
  0xf8   : > { %1052 = vmatpush.msrb.mxu3 %v3102_v10  ;;  %993 = vmatpush.msrb.mxu0 %v6721_v2  ;;  %v6727_v10 = vld [vmem:[#allocation17_spill] sm:$0xff]  ;;  %v6743_v2 = vld [vmem:[#allocation38_spill] sm:$0xff] }
  0xf9   : > { %1013 = vmatpush.msrb.mxu1 %v6722_v34  ;;  %1033 = vmatpush.msrb.mxu2 %v3121_v13  ;;  %v6728_v13 = vld [vmem:[#allocation18_spill] sm:$0xff]  ;;  %v6745_v34 = vld [vmem:[#allocation40_spill] sm:$0xff] }
  0xfa   : > { %1053 = vmatpush.msrb.mxu3 %v3126_v14  ;;  %994 = vmatpush.msrb.mxu0 %v6723_v5  ;;  %v6729_v14 = vld [vmem:[#allocation20_spill] sm:$0xff]  ;;  %v6746_v5 = vld [vmem:[#allocation41_spill] sm:$0xff] }
  0xfb   : > { %1014 = vmatpush.msrb.mxu1 %v6724_v6  ;;  %1034 = vmatpush.msrb.mxu2 %v3145_v17  ;;  %v6730_v17 = vld [vmem:[#allocation21_spill] sm:$0xff]  ;;  %v6747_v6 = vld [vmem:[#allocation42_spill] sm:$0xff] }
  0xfc   : > { %1054 = vmatpush.msrb.mxu3 %v3150_v18  ;;  %995 = vmatpush.msrb.mxu0 %v6725_v39  ;;  %v6731_v18 = vld [vmem:[#allocation24_spill] sm:$0xff]  ;;  %v6748_v39 = vld [vmem:[#allocation43_spill] sm:$0xff] }
  0xfd   : > { %1015 = vmatpush.msrb.mxu1 %v6726_v9  ;;  %1035 = vmatpush.msrb.mxu2 %v3169_v21  ;;  %v6732_v21 = vld [vmem:[#allocation25_spill] sm:$0xff]  ;;  %v6749_v9 = vld [vmem:[#allocation44_spill] sm:$0xff] }
  0xfe   : > { %1055 = vmatpush.msrb.mxu3 %v3174_v22  ;;  %996 = vmatpush.msrb.mxu0 %v6727_v10  ;;  %v6733_v22 = vld [vmem:[#allocation28_spill] sm:$0xff]  ;;  %v6750_v10 = vld [vmem:[#allocation45_spill] sm:$0xff] }
  0xff   : > { %1016 = vmatpush.msrb.mxu1 %v6728_v13  ;;  %1036 = vmatpush.msrb.mxu2 %v6641_v54  ;;  %v6736_v54 = vld [vmem:[#allocation31_spill] sm:$0xff]  ;;  %v6751_v13 = vld [vmem:[#allocation46_spill] sm:$0xff] }
 0x100   : > { %1056 = vmatpush.msrb.mxu3 %v3198_v26  ;;  %997 = vmatpush.msrb.mxu0 %v6729_v14  ;;  %v6734_v26 = vld [vmem:[#allocation29_spill] sm:$0xff]  ;;  %v6752_v14 = vld [vmem:[#allocation47_spill] sm:$0xff] }
 0x101   : > { %1017 = vmatpush.msrb.mxu1 %v6730_v17  ;;  %1037 = vmatpush.msrb.mxu2 %v6645_v63  ;;  %v6737_v63 = vld [vmem:[#allocation32_spill] sm:$0xff] }
 0x102   : > { %1057 = vmatpush.msrb.mxu3 %v6642_v46  ;;  %998 = vmatpush.msrb.mxu0 %v6731_v18  ;;  %v6738_v46 = vld [vmem:[#allocation33_spill] sm:$0xff]  ;;  %v6753_v17 = vld [vmem:[#allocation48_spill] sm:$0xff]  ;;  %v6754_v18 = vld [vmem:[#allocation50_spill] sm:$0xff] }
 0x103   : > { %1018 = vmatpush.msrb.mxu1 %v6732_v21  ;;  %1038 = vmatpush.msrb.mxu2 %v6649_v59  ;;  %v6741_v59 = vld [vmem:[#allocation36_spill] sm:$0xff]  ;;  %v6755_v21 = vld [vmem:[#allocation51_spill] sm:$0xff] }
 0x104   : > { %1058 = vmatpush.msrb.mxu3 %v6646_v42  ;;  %999 = vmatpush.msrb.mxu0 %v6733_v22  ;;  %v6742_v42 = vld [vmem:[#allocation37_spill] sm:$0xff]  ;;  %v6756_v22 = vld [vmem:[#allocation52_spill] sm:$0xff] }
 0x105   : > { %1019 = vmatpush.msrb.mxu1 %v3258_v36  ;;  %1039 = vmatpush.msrb.mxu2 %v6734_v26  ;;  %v6744_v36 = vld [vmem:[#allocation39_spill] sm:$0xff]  ;;  %v6757_v26 = vld [vmem:[#allocation54_spill] sm:$0xff] }
 0x106   : > { %1059 = vmatpush.msrb.mxu3 %v6735_v43  ;;  %1000 = vmatpush.msrb.mxu0 %v6736_v54  ;;  %v6758_v43 = vld [vmem:[#allocation55_spill] sm:$0xff]  ;;  %v6759_v54 = vld [vmem:[#allocation56_spill] sm:$0xff] }
 0x107   : > { %1020 = vmatpush.msrb.mxu1 %v6737_v63  ;;  %1040 = vmatpush.msrb.mxu2 %v6738_v46  ;;  %v6760_v63 = vld [vmem:[#allocation58_spill] sm:$0xff]  ;;  %v6761_v46 = vld [vmem:[#allocation59_spill] sm:$0xff] }
 0x108   : > { %1060 = vmatpush.msrb.mxu3 %v6739_v29  ;;  %1001 = vmatpush.msrb.mxu0 %v6740_v32  ;;  %v6763_v29 = vld [vmem:[#allocation63_spill] sm:$0xff] }
 0x109   : > { %1021 = vmatpush.msrb.mxu1 %v6741_v59  ;;  %1041 = vmatpush.msrb.mxu2 %v6742_v42  ;;  %v6765_v32 = vld [vmem:[#allocation67_spill] sm:$0xff]  ;;  %v6767_v59 = vld [vmem:[#allocation70_spill] sm:$0xff] }
 0x10a   : > { %1061 = vmatpush.msrb.mxu3 %v6743_v2  ;;  %1002 = vmatpush.msrb.mxu0 %v6744_v36  ;;  %v6768_v42 = vld [vmem:[#allocation71_spill] sm:$0xff]  ;;  %v6796_v36 = vld [vmem:[#allocation124_spill] sm:$0xff] }
 0x10b   : > { %1022 = vmatpush.msrb.mxu1 %v6745_v34  ;;  %1042 = vmatpush.msrb.mxu2 %v6746_v5  ;;  %v6774_v2 = vld [vmem:[#allocation83_spill] sm:$0xff]  ;;  %v6797_v34 = vld [vmem:[#allocation125_spill] sm:$0xff] }
 0x10c   : > { %1062 = vmatpush.msrb.mxu3 %v6747_v6  ;;  %1003 = vmatpush.msrb.mxu0 %v6748_v39  ;;  %v2722_v5 = vld [vmem:[%s6494_s1 + $0xe8] sm:$0xff]  ;;  %v2723_v6 = vld [vmem:[%s6494_s1 + $0x70] sm:$0xff] }
 0x10d   : > { %1023 = vmatpush.msrb.mxu1 %v6749_v9  ;;  %1043 = vmatpush.msrb.mxu2 %v6750_v10  ;;  %v6798_v39 = vld [vmem:[#allocation126_spill] sm:$0xff]  ;;  %v6799_v9 = vld [vmem:[#allocation127_spill] sm:$0xff]  ;;  %v2724_v10 = vld [vmem:[%s6494_s1 + $0xe0] sm:$0xff] }
 0x10e   : > { %1063 = vmatpush.msrb.mxu3 %v6751_v13  ;;  %1004 = vmatpush.msrb.mxu0 %v6752_v14  ;;  %v2725_v13 = vld [vmem:[%s6494_s1 + $0x68] sm:$0xff]  ;;  %v6800_v14 = vld [vmem:[#allocation128_spill] sm:$0xff] }
 0x10f   : > { %1024 = vmatpush.msrb.mxu1 %v6753_v17  ;;  %1044 = vmatpush.msrb.mxu2 %v6673_v53  ;;  %v6762_v53 = vld [vmem:[#allocation60_spill] sm:$0xff]  ;;  %v6801_v17 = vld [vmem:[#allocation129_spill] sm:$0xff] }
 0x110   : > { %1064 = vmatpush.msrb.mxu3 %v6754_v18  ;;  %1005 = vmatpush.msrb.mxu0 %v6755_v21  ;;  %v2726_v18 = vld [vmem:[%s6494_s1 + $0xd8] sm:$0xff]  ;;  %v2727_v21 = vld [vmem:[%s6494_s1 + $0x60] sm:$0xff] }
 0x111   : > { %1025 = vmatpush.msrb.mxu1 %v6756_v22  ;;  %1045 = vmatpush.msrb.mxu2 %v6677_v60  ;;  %v6764_v60 = vld [vmem:[#allocation64_spill] sm:$0xff]  ;;  %v6802_v22 = vld [vmem:[#allocation130_spill] sm:$0xff] }
 0x112   : > { %1065 = vmatpush.msrb.mxu3 %v6757_v26  ;;  %1075 = vmatpush.msra.mxu0 %v6758_v43  ;;  %v6803_v26 = vld [vmem:[#allocation131_spill] sm:$0xff] }
 0x113   : > { %1098 = vmatpush.msra.mxu1 %v6759_v54  ;;  %1118 = vmatpush.msra.mxu2 %v6681_v56  ;;  %v6766_v56 = vld [vmem:[#allocation68_spill] sm:$0xff]  ;;  %v2728_v43 = vld [vmem:[%s6494_s1 + $0xd0] sm:$0xff] }
 0x114   : > { %1066 = vmatpush.msrb.mxu3 %v6760_v63  ;;  %1076 = vmatpush.msra.mxu0 %v6761_v46  ;;  %v2729_v54 = vld [vmem:[%s6494_s1 + $0x58] sm:$0xff]  ;;  %v6805_v46 = vld [vmem:[#allocation133_spill] sm:$0xff] }
 0x115   : > { %1099 = vmatpush.msra.mxu1 %v6762_v53  ;;  %1119 = vmatpush.msra.mxu2 %v6684_v45  ;;  %v6769_v45 = vld [vmem:[#allocation72_spill] sm:$0xff]  ;;  %v2730_v53 = vld [vmem:[%s6494_s1 + $0xc8] sm:$0xff] }
 0x116   : > { %1138 = vmatpush.msra.mxu3 %v6682_v51  ;;  %1077 = vmatpush.msra.mxu0 %v6763_v29  ;;  %v6770_v51 = vld [vmem:[#allocation75_spill] sm:$0xff]  ;;  %v6804_v63 = vld [vmem:[#allocation132_spill] sm:$0xff] }
 0x117   : > { %1100 = vmatpush.msra.mxu1 %v6764_v60  ;;  %1120 = vmatpush.msra.mxu2 %v6687_v49  ;;  %v6771_v49 = vld [vmem:[#allocation76_spill] sm:$0xff]  ;;  %v2731_v29 = vld [vmem:[%s6494_s1 + $0x50] sm:$0xff] }
 0x118   : > { %1139 = vmatpush.msra.mxu3 %v6685_v41  ;;  %1078 = vmatpush.msra.mxu0 %v6765_v32  ;;  %v6772_v41 = vld [vmem:[#allocation79_spill] sm:$0xff]  ;;  %v6806_v60 = vld [vmem:[#allocation134_spill] sm:$0xff] }
 0x119   : > { %1101 = vmatpush.msra.mxu1 %v6766_v56  ;;  %1121 = vmatpush.msra.mxu2 %v6689_v57  ;;  %v6773_v57 = vld [vmem:[#allocation80_spill] sm:$0xff]  ;;  %v6807_v32 = vld [vmem:[#allocation135_spill] sm:$0xff] }
 0x11a   : > { %1140 = vmatpush.msra.mxu3 %v6767_v59  ;;  %1079 = vmatpush.msra.mxu0 %v6768_v42  ;;  %v2732_v56 = vld [vmem:[%s6494_s1 + $0xc0] sm:$0xff]  ;;  %v2733_v59 = vld [vmem:[%s6494_s1 + $0x48] sm:$0xff] }
 0x11b   : > { %1102 = vmatpush.msra.mxu1 %v6769_v45  ;;  %1122 = vmatpush.msra.mxu2 %v6691_v61  ;;  %v6775_v61 = vld [vmem:[#allocation84_spill] sm:$0xff]  ;;  %v6809_v45 = vld [vmem:[#allocation137_spill] sm:$0xff] }
 0x11c   : > { %1141 = vmatpush.msra.mxu3 %v6690_v52  ;;  %1080 = vmatpush.msra.mxu0 %v6770_v51  ;;  %v6776_v52 = vld [vmem:[#allocation87_spill] sm:$0xff]  ;;  %v6808_v42 = vld [vmem:[#allocation136_spill] sm:$0xff] }
 0x11d   : > { %1103 = vmatpush.msra.mxu1 %v6771_v49  ;;  %1123 = vmatpush.msra.mxu2 %v6693_v50  ;;  %v6777_v50 = vld [vmem:[#allocation88_spill] sm:$0xff] }
 0x11e   : > { %1142 = vmatpush.msra.mxu3 %v6692_v48  ;;  %1081 = vmatpush.msra.mxu0 %v6772_v41  ;;  %v6778_v48 = vld [vmem:[#allocation91_spill] sm:$0xff]  ;;  %v2735_v49 = vld [vmem:[%s6494_s1 + $0x40] sm:$0xff]  ;;  %v6810_v41 = vld [vmem:[#allocation138_spill] sm:$0xff] }
 0x11f   : > { %1104 = vmatpush.msra.mxu1 %v6773_v57  ;;  %1124 = vmatpush.msra.mxu2 %v6695_v62  ;;  %v6779_v62 = vld [vmem:[#allocation92_spill] sm:$0xff]  ;;  %v2736_v57 = vld [vmem:[%s6494_s1 + $0xb0] sm:$0xff] }
 0x120   : > { %1143 = vmatpush.msra.mxu3 %v6694_v33  ;;  %1082 = vmatpush.msra.mxu0 %v6774_v2  ;;  %v6780_v33 = vld [vmem:[#allocation95_spill] sm:$0xff] }
 0x121   : > { %1105 = vmatpush.msra.mxu1 %v6775_v61  ;;  %1125 = vmatpush.msra.mxu2 %v6697_v38  ;;  %v6781_v38 = vld [vmem:[#allocation96_spill] sm:$0xff]  ;;  %v6811_v61 = vld [vmem:[#allocation139_spill] sm:$0xff] }
 0x122   : > { %1144 = vmatpush.msra.mxu3 %v6696_v0  ;;  %1083 = vmatpush.msra.mxu0 %v6776_v52  ;;  %v6782_v0 = vld [vmem:[#allocation99_spill] sm:$0xff]  ;;  %v6812_v52 = vld [vmem:[#allocation140_spill] sm:$0xff] }
 0x123   : > { %1106 = vmatpush.msra.mxu1 %v6777_v50  ;;  %1126 = vmatpush.msra.mxu2 %v6699_v30  ;;  %v6783_v30 = vld [vmem:[#allocation100_spill] sm:$0xff]  ;;  %v2739_v50 = vld [vmem:[%s6494_s1 + $0x30] sm:$0xff] }
 0x124   : > { %1145 = vmatpush.msra.mxu3 %v6698_v1  ;;  %1084 = vmatpush.msra.mxu0 %v6778_v48  ;;  %v6784_v1 = vld [vmem:[#allocation103_spill] sm:$0xff]  ;;  %v6813_v48 = vld [vmem:[#allocation141_spill] sm:$0xff] }
 0x125   : > { %1107 = vmatpush.msra.mxu1 %v6779_v62  ;;  %1127 = vmatpush.msra.mxu2 %v6701_v3  ;;  %v6785_v3 = vld [vmem:[#allocation104_spill] sm:$0xff]  ;;  %v6814_v62 = vld [vmem:[#allocation142_spill] sm:$0xff] }
 0x126   : > { %1146 = vmatpush.msra.mxu3 %v6700_v4  ;;  %1085 = vmatpush.msra.mxu0 %v6780_v33  ;;  %v6786_v4 = vld [vmem:[#allocation107_spill] sm:$0xff]  ;;  %v2740_v33 = vld [vmem:[%s6494_s1 + $0xa0] sm:$0xff] }
 0x127   : > { %1108 = vmatpush.msra.mxu1 %v6781_v38  ;;  %1128 = vmatpush.msra.mxu2 %v6703_v7  ;;  %v6787_v7 = vld [vmem:[#allocation108_spill] sm:$0xff]  ;;  %v2741_v38 = vld [vmem:[%s6494_s1 + $0x28] sm:$0xff] }
 0x128   : > { %1147 = vmatpush.msra.mxu3 %v6702_v8  ;;  %1086 = vmatpush.msra.mxu0 %v6782_v0  ;;  %v6788_v8 = vld [vmem:[#allocation111_spill] sm:$0xff] }
 0x129   : > { %1109 = vmatpush.msra.mxu1 %v6783_v30  ;;  %1129 = vmatpush.msra.mxu2 %v6705_v11  ;;  %v6789_v11 = vld [vmem:[#allocation112_spill] sm:$0xff]  ;;  %v6815_v0 = vld [vmem:[#allocation143_spill] sm:$0xff] }
 0x12a   : > { %1148 = vmatpush.msra.mxu3 %v6704_v12  ;;  %1087 = vmatpush.msra.mxu0 %v6784_v1  ;;  %v6790_v12 = vld [vmem:[#allocation115_spill] sm:$0xff]  ;;  %v6816_v30 = vld [vmem:[#allocation144_spill] sm:$0xff] }
 0x12b   : > { %1110 = vmatpush.msra.mxu1 %v6785_v3  ;;  %1130 = vmatpush.msra.mxu2 %v6707_v15  ;;  %v6791_v15 = vld [vmem:[#allocation116_spill] sm:$0xff]  ;;  %v6817_v3 = vld [vmem:[#allocation145_spill] sm:$0xff] }
 0x12c   : > { %1149 = vmatpush.msra.mxu3 %v6706_v16  ;;  %1088 = vmatpush.msra.mxu0 %v6786_v4  ;;  %v6792_v16 = vld [vmem:[#allocation119_spill] sm:$0xff]  ;;  %v2743_v1 = vld [vmem:[%s6494_s1 + $0x20] sm:$0xff]  ;;  %v6818_v4 = vld [vmem:[#allocation146_spill] sm:$0xff] }
 0x12d   : > { %1111 = vmatpush.msra.mxu1 %v6787_v7  ;;  %1131 = vmatpush.msra.mxu2 %v6709_v19  ;;  %v6793_v19 = vld [vmem:[#allocation120_spill] sm:$0xff]  ;;  %v2744_v7 = vld [vmem:[%s6494_s1 + $0x90] sm:$0xff] }
 0x12e   : > { %1150 = vmatpush.msra.mxu3 %v6708_v20  ;;  %1089 = vmatpush.msra.mxu0 %v6788_v8  ;;  %v2719_v20 = vld [vmem:[%s6494_s1 + $0xf8] sm:$0xff] }
 0x12f   : > { %1112 = vmatpush.msra.mxu1 %v6789_v11  ;;  %1132 = vmatpush.msra.mxu2 %v6711_v31  ;;  %v2720_v31 = vld [vmem:[%s6494_s1 + $0xf0] sm:$0xff]  ;;  %v2734_v51 = vld [vmem:[%s6494_s1 + $0xb8] sm:$0xff] }
 0x130   : > { %1151 = vmatpush.msra.mxu3 %v6710_v24  ;;  %1046 = vmatmul.f32.vlgmr.msrb.gmra.mxu2 %v3888_v58  ;;  %v6794_v24 = vld [vmem:[#allocation122_spill] sm:$0xff]  ;;  %v2737_v2 = vld [vmem:[%s6494_s1 + $0x38] sm:$0xff] }
 0x131   : > { %1090 = vmatpush.msra.mxu0 %v6790_v12  ;;  %1113 = vmatpush.msra.mxu1 %v6791_v15  ;;  %v2745_v8 = vld [vmem:[%s6494_s1 + $0x18] sm:$0xff]  ;;  %v2746_v12 = vld [vmem:[%s6494_s1 + $0x88] sm:$0xff]  ;;  %v2747_v15 = vld [vmem:[%s6494_s1 + $0x10] sm:$0xff] }
 0x132   : > { %1133 = vmatpush.msra.mxu2 %v6713_v35  ;;  %1152 = vmatpush.msra.mxu3 %v6712_v27  ;;  %v6795_v27 = vld [vmem:[#allocation123_spill] sm:$0xff] }
 0x133   : > { %1006 = vmatmul.f32.vlgmr.msrb.gmra.mxu0 %v3826_v37  ;;  %1026 = vmatmul.f32.vlgmr.msrb.gmra.mxu1 %v3791_v25  ;;  %v2721_v35 = vld [vmem:[%s6494_s1 + $0x78] sm:$0xff] }
 0x134   : > { %1067 = vmatmul.f32.vlgmr.msrb.gmra.mxu3 %v4131_v55  ;;  %1159 = vmatpush.msrb.mxu0 %v6792_v16  ;;  %v6819_v11 = vld [vmem:[#allocation147_spill] sm:$0xff]  ;;  %v2748_v16 = vld [vmem:[%s6494_s1 + $0x80] sm:$0xff] }
 0x135   : > { %1180 = vmatpush.msrb.mxu1 %v6793_v19  ;;  %1204 = vmatpush.msrb.mxu2 %v2719_v20  ;;  %v2750_v19 = vld [vmem:[%s6494_s1 + $0x1f8] sm:$0xff] }
 0x136   : > { %1153 = vmatpush.msra.mxu3 %v6714_v28  ;;  %1160 = vmatpush.msrb.mxu0 %v6794_v24  ;;  %v4362_v28 = vrot.slane %v3791_v25, 1  ;;  %v2752_v20 = vld [vmem:[%s6494_s1 + $0x278] sm:$0xff]  ;;  %v2753_v24 = vld [vmem:[%s6494_s1] sm:$0xff] }
 0x137   : > { %1181 = vmatpush.msrb.mxu1 %v6795_v27  ;;  %1205 = vmatpush.msrb.mxu2 %v2720_v31  ;;  %v2754_v27 = vld [vmem:[%s6494_s1 + $0x170] sm:$0xff] }
 0x138   : > { %1224 = vmatpush.msrb.mxu3 %v2721_v35  ;;  %1161 = vmatpush.msrb.mxu0 %v6796_v36  ;;  %v2755_v31 = vld [vmem:[%s6494_s1 + $0x1f0] sm:$0xff]  ;;  %v2757_v36 = vld [vmem:[%s6494_s1 + $0x378] sm:$0xff] }
 0x139   : > { %1182 = vmatpush.msrb.mxu1 %v6797_v34  ;;  %1206 = vmatpush.msrb.mxu2 %v2722_v5  ;;  %v2756_v35 = vld [vmem:[%s6494_s1 + $0x270] sm:$0xff]  ;;  %v2758_v34 = vld [vmem:[%s6494_s1 + $0x168] sm:$0xff] }
 0x13a   : > { %1225 = vmatpush.msrb.mxu3 %v2723_v6  ;;  %1162 = vmatpush.msrb.mxu0 %v6798_v39  ;;  %v2759_v5 = vld [vmem:[%s6494_s1 + $0x1e8] sm:$0xff]  ;;  %v2761_v39 = vld [vmem:[%s6494_s1 + $0x370] sm:$0xff] }
 0x13b   : > { %1183 = vmatpush.msrb.mxu1 %v6799_v9  ;;  %1207 = vmatpush.msrb.mxu2 %v2724_v10  ;;  %v2760_v6 = vld [vmem:[%s6494_s1 + $0x268] sm:$0xff]  ;;  %v2762_v9 = vld [vmem:[%s6494_s1 + $0x160] sm:$0xff] }
 0x13c   : > { %1226 = vmatpush.msrb.mxu3 %v2725_v13  ;;  %1091 = vmatmul.f32.vlgmr.msra.gmra.mxu0 %v4362_v28  ;;  %v2763_v10 = vld [vmem:[%s6494_s1 + $0x1e0] sm:$0xff] }
 0x13d   : > { %1184 = vmatpush.msrb.mxu1 %v6800_v14  ;;  %1163 = vmatpush.msrb.mxu0 %v6801_v17  ;;  %v2764_v13 = vld [vmem:[%s6494_s1 + $0x260] sm:$0xff]  ;;  %v2765_v14 = vld [vmem:[%s6494_s1 + $0x368] sm:$0xff]  ;;  %v2766_v17 = vld [vmem:[%s6494_s1 + $0x158] sm:$0xff] }
 0x13e   : > { %1208 = vmatpush.msrb.mxu2 %v2726_v18  ;;  %1227 = vmatpush.msrb.mxu3 %v2727_v21  ;;  %v2767_v18 = vld [vmem:[%s6494_s1 + $0x1d8] sm:$0xff] }
 0x13f   : > { %1185 = vmatpush.msrb.mxu1 %v6802_v22  ;;  %1164 = vmatpush.msrb.mxu0 %v6803_v26  ;;  %v2768_v21 = vld [vmem:[%s6494_s1 + $0x258] sm:$0xff]  ;;  %v2769_v22 = vld [vmem:[%s6494_s1 + $0x360] sm:$0xff]  ;;  %v2770_v26 = vld [vmem:[%s6494_s1 + $0x150] sm:$0xff] }
 0x140   : > { %1209 = vmatpush.msrb.mxu2 %v2728_v43  ;;  %1228 = vmatpush.msrb.mxu3 %v2729_v54  ;;  %v2771_v43 = vld [vmem:[%s6494_s1 + $0x1d0] sm:$0xff] }
 0x141   : > { %1186 = vmatpush.msrb.mxu1 %v6804_v63  ;;  %1165 = vmatpush.msrb.mxu0 %v6805_v46  ;;  %v2772_v54 = vld [vmem:[%s6494_s1 + $0x250] sm:$0xff]  ;;  %v2773_v63 = vld [vmem:[%s6494_s1 + $0x358] sm:$0xff]  ;;  %v2774_v46 = vld [vmem:[%s6494_s1 + $0x148] sm:$0xff] }
 0x142   : > { %1210 = vmatpush.msrb.mxu2 %v2730_v53  ;;  %1229 = vmatpush.msrb.mxu3 %v2731_v29  ;;  %v2775_v53 = vld [vmem:[%s6494_s1 + $0x1c8] sm:$0xff] }
 0x143   : > { %1187 = vmatpush.msrb.mxu1 %v6806_v60  ;;  %1166 = vmatpush.msrb.mxu0 %v6807_v32  ;;  %v2776_v29 = vld [vmem:[%s6494_s1 + $0x248] sm:$0xff]  ;;  %v2777_v60 = vld [vmem:[%s6494_s1 + $0x350] sm:$0xff]  ;;  %v2778_v32 = vld [vmem:[%s6494_s1 + $0x140] sm:$0xff] }
 0x144   : > { %1211 = vmatpush.msrb.mxu2 %v2732_v56  ;;  %1230 = vmatpush.msrb.mxu3 %v2733_v59  ;;  %v2779_v56 = vld [vmem:[%s6494_s1 + $0x1c0] sm:$0xff] }
 0x145   : > { %1188 = vmatpush.msrb.mxu1 %v6808_v42  ;;  %1167 = vmatpush.msrb.mxu0 %v6809_v45  ;;  %v2780_v59 = vld [vmem:[%s6494_s1 + $0x240] sm:$0xff]  ;;  %v2781_v42 = vld [vmem:[%s6494_s1 + $0x348] sm:$0xff] }
 0x146   : > { %1212 = vmatpush.msrb.mxu2 %v2734_v51  ;;  %1231 = vmatpush.msrb.mxu3 %v2735_v49  ;;  %v2782_v51 = vld [vmem:[%s6494_s1 + $0x138] sm:$0xff] }
 0x147   : > { %1189 = vmatpush.msrb.mxu1 %v3967_v23  ;;  %1168 = vmatpush.msrb.mxu0 %v6810_v41  ;;  %v2738_v23 = vld [vmem:[%s6494_s1 + $0xa8] sm:$0xff]  ;;  %v2783_v49 = vld [vmem:[%s6494_s1 + $0x1b8] sm:$0xff] }
 0x148   : > { %1213 = vmatpush.msrb.mxu2 %v2736_v57  ;;  %1232 = vmatpush.msrb.mxu3 %v2737_v2  ;;  %v2784_v57 = vld [vmem:[%s6494_s1 + $0x238] sm:$0xff]  ;;  %v2785_v2 = vld [vmem:[%s6494_s1 + $0x340] sm:$0xff] }
 0x149   : > { %1190 = vmatpush.msrb.mxu1 %v6811_v61  ;;  %1169 = vmatpush.msrb.mxu0 %v6812_v52  ;;  %v2786_v61 = vld [vmem:[%s6494_s1 + $0x130] sm:$0xff] }
 0x14a   : > { %1214 = vmatpush.msrb.mxu2 %v2738_v23  ;;  %1233 = vmatpush.msrb.mxu3 %v2739_v50  ;;  %v2787_v23 = vld [vmem:[%s6494_s1 + $0x1b0] sm:$0xff] }
 0x14b   : > { %1134 = vmatmul.f32.vlgmr.msra.gmra.mxu2 %v3791_v25  ;;  %1170 = vmatpush.msrb.mxu0 %v6813_v48  ;;  %v2742_v25 = vld [vmem:[%s6494_s1 + $0x98] sm:$0xff]  ;;  %v2788_v50 = vld [vmem:[%s6494_s1 + $0x230] sm:$0xff] }
 0x14c   : > { %1191 = vmatpush.msrb.mxu1 %v6814_v62  ;;  %1215 = vmatpush.msrb.mxu2 %v2740_v33  ;;  %v2789_v62 = vld [vmem:[%s6494_s1 + $0x338] sm:$0xff]  ;;  %v2790_v33 = vld [vmem:[%s6494_s1 + $0x128] sm:$0xff] }
 0x14d   : > { %1234 = vmatpush.msrb.mxu3 %v2741_v38  ;;  %1171 = vmatpush.msrb.mxu0 %v6815_v0  ;;  %v2791_v38 = vld [vmem:[%s6494_s1 + $0x1a8] sm:$0xff] }
 0x14e   : > { %1154 = vmatmul.f32.vlgmr.msra.gmra.mxu3 %v3888_v58  ;;  %1192 = vmatpush.msrb.mxu1 %v6816_v30  ;;  %v2792_v30 = vld [vmem:[%s6494_s1 + $0x228] sm:$0xff] }
 0x14f   : > { %1216 = vmatpush.msrb.mxu2 %v2742_v25  ;;  %1235 = vmatpush.msrb.mxu3 %v2743_v1  ;;  %v2793_v25 = vld [vmem:[%s6494_s1 + $0x330] sm:$0xff]  ;;  %v2794_v1 = vld [vmem:[%s6494_s1 + $0x120] sm:$0xff] }
 0x150   : > { %1114 = vmatmul.f32.vlgmr.msra.gmra.mxu1 %v3826_v37  ;;  %1172 = vmatpush.msrb.mxu0 %v6817_v3 }
 0x151   : > { %1193 = vmatpush.msrb.mxu1 %v6818_v4  ;;  %1217 = vmatpush.msrb.mxu2 %v2744_v7  ;;  %v2795_v4 = vld [vmem:[%s6494_s1 + $0x1a0] sm:$0xff] }
 0x152   : > { %1236 = vmatpush.msrb.mxu3 %v2745_v8  ;;  %1173 = vmatpush.msrb.mxu0 %v6819_v11  ;;  %v2796_v7 = vld [vmem:[%s6494_s1 + $0x220] sm:$0xff]  ;;  %v2797_v8 = vld [vmem:[%s6494_s1 + $0x328] sm:$0xff] }
 0x153   : > { %1194 = vmatpush.msrb.mxu1 %v4046_v40  ;;  %1218 = vmatpush.msrb.mxu2 %v2746_v12  ;;  %v2749_v40 = vld [vmem:[%s6494_s1 + $0x8] sm:$0xff]  ;;  %v2798_v12 = vld [vmem:[%s6494_s1 + $0x118] sm:$0xff] }
 0x154   : > { %1237 = vmatpush.msrb.mxu3 %v2747_v15  ;;  %1174 = vmatpush.msrb.mxu0 %v4055_v47  ;;  %v2799_v15 = vld [vmem:[%s6494_s1 + $0x198] sm:$0xff] }
 0x155   : > { %1195 = vmatpush.msrb.mxu1 %v4060_v44  ;;  %1219 = vmatpush.msrb.mxu2 %v2748_v16  ;;  %v2751_v44 = vld [vmem:[%s6494_s1 + $0x178] sm:$0xff] }
 0x156   : > { %1238 = vmatpush.msrb.mxu3 %v2749_v40  ;;  %1175 = vmatmul.f32.vlgmr.msrb.gmra.mxu0 %v4131_v55  ;;  %v2800_v16 = vld [vmem:[%s6494_s1 + $0x218] sm:$0xff]  ;;  %v2801_v40 = vld [vmem:[%s6494_s1 + $0x320] sm:$0xff] }
 0x157   : > { %1265 = vmatpush.msra.mxu1 %v2750_v19  ;;  %1244 = vmatpush.msra.mxu0 %v2751_v44  ;;  %v2802_v19 = vld [vmem:[%s6494_s1 + $0x110] sm:$0xff] }
 0x158   : > { %1289 = vmatpush.msra.mxu2 %v2752_v20  ;;  %1239 = vmatpush.msrb.mxu3 %v2753_v24  ;;  %v2803_v44 = vld [vmem:[%s6494_s1 + $0x190] sm:$0xff]  ;;  %v2805_v24 = vld [vmem:[%s6494_s1 + $0x318] sm:$0xff] }
 0x159   : > { %1196 = vmatmul.f32.vlgmr.msrb.gmra.mxu1 %v4362_v28  ;;  %1245 = vmatpush.msra.mxu0 %v2754_v27  ;;  %v2804_v20 = vld [vmem:[%s6494_s1 + $0x210] sm:$0xff]  ;;  %v4650_v27 = vpop.f32.mrf.mxu0 }
 0x15a   : > { %1266 = vmatpush.msra.mxu1 %v2755_v31  ;;  %1290 = vmatpush.msra.mxu2 %v2756_v35  ;;  %v2807_v31 = vld [vmem:[%s6494_s1 + $0x188] sm:$0xff]  ;;  %v4659_v35 = vld [vmem:[%s3762_s29 + $0x18] sm:$0xff] }
 0x15b   : > { %1313 = vmatpush.msra.mxu3 %v2757_v36  ;;  %1246 = vmatpush.msra.mxu0 %v2758_v34  ;;  %v1287_v36 = vrot.slane %v4659_v35, 1  ;;  %v2809_v34 = vld [vmem:[%s6494_s1 + $0x208] sm:$0xff] }
 0x15c   : > { %1267 = vmatpush.msra.mxu1 %v2759_v5  ;;  %1291 = vmatpush.msra.mxu2 %v2760_v6  ;;  %v2810_v5 = vld [vmem:[%s6494_s1 + $0x310] sm:$0xff]  ;;  %v2811_v6 = vld [vmem:[%s6494_s1 + $0x100] sm:$0xff] }
 0x15d   : > { %1314 = vmatpush.msra.mxu3 %v2761_v39  ;;  %1247 = vmatpush.msra.mxu0 %v2762_v9  ;;  %v2812_v39 = vld [vmem:[%s6494_s1 + $0x180] sm:$0xff] }
 0x15e   : > { %1268 = vmatpush.msra.mxu1 %v2763_v10  ;;  %1292 = vmatpush.msra.mxu2 %v2764_v13  ;;  %v2813_v9 = vld [vmem:[%s6494_s1 + $0x200] sm:$0xff]  ;;  %v2814_v10 = vld [vmem:[%s6494_s1 + $0x308] sm:$0xff]  ;;  %v4680_v13 = vpop.f32.mrf.mxu1 }
 0x15f   : > { %1315 = vmatpush.msra.mxu3 %v2765_v14  ;;  %1248 = vmatpush.msra.mxu0 %v2766_v17  ;;  %v2815_v14 = vld [vmem:[%s6494_s1 + $0x2f8] sm:$0xff] }
 0x160   : > { %1269 = vmatpush.msra.mxu1 %v2767_v18  ;;  %1293 = vmatpush.msra.mxu2 %v2768_v21  ;;  %v2816_v17 = vld [vmem:[%s6494_s1 + $0x3f8] sm:$0xff]  ;;  %v2818_v21 = vld [vmem:[%s6494_s1 + $0x300] sm:$0xff] }
 0x161   : > { %1316 = vmatpush.msra.mxu3 %v2769_v22  ;;  %1249 = vmatpush.msra.mxu0 %v2770_v26  ;;  %v2817_v18 = vld [vmem:[%s6494_s1 + $0x478] sm:$0xff]  ;;  %v2819_v22 = vld [vmem:[%s6494_s1 + $0x2f0] sm:$0xff] }
 0x162   : > { %1270 = vmatpush.msra.mxu1 %v2771_v43  ;;  %1294 = vmatpush.msra.mxu2 %v2772_v54  ;;  %v2820_v26 = vld [vmem:[%s6494_s1 + $0x3f0] sm:$0xff]  ;;  %v4703_v43 = vpop.f32.mrf.mxu2 }
 0x163   : > { %1317 = vmatpush.msra.mxu3 %v2773_v63  ;;  %1250 = vmatpush.msra.mxu0 %v2774_v46  ;;  %v2821_v54 = vld [vmem:[%s6494_s1 + $0x470] sm:$0xff]  ;;  %v2822_v63 = vld [vmem:[%s6494_s1 + $0x4f8] sm:$0xff]  ;;  %v2823_v46 = vld [vmem:[%s6494_s1 + $0x2e8] sm:$0xff] }
 0x164   : > { %1271 = vmatpush.msra.mxu1 %v2775_v53  ;;  %1295 = vmatpush.msra.mxu2 %v2776_v29  ;;  %v4715_v53 = vpop.f32.mrf.mxu0  ;;  %v2824_v29 = vld [vmem:[%s6494_s1 + $0x3e8] sm:$0xff] }
 0x165   : > { %1318 = vmatpush.msra.mxu3 %v2777_v60  ;;  %1251 = vmatpush.msra.mxu0 %v2778_v32  ;;  %v2825_v60 = vld [vmem:[%s6494_s1 + $0x468] sm:$0xff]  ;;  %v2826_v32 = vld [vmem:[%s6494_s1 + $0x4f0] sm:$0xff] }
 0x166   : > { %1272 = vmatpush.msra.mxu1 %v2779_v56  ;;  %1296 = vmatpush.msra.mxu2 %v2780_v59  ;;  %v2827_v56 = vld [vmem:[%s6494_s1 + $0x2e0] sm:$0xff]  ;;  %v4729_v59 = vpop.f32.mrf.mxu3 }
 0x167   : > { %1319 = vmatpush.msra.mxu3 %v2781_v42  ;;  %1252 = vmatpush.msra.mxu0 %v2782_v51  ;;  %v4731_v42 = vpop.f32.mrf.mxu1  ;;  %v2828_v51 = vld [vmem:[%s6494_s1 + $0x3e0] sm:$0xff] }
 0x168   : > { %1273 = vmatpush.msra.mxu1 %v2783_v49  ;;  %1297 = vmatpush.msra.mxu2 %v2784_v57  ;;  %v2829_v49 = vld [vmem:[%s6494_s1 + $0x460] sm:$0xff]  ;;  %v2830_v57 = vld [vmem:[%s6494_s1 + $0x4e8] sm:$0xff] }
 0x169   : > { %1320 = vmatpush.msra.mxu3 %v2785_v2  ;;  %1253 = vmatpush.msra.mxu0 %v2786_v61  ;;  %v2831_v2 = vld [vmem:[%s6494_s1 + $0x2d8] sm:$0xff] }
 0x16a   : > { %1274 = vmatpush.msra.mxu1 %v2787_v23  ;;  %1298 = vmatpush.msra.mxu2 %v2788_v50  ;;  %v2832_v61 = vld [vmem:[%s6494_s1 + $0x3d8] sm:$0xff]  ;;  %v2834_v50 = vld [vmem:[%s6494_s1 + $0x4e0] sm:$0xff] }
 0x16b   : > { %1321 = vmatpush.msra.mxu3 %v2789_v62  ;;  %1254 = vmatpush.msra.mxu0 %v2790_v33  ;;  %v2833_v23 = vld [vmem:[%s6494_s1 + $0x458] sm:$0xff]  ;;  %v2835_v62 = vld [vmem:[%s6494_s1 + $0x2d0] sm:$0xff]  ;;  %v4757_v33 = vpop.f32.mrf.mxu2 }
 0x16c   : > { %1275 = vmatpush.msra.mxu1 %v2791_v38  ;;  %1299 = vmatpush.msra.mxu2 %v2792_v30  ;;  %v2836_v38 = vld [vmem:[%s6494_s1 + $0x3d0] sm:$0xff] }
 0x16d   : > { %1322 = vmatpush.msra.mxu3 %v2793_v25  ;;  %1255 = vmatpush.msra.mxu0 %v2794_v1  ;;  %v2837_v30 = vld [vmem:[%s6494_s1 + $0x450] sm:$0xff]  ;;  %v2838_v25 = vld [vmem:[%s6494_s1 + $0x4d8] sm:$0xff]  ;;  %v2839_v1 = vld [vmem:[%s6494_s1 + $0x2c8] sm:$0xff] }
 0x16e   : > { %1276 = vmatpush.msra.mxu1 %v2795_v4  ;;  %1300 = vmatpush.msra.mxu2 %v2796_v7  ;;  %v4771_v4 = vpop.f32.mrf.mxu0  ;;  %v2840_v7 = vld [vmem:[%s6494_s1 + $0x3c8] sm:$0xff] }
 0x16f   : > { %1323 = vmatpush.msra.mxu3 %v2797_v8  ;;  %1220 = vmatmul.f32.vlgmr.msrb.gmra.mxu2 %v3888_v58  ;;  %v2841_v8 = vld [vmem:[%s6494_s1 + $0x448] sm:$0xff] }
 0x170   : > { %1256 = vmatpush.msra.mxu0 %v2798_v12  ;;  %1277 = vmatpush.msra.mxu1 %v2799_v15  ;;  %v2842_v12 = vld [vmem:[%s6494_s1 + $0x4d0] sm:$0xff]  ;;  %v2843_v15 = vld [vmem:[%s6494_s1 + $0x2c0] sm:$0xff] }
 0x171   : > { %1301 = vmatpush.msra.mxu2 %v2800_v16  ;;  %1324 = vmatpush.msra.mxu3 %v2801_v40  ;;  %v4785_v16 = vpop.f32.mrf.mxu3  ;;  %v2844_v40 = vld [vmem:[%s6494_s1 + $0x3c0] sm:$0xff] }
 0x172   : > { %1257 = vmatpush.msra.mxu0 %v2802_v19  ;;  %1240 = vmatmul.f32.vlgmr.msrb.gmra.mxu3 %v3826_v37  ;;  %v2806_v37 = vld [vmem:[%s6494_s1 + $0x108] sm:$0xff]  ;;  %v2845_v19 = vld [vmem:[%s6494_s1 + $0x440] sm:$0xff] }
 0x173   : > { %1278 = vmatpush.msra.mxu1 %v2803_v44  ;;  %1302 = vmatpush.msra.mxu2 %v2804_v20  ;;  %v2846_v44 = vld [vmem:[%s6494_s1 + $0x4c8] sm:$0xff]  ;;  %v2847_v20 = vld [vmem:[%s6494_s1 + $0x2b8] sm:$0xff] }
 0x174   : > { %1325 = vmatpush.msra.mxu3 %v2805_v24  ;;  %1258 = vmatpush.msra.mxu0 %v2806_v37  ;;  %v4799_v24 = vpop.f32.mrf.mxu1  ;;  %v2848_v37 = vld [vmem:[%s6494_s1 + $0x3b8] sm:$0xff] }
 0x175   : > { %1279 = vmatpush.msra.mxu1 %v2807_v31  ;;  %1303 = vmatpush.msra.mxu2 %v2809_v34  ;;  %v2849_v31 = vld [vmem:[%s6494_s1 + $0x4c0] sm:$0xff]  ;;  %v2850_v34 = vld [vmem:[%s6494_s1 + $0x2b0] sm:$0xff] }
 0x176   : > { %1326 = vmatpush.msra.mxu3 %v2810_v5  ;;  %1259 = vmatpush.msra.mxu0 %v2811_v6  ;;  %v792_v5 = vpop.f32.mrf.mxu2  ;;  %v2851_v6 = vld [vmem:[%s6494_s1 + $0x3b0] sm:$0xff] }
 0x177   : > { %1280 = vmatpush.msra.mxu1 %v2812_v39  ;;  %1304 = vmatpush.msra.mxu2 %v2813_v9  ;;  %v2853_v39 = vld [vmem:[%s6494_s1 + $0x2a8] sm:$0xff]  ;;  %v832_v9 = vpop.f32.mrf.mxu0 }
 0x178   : > { %1327 = vmatpush.msra.mxu3 %v2814_v10  ;;  %1305 = vmatmul.f32.vlgmr.msra.gmra.mxu2 %v1287_v36  ;;  %v2854_v10 = vld [vmem:[%s6494_s1 + $0x3a8] sm:$0xff] }
 0x179   : > { %1333 = vmatpush.msrb.mxu0 %v2815_v14  ;;  %1353 = vmatpush.msrb.mxu1 %v2816_v17  ;;  %v2856_v14 = vld [vmem:[%s6494_s1 + $0x2a0] sm:$0xff]  ;;  %v812_v17 = vpop.f32.mrf.mxu3 }
 0x17a   : > { %1374 = vmatpush.msrb.mxu2 %v2817_v18  ;;  %1328 = vmatpush.msra.mxu3 %v2818_v21  ;;  %v2857_v18 = vld [vmem:[%s6494_s1 + $0x3a0] sm:$0xff]  ;;  %v2859_v21 = vld [vmem:[%s6494_s1 + $0x298] sm:$0xff] }
 0x17b   : > { %1260 = vmatmul.f32.vlgmr.msra.gmra.mxu0 %v4131_v55  ;;  %1354 = vmatpush.msrb.mxu1 %v2820_v26  ;;  %v2860_v26 = vld [vmem:[%s6494_s1 + $0x398] sm:$0xff] }
 0x17c   : > { %1334 = vmatpush.msrb.mxu0 %v2819_v22  ;;  %1375 = vmatpush.msrb.mxu2 %v2821_v54  ;;  %v853_v22 = vpop.f32.mrf.mxu1  ;;  %v2862_v54 = vld [vmem:[%s6494_s1 + $0x290] sm:$0xff] }
 0x17d   : > { %1395 = vmatpush.msrb.mxu3 %v2822_v63  ;;  %1281 = vmatmul.f32.vlgmr.msra.gmra.mxu1 %v4362_v28  ;;  %v2863_v63 = vld [vmem:[%s6494_s1 + $0x390] sm:$0xff] }
 0x17e   : > { %1335 = vmatpush.msrb.mxu0 %v2823_v46  ;;  %1355 = vmatpush.msrb.mxu1 %v2824_v29  ;;  %v2864_v46 = vld [vmem:[%s6494_s1 + $0x498] sm:$0xff]  ;;  %v877_v29 = vpop.f32.mrf.mxu2 }
 0x17f   : > { %1376 = vmatpush.msrb.mxu2 %v2825_v60  ;;  %1396 = vmatpush.msrb.mxu3 %v2826_v32  ;;  %v921_v60 = vpop.f32.mrf.mxu0  ;;  %v2866_v32 = vld [vmem:[%s6494_s1 + $0x388] sm:$0xff] }
 0x180   : > { %1336 = vmatpush.msrb.mxu0 %v2827_v56  ;;  %1356 = vmatpush.msrb.mxu1 %v2828_v51  ;;  %v813_v56 = vadd.f32 %v812_v17, %v792_v5 }
 0x181   : > { %1377 = vmatpush.msrb.mxu2 %v2829_v49  ;;  %1397 = vmatpush.msrb.mxu3 %v2830_v57  ;;  %v901_v51 = vpop.f32.mrf.mxu3  ;;  %v2868_v49 = vld [vmem:[%s6494_s1 + $0x280] sm:$0xff] }
 0x182   : > { %1337 = vmatpush.msrb.mxu0 %v2831_v2  ;;  %1357 = vmatpush.msrb.mxu1 %v2832_v61  ;;  %v2869_v57 = vld [vmem:[%s6494_s1 + $0x380] sm:$0xff]  ;;  %v922_v2 = vadd.f32 %v921_v60, %v901_v51  ;;  %v2870_v61 = vld [vmem:[%s6494_s1 + $0x488] sm:$0xff]  ;;  %v5092_v51 = vld [vmem:[%s6191_s3 + $0x298] sm:$0xff] }
 0x183   : > { %1378 = vmatpush.msrb.mxu2 %v2833_v23  ;;  %1398 = vmatpush.msrb.mxu3 %v2834_v50  ;;  %v4899_v50 = vld [vmem:[%s6191_s3 + $0x60] sm:$0xff]  ;;  %v5059_v60 = vld [vmem:[%s6191_s3 + $0xe8] sm:$0xff]  ;;  %6831 = vst [vmem:[#allocation65_spill] sm:$0xff] %v5092_v51 }
 0x184   : > { %1338 = vmatpush.msrb.mxu0 %v2835_v62  ;;  %1358 = vmatpush.msrb.mxu1 %v2836_v38  ;;  %v941_v23 = vpop.f32.mrf.mxu1  ;;  %6829 = vst [vmem:[#allocation61_spill] sm:$0xff] %v5059_v60 }
 0x185   : > { %1379 = vmatpush.msrb.mxu2 %v2837_v30  ;;  %1399 = vmatpush.msrb.mxu3 %v2838_v25  ;;  %v944_v30 = vadd.f32 %v941_v23, %v922_v2  ;;  %v4925_v25 = vld [vmem:[%s6191_s3 + $0x138] sm:$0xff]  ;;  %v5120_v2 = vld [vmem:[%s6191_s3 + $0x288] sm:$0xff]  ;;  %v5132_v23 = vld [vmem:[%s6191_s3 + $0x280] sm:$0xff] }
 0x186   : > { %1339 = vmatpush.msrb.mxu0 %v2839_v1  ;;  %1359 = vmatpush.msrb.mxu1 %v2840_v7  ;;  %v962_v1 = vpop.f32.mrf.mxu2  ;;  %6833 = vst [vmem:[#allocation74_spill] sm:$0xff] %v5120_v2 }
 0x187   : > { %1380 = vmatpush.msrb.mxu2 %v2841_v8  ;;  %1400 = vmatpush.msrb.mxu3 %v2842_v12  ;;  %v965_v12 = vadd.f32 %v962_v1, %v944_v30  ;;  %6834 = vst [vmem:[#allocation73_spill] sm:$0xff] %v5132_v23  ;;  %v5163_v30 = vld [vmem:[%s6191_s3 + $0xa0] sm:$0xff]  ;;  %v5168_v1 = vld [vmem:[%s6191_s3 + $0x268] sm:$0xff] }
 0x188   : > { %1340 = vmatpush.msrb.mxu0 %v2843_v15  ;;  %1360 = vmatpush.msrb.mxu1 %v2844_v40  ;;  %6837 = vst [vmem:[#allocation82_spill] sm:$0xff] %v5168_v1 }
 0x189   : > { %1381 = vmatpush.msrb.mxu2 %v2845_v19  ;;  %1401 = vmatpush.msrb.mxu3 %v2846_v44  ;;  %v983_v15 = vpop.f32.mrf.mxu3  ;;  %v4963_v19 = vld [vmem:[%s6190_s2] ss:$0 sm:$0xff] }
 0x18a   : > { %1341 = vmatpush.msrb.mxu0 %v2847_v20  ;;  %1361 = vmatpush.msrb.mxu1 %v2848_v37  ;;  %v4969_v20 = vld [vmem:[%s6191_s3 + $0x120] sm:$0xff]  ;;  %v986_v37 = vadd.f32 %v983_v15, %v965_v12  ;;  %v5192_v12 = vld [vmem:[%s6191_s3 + $0x258] sm:$0xff]  ;;  %v5199_v15 = vld [vmem:[%s6191_s3 + $0x88] sm:$0xff] }
 0x18b   : > { %1382 = vmatpush.msrb.mxu2 %v6809_v45  ;;  %1402 = vmatpush.msrb.mxu3 %v2849_v31  ;;  %v2852_v45 = vld [vmem:[%s6494_s1 + $0x4b8] sm:$0xff]  ;;  %6822 = vst [vmem:[#allocation22_spill] sm:$0xff] %v4969_v20 }
 0x18c   : > { %1342 = vmatpush.msrb.mxu0 %v2850_v34  ;;  %1362 = vmatpush.msrb.mxu1 %v2851_v6  ;;  %v4982_v31 = vld [vmem:[%s6191_s3 + $0x118] sm:$0xff]  ;;  %v4988_v34 = vld [vmem:[%s6191_s3 + $0x30] sm:$0xff]  ;;  %6839 = vst [vmem:[#allocation86_spill] sm:$0xff] %v5192_v12 }
 0x18d   : > { %1383 = vmatpush.msrb.mxu2 %v6810_v41  ;;  %1403 = vmatpush.msrb.mxu3 %v2852_v45  ;;  %v2855_v41 = vld [vmem:[%s6494_s1 + $0x4b0] sm:$0xff]  ;;  %6823 = vst [vmem:[#allocation27_spill] sm:$0xff] %v4982_v31 }
 0x18e   : > { %1343 = vmatpush.msrb.mxu0 %v2853_v39  ;;  %1363 = vmatpush.msrb.mxu1 %v2854_v10  ;;  %v4996_v45 = vld [vmem:[%s6191_s3 + $0x110] sm:$0xff]  ;;  %v5002_v39 = vld [vmem:[%s6191_s3 + $0x28] sm:$0xff]  ;;  %v987_v10 = vadd.f32 %v4963_v19, %v986_v37  ;;  %v5223_v37 = vld [vmem:[%s6191_s3 + $0x78] sm:$0xff] }
 0x18f   : > { %1384 = vmatpush.msrb.mxu2 %v6812_v52  ;;  %1404 = vmatpush.msrb.mxu3 %v2855_v41  ;;  %v2858_v52 = vld [vmem:[%s6494_s1 + $0x4a8] sm:$0xff]  ;;  %6824 = vst [vmem:[#allocation26_spill] sm:$0xff] %v4996_v45 }
 0x190   : > { %1344 = vmatpush.msrb.mxu0 %v2856_v14  ;;  %1364 = vmatpush.msrb.mxu1 %v2857_v18  ;;  %v5009_v41 = vld [vmem:[%s6191_s3 + $0x108] sm:$0xff]  ;;  %v5015_v14 = vld [vmem:[%s6191_s3 + $0x20] sm:$0xff] }
 0x191   : > { %1385 = vmatpush.msrb.mxu2 %v6813_v48  ;;  %1405 = vmatpush.msrb.mxu3 %v2858_v52  ;;  %v2861_v48 = vld [vmem:[%s6494_s1 + $0x4a0] sm:$0xff]  ;;  %6825 = vst [vmem:[#allocation49_spill] sm:$0xff] %v5009_v41 }
 0x192   : > { %1345 = vmatpush.msrb.mxu0 %v2859_v21  ;;  %1365 = vmatpush.msrb.mxu1 %v2860_v26  ;;  %v5021_v52 = vld [vmem:[%s6191_s3 + $0x100] sm:$0xff]  ;;  %v5027_v21 = vld [vmem:[%s6191_s3 + $0x18] sm:$0xff]  ;;  %v988_v26 = vmax.f32 %v987_v10, 0.0  ;;  %v5247_v10 = vld [vmem:[%s6191_s3 + $0x230] sm:$0xff] }
 0x193   : > { %1386 = vmatpush.msrb.mxu2 %v6815_v0  ;;  %1406 = vmatpush.msrb.mxu3 %v2861_v48  ;;  %v656_v0 = vadd.f32 %v4757_v33, %v4731_v42  ;;  %v2867_v42 = vld [vmem:[%s6494_s1 + $0x490] sm:$0xff]  ;;  %v835_v33 = vadd.f32 %v832_v9, %v813_v56  ;;  %6826 = vst [vmem:[#allocation53_spill] sm:$0xff] %v5021_v52  ;;  %v5033_v48 = vld [vmem:[%s6191_s3 + $0xf8] sm:$0xff] }
 0x194   : > { %1346 = vmatpush.msrb.mxu0 %v2862_v54  ;;  %1329 = vmatmul.f32.vlgmr.msra.gmra.mxu3 %v3888_v58  ;;  %v2865_v58 = vld [vmem:[%s6494_s1 + $0x288] sm:$0xff]  ;;  %6827 = vst [vmem:[#allocation57_spill] sm:$0xff] %v5033_v48  ;;  %v5039_v54 = vld [vmem:[%s6191_s3 + $0x10] sm:$0xff] }
 0x195   : > { %1366 = vmatpush.msrb.mxu1 %v2863_v63  ;;  %1387 = vmatpush.msrb.mxu2 %v6817_v3  ;;  %v459_v3 = vadd.f32 %v4680_v13, %v4650_v27  ;;  %v4887_v27 = vld [vmem:[%s6191_s3 + $0x148] sm:$0xff]  ;;  %v695_v13 = vadd.f32 %v4785_v16, %v656_v0  ;;  %v856_v7 = vadd.f32 %v853_v22, %v835_v33  ;;  %v4957_v16 = vld [vmem:[%s6191_s3 + $0x40] sm:$0xff]  ;;  %v5045_v0 = vld [vmem:[%s6191_s3 + $0xf0] sm:$0xff] }
 0x196   : > { %1407 = vmatpush.msrb.mxu3 %v2864_v46  ;;  %1347 = vmatpush.msrb.mxu0 %v2865_v58  ;;  %6828 = vst [vmem:[#allocation62_spill] sm:$0xff] %v5045_v0  ;;  %v5051_v46 = vld [vmem:[%s6191_s3 + $0x8] sm:$0xff]  ;;  %v5065_v58 = vld [vmem:[%s6191_s3] sm:$0xff]  ;;  %v5083_v56 = vld [vmem:[%s6191_s3 + $0xd0] sm:$0xff] }
 0x197   : > { %1367 = vmatpush.msrb.mxu1 %v2866_v32  ;;  %1388 = vmatpush.msrb.mxu2 %v6819_v11  ;;  %v4882_v11 = vld [vmem:[%s6191_s3 + $0x68] sm:$0xff]  ;;  %v498_v62 = vadd.f32 %v4703_v43, %v459_v3  ;;  %v4916_v43 = vld [vmem:[%s6191_s3 + $0x58] sm:$0xff]  ;;  %v733_v38 = vadd.f32 %v4771_v4, %v695_v13  ;;  %v880_v44 = vadd.f32 %v877_v29, %v856_v7  ;;  %v5076_v3 = vld [vmem:[%s6191_s3 + $0xe0] sm:$0xff] }
 0x198   : > { %1408 = vmatpush.msrb.mxu3 %v2867_v42  ;;  %1348 = vmatpush.msrb.mxu0 %v2868_v49  ;;  %v5070_v32 = vld [vmem:[%s6191_s3 + $0xd8] sm:$0xff]  ;;  %6830 = vst [vmem:[#allocation66_spill] sm:$0xff] %v5076_v3  ;;  %v5101_v49 = vld [vmem:[%s6191_s3 + $0xc8] sm:$0xff]  ;;  %v5115_v13 = vld [vmem:[%s6191_s3 + $0xc0] sm:$0xff] }
 0x199   : > { %1368 = vmatpush.msrb.mxu1 %v2869_v57  ;;  %1389 = vmatpush.msrb.mxu2 %v4055_v47  ;;  %v4907_v47 = vld [vmem:[%s6191_s3 + $0x140] sm:$0xff]  ;;  %v536_v4 = vadd.f32 %v4729_v59, %v498_v62  ;;  %v771_v8 = vadd.f32 %v4799_v24, %v733_v38  ;;  %v4951_v59 = vld [vmem:[%s6191_s3 + $0x128] sm:$0xff]  ;;  %v4975_v24 = vld [vmem:[%s6191_s3 + $0x38] sm:$0xff]  ;;  %v881_v6 = vadd.f32 %v4963_v19, %v880_v44 }
 0x19a   : > { %1409 = vmatpush.msrb.mxu3 %v2870_v61  ;;  %1349 = vmatmul.f32.vlgmr.msrb.gmra.mxu0 %v4659_v35  ;;  %v4938_v35 = vld [vmem:[%s6191_s3 + $0x130] sm:$0xff]  ;;  %6821 = vst [vmem:[#allocation23_spill] sm:$0xff] %v4951_v59  ;;  %v5127_v61 = vld [vmem:[%s6191_s3 + $0xb8] sm:$0xff]  ;;  %v5180_v7 = vld [vmem:[%s6191_s3 + $0x260] sm:$0xff] }
 0x19b   : > { %1390 = vmatmul.f32.vlgmr.msrb.gmra.mxu2 %v4362_v28  ;;  %1477 = vmatpush.msra.mxu1 %v4882_v11  ;;  %v2871_v28 = vld [vmem:[%s6494_s1 + $0x480] sm:$0xff]  ;;  %6820 = vst [vmem:[#allocation19_spill] sm:$0xff] %v4938_v35  ;;  %v577_v40 = vadd.f32 %v4715_v53, %v536_v4  ;;  %v772_v53 = vadd.f32 %v4963_v19, %v771_v8  ;;  %v882_v18 = vmax.f32 %v881_v6, 0.0  ;;  %v5108_v57 = vld [vmem:[%s6191_s3 + $0x290] sm:$0xff]  ;;  %v5144_v33 = vld [vmem:[%s6191_s3 + $0x278] sm:$0xff]  ;;  %s2888_s1 = scalar_lea.hbm %s2887_s22, 1 }
 0x19c   : > { %1515 = vmatpush.msra.mxu2 %v4887_v27  ;;  %1410 = vmatpush.msrb.mxu3 %v2871_v28  ;;  %6832 = vst [vmem:[#allocation69_spill] sm:$0xff] %v5108_v57  ;;  %v5139_v62 = vld [vmem:[%s6191_s3 + $0xb0] sm:$0xff]  ;;  %v5151_v28 = vld [vmem:[%s6191_s3 + $0xa8] sm:$0xff]  ;;  %v5175_v4 = vld [vmem:[%s6191_s3 + $0x98] sm:$0xff]  ;;  %p2889_p11 = scmp.ne.s32.totalorder %s2887_s22, %s2888_s1  ;;  %p2894_p1 = scmp.lt.s32.totalorder %s2892_s24, %s2888_s1 }
 0x19d   : > { %1369 = vmatmul.f32.vlgmr.msrb.gmra.mxu1 %v4131_v55  ;;  %1411 = vmatmul.f32.vlgmr.msrb.gmra.mxu3 %v1287_v36  ;;  %v4931_v55 = vld [vmem:[%s6191_s3 + $0x50] sm:$0xff]  ;;  %v4944_v36 = vld [vmem:[%s6191_s3 + $0x48] sm:$0xff]  ;;  %v582_v5 = vadd.f32 %v4963_v19, %v577_v40  ;;  %v773_v9 = vmax.f32 %v772_v53, 0.0  ;;  %6835 = vst [vmem:[#allocation78_spill] sm:$0xff] %v5144_v33  ;;  %v5211_v44 = vld [vmem:[%s6191_s3 + $0x80] sm:$0xff] }
 0x19e   : > { %1478 = vmatpush.msra.mxu1 %v4899_v50  ;;  %1516 = vmatpush.msra.mxu2 %v4907_v47  ;;  %v5156_v38 = vld [vmem:[%s6191_s3 + $0x270] sm:$0xff]  ;;  %6838 = vst [vmem:[#allocation81_spill] sm:$0xff] %v5180_v7  ;;  %v5216_v53 = vld [vmem:[%s6191_s3 + $0x248] sm:$0xff]  ;;  %p2890_p12 = pnand %p2889_p11, %p3034_p5  ;;  %p2895_p2 = por %p2894_p1, %p2893_p0 }
 0x19f   : > { %v583_v17 = vmax.f32 %v582_v5, 0.0  ;;  %1454 = vmatpush.msra.mxu0 %v5070_v32  ;;  %6836 = vst [vmem:[#allocation77_spill] sm:$0xff] %v5156_v38  ;;  %v5187_v8 = vld [vmem:[%s6191_s3 + $0x90] sm:$0xff]  ;;  %v5228_v5 = vld [vmem:[%s6191_s3 + $0x240] sm:$0xff] }
 0x1a0   : > { %1479 = vmatpush.msra.mxu1 %v4916_v43  ;;  %1517 = vmatpush.msra.mxu2 %v4925_v25  ;;  %v5204_v40 = vld [vmem:[%s6191_s3 + $0x250] sm:$0xff]  ;;  %6841 = vst [vmem:[#allocation90_spill] sm:$0xff] %v5216_v53  ;;  %p2891_p13 = pneg %p2890_p12 }
 0x1a1   : > { %v774_v22 = vmax.f32 %v583_v17, %v773_v9  ;;  %1455 = vmatpush.msra.mxu0 %v5083_v56  ;;  %6840 = vst [vmem:[#allocation85_spill] sm:$0xff] %v5204_v40  ;;  %v5235_v6 = vld [vmem:[%s6191_s3 + $0x70] sm:$0xff]  ;;  %v5240_v9 = vld [vmem:[%s6191_s3 + $0x238] sm:$0xff]  ;;  %v5252_v17 = vld [vmem:[%s6191_s3 + $0x308] sm:$0xff] }
 0x1a2   : > { %1480 = vmatpush.msra.mxu1 %v4931_v55  ;;  %1518 = vmatpush.msra.mxu2 %v4938_v35  ;;  %6842 = vst [vmem:[#allocation89_spill] sm:$0xff] %v5228_v5  ;;  %p2896_p3 = pnand %p2895_p2, %p2891_p13 }
 0x1a3   : > { %v883_v63 = vmax.f32 %v774_v22, %v882_v18  ;;  %1456 = vmatpush.msra.mxu0 %v5101_v49  ;;  %6843 = vst [vmem:[#allocation94_spill] sm:$0xff] %v5240_v9  ;;  %v5257_v18 = vld [vmem:[%s6191_s3 + $0x1b8] sm:$0xff]  ;;  %v5262_v22 = vld [vmem:[%s6191_s3 + $0x300] sm:$0xff] }
 0x1a4   : > { %1481 = vmatpush.msra.mxu1 %v4944_v36  ;;  %1519 = vmatpush.msra.mxu2 %v4951_v59  ;;  %6844 = vst [vmem:[#allocation93_spill] sm:$0xff] %v5247_v10 }
 0x1a5   : > { %v5053_v29 = vmax.f32 %v883_v63, %v988_v26  ;;  %1457 = vmatpush.msra.mxu0 %v5115_v13  ;;  %6845 = vst [vmem:[#allocation98_spill] sm:$0xff] %v5262_v22  ;;  %1554 = vmatpush.msra.mxu3 %v5257_v18  ;;  %v5272_v26 = vld [vmem:[%s6191_s3 + $0x1b0] sm:$0xff]  ;;  %v5277_v63 = vld [vmem:[%s6191_s3 + $0x2f8] sm:$0xff] }
 0x1a6   : > { %1482 = vmatpush.msra.mxu1 %v4957_v16  ;;  %1520 = vmatpush.msra.mxu2 %v4969_v20  ;;  %6846 = vst [vmem:[#allocation97_spill] sm:$0xff] %v5277_v63  ;;  %v5650_v20 = vld [vmem:[%s6191_s3 + $0x3e0] sm:$0xff] }
 0x1a7   : > { %v5087_v42 = vrot.slane %v5053_v29, 1  ;;  %1458 = vmatpush.msra.mxu0 %v5127_v61  ;;  %1555 = vmatpush.msra.mxu3 %v5272_v26 }
 0x1a8   : > { %1483 = vmatpush.msra.mxu1 %v4975_v24  ;;  %1521 = vmatpush.msra.mxu2 %v4982_v31  ;;  %v5574_v31 = vld [vmem:[%s6191_s3 + $0x420] sm:$0xff] }
 0x1a9   : > { %1459 = vmatpush.msra.mxu0 %v5139_v62  ;;  %6870 = vst [vmem:[#allocation17_spill] sm:$0xff] %v5574_v31 }
 0x1aa   : > { %1484 = vmatpush.msra.mxu1 %v4988_v34  ;;  %1522 = vmatpush.msra.mxu2 %v4996_v45  ;;  %v5551_v45 = vld [vmem:[%s6191_s3 + $0x350] sm:$0xff] }
 0x1ab   : > { %1460 = vmatpush.msra.mxu0 %v5151_v28  ;;  %6867 = vst [vmem:[#allocation14_spill] sm:$0xff] %v5551_v45 }
 0x1ac   : > { %1485 = vmatpush.msra.mxu1 %v5002_v39  ;;  %1523 = vmatpush.msra.mxu2 %v5009_v41  ;;  %v2531_v41 = vld [vmem:[%s6191_s3 + $0x1c8] sm:$0xff] }
 0x1ad   : > { %1461 = vmatpush.msra.mxu0 %v5163_v30 }
 0x1ae   : > { %1486 = vmatpush.msra.mxu1 %v5015_v14  ;;  %1524 = vmatpush.msra.mxu2 %v5021_v52 }
 0x1af   : > { %1462 = vmatpush.msra.mxu0 %v5175_v4 }
 0x1b0   : > { %1487 = vmatpush.msra.mxu1 %v5027_v21  ;;  %1525 = vmatpush.msra.mxu2 %v5033_v48  ;;  %v5500_v48 = vld [vmem:[%s6191_s3 + $0x368] sm:$0xff]  ;;  %v5511_v52 = vpop.f32.mrf.mxu1 }
 0x1b1   : > { %1463 = vmatpush.msra.mxu0 %v5187_v8  ;;  %6861 = vst [vmem:[#allocation8_spill] sm:$0xff] %v5500_v48 }
 0x1b2   : > { %1488 = vmatpush.msra.mxu1 %v5039_v54  ;;  %1526 = vmatpush.msra.mxu2 %v5045_v0  ;;  %v5477_v0 = vld [vmem:[%s6191_s3 + $0x450] sm:$0xff] }
 0x1b3   : > { %1464 = vmatpush.msra.mxu0 %v5199_v15  ;;  %6859 = vst [vmem:[#allocation6_spill] sm:$0xff] %v5477_v0 }
 0x1b4   : > { %1489 = vmatpush.msra.mxu1 %v5051_v46  ;;  %1527 = vmatpush.msra.mxu2 %v5059_v60  ;;  %v5438_v60 = vld [vmem:[%s6191_s3 + $0x158] sm:$0xff] }
 0x1b5   : > { %1465 = vmatpush.msra.mxu0 %v5211_v44 }
 0x1b6   : > { %1490 = vmatpush.msra.mxu1 %v5065_v58  ;;  %1528 = vmatpush.msra.mxu2 %v5076_v3  ;;  %v5432_v3 = vld [vmem:[%s6191_s3 + $0x2a8] sm:$0xff] }
 0x1b7   : > { %2499 = vmatmul.msk.f32.vlgmr.msra.gmra.mxu1 %vm1448_vm0, %v5053_v29  ;;  %2514 = vmatmul.msk.f32.vlgmr.msra.gmra.mxu2 %vm1448_vm0, %v5087_v42  ;;  %6856 = vst [vmem:[#allocation117_spill] sm:$0xff] %v5432_v3 }
 0x1b8   : > { %1670 = vmatpush.msrb.mxu2 %v5092_v51  ;;  %1466 = vmatpush.msra.mxu0 %v5223_v37  ;;  %v5422_v51 = vld [vmem:[%s6191_s3 + $0x160] sm:$0xff] }
 0x1b9   : > { %1650 = vmatpush.msrb.mxu1 %v5252_v17 }
 0x1ba   : > { %1671 = vmatpush.msrb.mxu2 %v5108_v57  ;;  %1467 = vmatpush.msra.mxu0 %v5235_v6  ;;  %v5416_v57 = vld [vmem:[%s6191_s3 + $0x2b0] sm:$0xff] }
 0x1bb   : > { %1651 = vmatpush.msrb.mxu1 %v5262_v22  ;;  %6855 = vst [vmem:[#allocation118_spill] sm:$0xff] %v5416_v57 }
 0x1bc   : > { %1672 = vmatpush.msrb.mxu2 %v5120_v2  ;;  %v5406_v2 = vld [vmem:[%s6191_s3 + $0x168] sm:$0xff] }
 0x1bd   : > { %1652 = vmatpush.msrb.mxu1 %v5277_v63 }
 0x1be   : > { %1673 = vmatpush.msrb.mxu2 %v5132_v23  ;;  %v5400_v23 = vld [vmem:[%s6191_s3 + $0x2b8] sm:$0xff] }
 0x1bf   : > { %6854 = vst [vmem:[#allocation113_spill] sm:$0xff] %v5400_v23 }
 0x1c0   : > { %1674 = vmatpush.msrb.mxu2 %v5144_v33  ;;  %v5390_v33 = vld [vmem:[%s6191_s3 + $0x170] sm:$0xff] }
 0x1c2   : > { %1675 = vmatpush.msrb.mxu2 %v5156_v38  ;;  %v5384_v38 = vld [vmem:[%s6191_s3 + $0x2c0] sm:$0xff] }
 0x1c3   : > { %6853 = vst [vmem:[#allocation114_spill] sm:$0xff] %v5384_v38 }
 0x1c4   : > { %1676 = vmatpush.msrb.mxu2 %v5168_v1  ;;  %v2540_v1 = vld [vmem:[%s6191_s3 + $0x210] sm:$0xff] }
 0x1c6   : > { %1677 = vmatpush.msrb.mxu2 %v5180_v7  ;;  %v5368_v7 = vld [vmem:[%s6191_s3 + $0x2c8] sm:$0xff] }
 0x1c7   : > { %6852 = vst [vmem:[#allocation109_spill] sm:$0xff] %v5368_v7 }
 0x1c8   : > { %1678 = vmatpush.msrb.mxu2 %v5192_v12  ;;  %v5363_v12 = vld [vmem:[%s6191_s3 + $0x180] sm:$0xff] }
 0x1ca   : > { %1679 = vmatpush.msrb.mxu2 %v5204_v40  ;;  %v5353_v40 = vld [vmem:[%s6191_s3 + $0x2d0] sm:$0xff] }
 0x1cb   : > { %6851 = vst [vmem:[#allocation110_spill] sm:$0xff] %v5353_v40 }
 0x1cc   : > { %1680 = vmatpush.msrb.mxu2 %v5216_v53  ;;  %v2543_v53 = vld [vmem:[%s6191_s3 + $0x228] sm:$0xff] }
 0x1cd   : > { %1593 = vmatpush.msrb.mxu0 %v2543_v53 }
 0x1ce   : > { %1681 = vmatpush.msrb.mxu2 %v5228_v5  ;;  %v5319_v5 = vld [vmem:[%s6191_s3 + $0x2e0] sm:$0xff] }
 0x1cf   : > { %6849 = vst [vmem:[#allocation106_spill] sm:$0xff] %v5319_v5 }
 0x1d0   : > { %1682 = vmatpush.msrb.mxu2 %v5240_v9  ;;  %v5293_v9 = vld [vmem:[%s6191_s3 + $0x2f0] sm:$0xff] }
 0x1d1   : > { %6847 = vst [vmem:[#allocation102_spill] sm:$0xff] %v5293_v9  ;;  %1653 = vmatpush.msrb.mxu1 %v5293_v9  ;;  %v5678_v9 = vld [vmem:[%s6191_s3 + $0x3d0] sm:$0xff] }
 0x1d2   : > { %1683 = vmatpush.msrb.mxu2 %v5247_v10  ;;  %v5288_v10 = vld [vmem:[%s6191_s3 + $0x1a8] sm:$0xff] }
 0x1d3   : > { %2574 = vmatmul.msk.f32.vlgmr.msrb.gmra.mxu2 %vm1448_vm0, %v5053_v29  ;;  %1556 = vmatpush.msra.mxu3 %v5288_v10 }
 0x1d4   : > { %1801 = vmatpush.msra.mxu2 %v5070_v32  ;;  %v5301_v32 = vld [vmem:[%s6191_s3 + $0x1a0] sm:$0xff] }
 0x1d5   : > { %1557 = vmatpush.msra.mxu3 %v5301_v32 }
 0x1d6   : > { %1802 = vmatpush.msra.mxu2 %v5083_v56  ;;  %v5306_v56 = vld [vmem:[%s6191_s3 + $0x2e8] sm:$0xff] }
 0x1d7   : > { %6848 = vst [vmem:[#allocation101_spill] sm:$0xff] %v5306_v56  ;;  %1654 = vmatpush.msrb.mxu1 %v5306_v56  ;;  %v1115_v56 = vpop.f32.mrf.mxu1 }
 0x1d8   : > { %1803 = vmatpush.msra.mxu2 %v5101_v49  ;;  %v5314_v49 = vld [vmem:[%s6191_s3 + $0x198] sm:$0xff] }
 0x1d9   : > { %1558 = vmatpush.msra.mxu3 %v5314_v49  ;;  %1655 = vmatpush.msrb.mxu1 %v5319_v5  ;;  %v5560_v5 = vld [vmem:[%s6191_s3 + $0x428] sm:$0xff] }
 0x1da   : > { %1804 = vmatpush.msra.mxu2 %v5115_v13  ;;  %v5332_v13 = vld [vmem:[%s6191_s3 + $0x190] sm:$0xff]  ;;  %6868 = vst [vmem:[#allocation15_spill] sm:$0xff] %v5560_v5 }
 0x1db   : > { %1559 = vmatpush.msra.mxu3 %v5332_v13 }
 0x1dc   : > { %1805 = vmatpush.msra.mxu2 %v5127_v61  ;;  %v5337_v61 = vld [vmem:[%s6191_s3 + $0x2d8] sm:$0xff] }
 0x1dd   : > { %6850 = vst [vmem:[#allocation105_spill] sm:$0xff] %v5337_v61  ;;  %1656 = vmatpush.msrb.mxu1 %v5337_v61  ;;  %v5543_v61 = vld [vmem:[%s6191_s3 + $0x430] sm:$0xff] }
 0x1de   : > { %1806 = vmatpush.msra.mxu2 %v5139_v62  ;;  %v2542_v62 = vld [vmem:[%s6191_s3 + $0x220] sm:$0xff]  ;;  %6866 = vst [vmem:[#allocation13_spill] sm:$0xff] %v5543_v61 }
 0x1df   : > { %1594 = vmatpush.msrb.mxu0 %v2542_v62  ;;  %1657 = vmatpush.msrb.mxu1 %v5353_v40  ;;  %v5526_v40 = vld [vmem:[%s6191_s3 + $0x438] sm:$0xff] }
 0x1e0   : > { %1807 = vmatpush.msra.mxu2 %v5151_v28  ;;  %v5348_v28 = vld [vmem:[%s6191_s3 + $0x188] sm:$0xff]  ;;  %6864 = vst [vmem:[#allocation11_spill] sm:$0xff] %v5526_v40 }
 0x1e1   : > { %1560 = vmatpush.msra.mxu3 %v5348_v28  ;;  %1658 = vmatpush.msrb.mxu1 %v5368_v7  ;;  %v5509_v7 = vld [vmem:[%s6191_s3 + $0x440] sm:$0xff] }
 0x1e2   : > { %1808 = vmatpush.msra.mxu2 %v5163_v30  ;;  %v2541_v30 = vld [vmem:[%s6191_s3 + $0x218] sm:$0xff]  ;;  %6862 = vst [vmem:[#allocation9_spill] sm:$0xff] %v5509_v7 }
 0x1e3   : > { %1595 = vmatpush.msrb.mxu0 %v2541_v30  ;;  %1561 = vmatpush.msra.mxu3 %v5363_v12 }
 0x1e4   : > { %1809 = vmatpush.msra.mxu2 %v5175_v4  ;;  %v5374_v4 = vld [vmem:[%s6191_s3 + $0x178] sm:$0xff]  ;;  %1659 = vmatpush.msrb.mxu1 %v5384_v38  ;;  %v5494_v38 = vld [vmem:[%s6191_s3 + $0x448] sm:$0xff] }
 0x1e5   : > { %1596 = vmatpush.msrb.mxu0 %v2540_v1  ;;  %1562 = vmatpush.msra.mxu3 %v5374_v4  ;;  %6860 = vst [vmem:[#allocation7_spill] sm:$0xff] %v5494_v38 }
 0x1e6   : > { %1810 = vmatpush.msra.mxu2 %v5187_v8  ;;  %v2539_v8 = vld [vmem:[%s6191_s3 + $0x208] sm:$0xff]  ;;  %1660 = vmatpush.msrb.mxu1 %v5400_v23  ;;  %v5462_v23 = vld [vmem:[%s6191_s3 + $0x150] sm:$0xff] }
 0x1e7   : > { %1597 = vmatpush.msrb.mxu0 %v2539_v8  ;;  %1563 = vmatpush.msra.mxu3 %v5390_v33 }
 0x1e8   : > { %1811 = vmatpush.msra.mxu2 %v5199_v15  ;;  %v2538_v15 = vld [vmem:[%s6191_s3 + $0x200] sm:$0xff]  ;;  %1661 = vmatpush.msrb.mxu1 %v5416_v57  ;;  %v5453_v57 = vld [vmem:[%s6191_s3 + $0x458] sm:$0xff] }
 0x1e9   : > { %1598 = vmatpush.msrb.mxu0 %v2538_v15  ;;  %1564 = vmatpush.msra.mxu3 %v5406_v2  ;;  %6858 = vst [vmem:[#allocation5_spill] sm:$0xff] %v5453_v57 }
 0x1ea   : > { %1812 = vmatpush.msra.mxu2 %v5211_v44  ;;  %v2537_v44 = vld [vmem:[%s6191_s3 + $0x1f8] sm:$0xff]  ;;  %1662 = vmatpush.msrb.mxu1 %v5432_v3 }
 0x1eb   : > { %1599 = vmatpush.msrb.mxu0 %v2537_v44  ;;  %1565 = vmatpush.msra.mxu3 %v5422_v51  ;;  %v5468_v3 = vld [vmem:[%s6191_s3 + $0x378] sm:$0xff] }
 0x1ec   : > { %1813 = vmatpush.msra.mxu2 %v5223_v37  ;;  %v5445_v37 = vld [vmem:[%s6191_s3 + $0x2a0] sm:$0xff] }
 0x1ed   : > { %6857 = vst [vmem:[#allocation121_spill] sm:$0xff] %v5445_v37  ;;  %1566 = vmatpush.msra.mxu3 %v5438_v60  ;;  %1663 = vmatpush.msrb.mxu1 %v5445_v37  ;;  %v5483_v37 = vld [vmem:[%s6191_s3 + $0x370] sm:$0xff] }
 0x1ee   : > { %1814 = vmatpush.msra.mxu2 %v5235_v6  ;;  %v2536_v6 = vld [vmem:[%s6191_s3 + $0x1f0] sm:$0xff] }
 0x1ef   : > { %2620 = vmatmul.msk.f32.vlgmr.msra.gmra.mxu2 %vm1448_vm0, %v5087_v42  ;;  %1600 = vmatpush.msrb.mxu0 %v2536_v6 }
 0x1f0   : > { %1886 = vmatpush.msrb.mxu2 %v2543_v53  ;;  %v2535_v53 = vld [vmem:[%s6191_s3 + $0x1e8] sm:$0xff]  ;;  %1777 = vmatpush.msra.mxu1 %v5453_v57  ;;  %v2534_v57 = vld [vmem:[%s6191_s3 + $0x1e0] sm:$0xff] }
 0x1f1   : > { %1567 = vmatpush.msra.mxu3 %v5462_v23  ;;  %1601 = vmatpush.msrb.mxu0 %v2535_v53 }
 0x1f2   : > { %1887 = vmatpush.msrb.mxu2 %v2542_v62  ;;  %v5485_v62 = vpop.f32.mrf.mxu0  ;;  %1778 = vmatpush.msra.mxu1 %v5477_v0  ;;  %v5517_v0 = vld [vmem:[%s6191_s3 + $0x360] sm:$0xff] }
 0x1f3   : > { %1705 = vmatpush.msrb.mxu3 %v5468_v3  ;;  %1602 = vmatpush.msrb.mxu0 %v2534_v57  ;;  %6863 = vst [vmem:[#allocation10_spill] sm:$0xff] %v5517_v0 }
 0x1f4   : > { %1888 = vmatpush.msrb.mxu2 %v2541_v30  ;;  %v2533_v30 = vld [vmem:[%s6191_s3 + $0x1d8] sm:$0xff]  ;;  %1779 = vmatpush.msra.mxu1 %v5494_v38 }
 0x1f5   : > { %1706 = vmatpush.msrb.mxu3 %v5483_v37  ;;  %1603 = vmatpush.msrb.mxu0 %v2533_v30  ;;  %v5532_v38 = vld [vmem:[%s6191_s3 + $0x358] sm:$0xff] }
 0x1f6   : > { %1889 = vmatpush.msrb.mxu2 %v2540_v1  ;;  %v2532_v1 = vld [vmem:[%s6191_s3 + $0x1d0] sm:$0xff]  ;;  %1780 = vmatpush.msra.mxu1 %v5509_v7  ;;  %6865 = vst [vmem:[#allocation12_spill] sm:$0xff] %v5532_v38  ;;  %v5545_v7 = vpop.f32.mrf.mxu2 }
 0x1f7   : > { %1707 = vmatpush.msrb.mxu3 %v5500_v48  ;;  %1604 = vmatpush.msrb.mxu0 %v2532_v1 }
 0x1f8   : > { %1890 = vmatpush.msrb.mxu2 %v2539_v8  ;;  %v5534_v8 = vpop.f32.mrf.mxu3  ;;  %1781 = vmatpush.msra.mxu1 %v5526_v40  ;;  %v5566_v40 = vld [vmem:[%s6191_s3 + $0x348] sm:$0xff] }
 0x1f9   : > { %1708 = vmatpush.msrb.mxu3 %v5517_v0  ;;  %1605 = vmatpush.msrb.mxu0 %v2531_v41  ;;  %6869 = vst [vmem:[#allocation16_spill] sm:$0xff] %v5566_v40  ;;  %v5711_v0 = vld [vmem:[%s6191_s3 + $0x3a8] sm:$0xff] }
 0x1fa   : > { %1891 = vmatpush.msrb.mxu2 %v2538_v15  ;;  %v2530_v15 = vld [vmem:[%s6191_s3 + $0x1c0] sm:$0xff]  ;;  %1782 = vmatpush.msra.mxu1 %v5543_v61 }
 0x1fb   : > { %1709 = vmatpush.msrb.mxu3 %v5532_v38  ;;  %1606 = vmatpush.msrb.mxu0 %v2530_v15  ;;  %v5580_v61 = vld [vmem:[%s6191_s3 + $0x340] sm:$0xff] }
 0x1fc   : > { %1892 = vmatpush.msrb.mxu2 %v2537_v44  ;;  %v5568_v44 = vpop.f32.mrf.mxu0  ;;  %1783 = vmatpush.msra.mxu1 %v5560_v5  ;;  %6871 = vst [vmem:[#allocation18_spill] sm:$0xff] %v5580_v61  ;;  %v5593_v5 = vld [vmem:[%s6191_s3 + $0x338] sm:$0xff] }
 0x1fd   : > { %1710 = vmatpush.msrb.mxu3 %v5551_v45  ;;  %6873 = vst [vmem:[#allocation21_spill] sm:$0xff] %v5593_v5 }
 0x1fe   : > { %1893 = vmatpush.msrb.mxu2 %v2536_v6  ;;  %v5586_v6 = vld [vmem:[%s6191_s3 + $0x418] sm:$0xff]  ;;  %1784 = vmatpush.msra.mxu1 %v5574_v31  ;;  %v5610_v31 = vld [vmem:[%s6191_s3 + $0x408] sm:$0xff] }
 0x1ff   : > { %1711 = vmatpush.msrb.mxu3 %v5566_v40  ;;  %6872 = vst [vmem:[#allocation20_spill] sm:$0xff] %v5586_v6  ;;  %v1135_v40 = vpop.f32.mrf.mxu2 }
 0x200   : > { %1894 = vmatpush.msrb.mxu2 %v2535_v53  ;;  %v1155_v45 = vpop.f32.mrf.mxu3  ;;  %v5598_v53 = vld [vmem:[%s6191_s3 + $0x410] sm:$0xff]  ;;  %1785 = vmatpush.msra.mxu1 %v5586_v6  ;;  %6876 = vst [vmem:[#allocation28_spill] sm:$0xff] %v5610_v31  ;;  %v5622_v6 = vld [vmem:[%s6191_s3 + $0x400] sm:$0xff] }
 0x201   : > { %1712 = vmatpush.msrb.mxu3 %v5580_v61  ;;  %6874 = vst [vmem:[#allocation24_spill] sm:$0xff] %v5598_v53 }
 0x202   : > { %1895 = vmatpush.msrb.mxu2 %v2534_v57  ;;  %v5605_v57 = vld [vmem:[%s6191_s3 + $0x330] sm:$0xff]  ;;  %1786 = vmatpush.msra.mxu1 %v5598_v53  ;;  %6878 = vst [vmem:[#allocation30_spill] sm:$0xff] %v5622_v6  ;;  %v5628_v53 = vld [vmem:[%s6191_s3 + $0x320] sm:$0xff] }
 0x203   : > { %1713 = vmatpush.msrb.mxu3 %v5593_v5  ;;  %6875 = vst [vmem:[#allocation25_spill] sm:$0xff] %v5605_v57  ;;  %v1197_v5 = vpop.f32.mrf.mxu1 }
 0x204   : > { %1896 = vmatpush.msrb.mxu2 %v2533_v30  ;;  %v1176_v61 = vpop.f32.mrf.mxu0  ;;  %v5617_v30 = vld [vmem:[%s6191_s3 + $0x328] sm:$0xff]  ;;  %1787 = vmatpush.msra.mxu1 %v5610_v31  ;;  %6879 = vst [vmem:[#allocation31_spill] sm:$0xff] %v5628_v53  ;;  %v5645_v31 = vld [vmem:[%s6191_s3 + $0x318] sm:$0xff] }
 0x205   : > { %1714 = vmatpush.msrb.mxu3 %v5605_v57  ;;  %6877 = vst [vmem:[#allocation29_spill] sm:$0xff] %v5617_v30  ;;  %v5639_v57 = vld [vmem:[%s6191_s3 + $0x3f8] sm:$0xff] }
 0x206   : > { %1897 = vmatpush.msrb.mxu2 %v2532_v1  ;;  %v5633_v1 = vld [vmem:[%s6191_s3 + $0x3e8] sm:$0xff]  ;;  %6880 = vst [vmem:[#allocation32_spill] sm:$0xff] %v5639_v57  ;;  %1788 = vmatpush.msra.mxu1 %v5622_v6  ;;  %v1136_v6 = vadd.f32 %v1135_v40, %v1115_v56  ;;  %v1028_v40 = vadd.f32 %v5511_v52, %v5485_v62 }
 0x207   : > { %1715 = vmatpush.msrb.mxu3 %v5617_v30  ;;  %6881 = vst [vmem:[#allocation33_spill] sm:$0xff] %v5645_v31  ;;  %v5656_v30 = vld [vmem:[%s6191_s3 + $0x3f0] sm:$0xff]  ;;  %v1221_v38 = vpop.f32.mrf.mxu2  ;;  %v5685_v52 = vld [vmem:[%s6191_s3 + $0x3c8] sm:$0xff] }
 0x208   : > { %1898 = vmatpush.msrb.mxu2 %v2531_v41  ;;  %v1241_v41 = vpop.f32.mrf.mxu3  ;;  %6882 = vst [vmem:[#allocation34_spill] sm:$0xff] %v5656_v30  ;;  %1789 = vmatpush.msra.mxu1 %v5639_v57  ;;  %v1158_v59 = vadd.f32 %v1155_v45, %v1136_v6  ;;  %v5698_v45 = vld [vmem:[%s6191_s3 + $0x3b8] sm:$0xff] }
 0x209   : > { %1716 = vmatpush.msrb.mxu3 %v5628_v53  ;;  %v5668_v53 = vld [vmem:[%s6191_s3 + $0x3d8] sm:$0xff]  ;;  %v1242_v56 = vadd.f32 %v1241_v41, %v1221_v38  ;;  %v1050_v38 = vadd.f32 %v5545_v7, %v1028_v40  ;;  %v5705_v40 = vld [vmem:[%s6191_s3 + $0x3b0] sm:$0xff] }
 0x20a   : > { %1899 = vmatpush.msrb.mxu2 %v2530_v15  ;;  %v5663_v15 = vld [vmem:[%s6191_s3 + $0x310] sm:$0xff]  ;;  %1790 = vmatpush.msra.mxu1 %v5656_v30  ;;  %v5692_v30 = vld [vmem:[%s6191_s3 + $0x3c0] sm:$0xff] }
 0x20b   : > { %6883 = vst [vmem:[#allocation35_spill] sm:$0xff] %v5663_v15  ;;  %1717 = vmatpush.msrb.mxu3 %v5645_v31  ;;  %v1282_v41 = vpop.f32.mrf.mxu1  ;;  %v1071_v6 = vadd.f32 %v5534_v8, %v1050_v38 }
 0x20c   : > { %1971 = vmatpush.msra.mxu2 %v5633_v1  ;;  %v1261_v57 = vpop.f32.mrf.mxu0 }
 0x20d   : > { %1718 = vmatpush.msrb.mxu3 %v5663_v15  ;;  %v1264_v62 = vadd.f32 %v1261_v57, %v1242_v56  ;;  %v1179_v15 = vadd.f32 %v1176_v61, %v1158_v59  ;;  %v1095_v8 = vadd.f32 %v5568_v44, %v1071_v6 }
 0x20e   : > { %1972 = vmatpush.msra.mxu2 %v5650_v20 }
 0x20f   : > { %v1285_v7 = vadd.f32 %v1282_v41, %v1264_v62  ;;  %v1306_v57 = vpop.f32.mrf.mxu2  ;;  %v1200_v56 = vadd.f32 %v1197_v5, %v1179_v15  ;;  %v5718_v5 = vld [vmem:[%s6191_s3 + $0x3a0] sm:$0xff]  ;;  %v1096_v44 = vadd.f32 %v4963_v19, %v1095_v8 }
 0x210   : > { %1973 = vmatpush.msra.mxu2 %v5668_v53 }
 0x211   : > { %v1309_v38 = vadd.f32 %v1306_v57, %v1285_v7  ;;  %v1201_v15 = vadd.f32 %v4963_v19, %v1200_v56 }
 0x212   : > { %1974 = vmatpush.msra.mxu2 %v5678_v9 }
 0x213   : > { %v1310_v6 = vadd.f32 %v4963_v19, %v1309_v38  ;;  %v1202_v56 = vmax.f32 %v1201_v15, 0.0  ;;  %v2590_v38 = vld [vmem:[%s6191_s3 + $0x380] sm:$0xff] }
 0x214   : > { %1975 = vmatpush.msra.mxu2 %v5685_v52 }
 0x215   : > { %v1311_v35 = vmax.f32 %v1310_v6, 0.0  ;;  %v6933_v6 = vld [vmem:[#allocation81_spill] sm:$0xff] }
 0x216   : > { %1976 = vmatpush.msra.mxu2 %v5692_v30 }
 0x217   : > { %v1330_v59 = vpop.f32.mrf.mxu3  ;;  %v1350_v61 = vpop.f32.mrf.mxu0 }
 0x218   : > { %1977 = vmatpush.msra.mxu2 %v5698_v45  ;;  %v1351_v31 = vadd.f32 %v1350_v61, %v1330_v59  ;;  %v2593_v59 = vld [vmem:[%s6191_s3 + $0x398] sm:$0xff]  ;;  %v2592_v61 = vld [vmem:[%s6191_s3 + $0x390] sm:$0xff] }
 0x21a   : > { %v1370_v62 = vpop.f32.mrf.mxu1  ;;  %1978 = vmatpush.msra.mxu2 %v5705_v40 }
 0x21b   : > { %v1373_v41 = vadd.f32 %v1370_v62, %v1351_v31  ;;  %v2591_v31 = vld [vmem:[%s6191_s3 + $0x388] sm:$0xff]  ;;  %v1097_v62 = vmax.f32 %v1096_v44, 0.0 }
 0x21c   : > { %1979 = vmatpush.msra.mxu2 %v5711_v0 }
 0x21e   : > { %v1391_v7 = vpop.f32.mrf.mxu2  ;;  %1980 = vmatpush.msra.mxu2 %v5718_v5 }
 0x21f   : > { %v1394_v57 = vadd.f32 %v1391_v7, %v1373_v41  ;;  %v1203_v41 = vmax.f32 %v1097_v62, %v1202_v56  ;;  %v6936_v56 = vld [vmem:[#allocation17_spill] sm:$0xff]  ;;  %v6938_v62 = vld [vmem:[#allocation20_spill] sm:$0xff] }
 0x220   : > { %1981 = vmatpush.msra.mxu2 %v2593_v59  ;;  %v1412_v63 = vpop.f32.mrf.mxu3 }
 0x221   : > { %v1415_v8 = vadd.f32 %v1412_v63, %v1394_v57  ;;  %v1312_v48 = vmax.f32 %v1203_v41, %v1311_v35  ;;  %v1588_v35 = vrot.slane %v5053_v29, 2  ;;  %v6904_v29 = vld [vmem:[#allocation53_spill] sm:$0xff]  ;;  %v6934_v57 = vld [vmem:[#allocation15_spill] sm:$0xff] }
 0x222   : > { %1982 = vmatpush.msra.mxu2 %v2592_v61  ;;  %v6941_v41 = vld [vmem:[#allocation89_spill] sm:$0xff] }
 0x223   : > { %v1416_v7 = vadd.f32 %v4963_v19, %v1415_v8  ;;  %v6892_v19 = vld [vmem:[#allocation22_spill] sm:$0xff] }
 0x224   : > { %1983 = vmatpush.msra.mxu2 %v2591_v31  ;;  %v6939_v8 = vld [vmem:[#allocation90_spill] sm:$0xff] }
 0x225   : > { %v1417_v15 = vmax.f32 %v1416_v7, 0.0  ;;  %v6942_v7 = vld [vmem:[#allocation28_spill] sm:$0xff] }
 0x226   : > { %1984 = vmatpush.msra.mxu2 %v2590_v38 }
 0x227   : > { %v5738_v22 = vmax.f32 %v1312_v48, %v1417_v15  ;;  %v6900_v48 = vld [vmem:[#allocation18_spill] sm:$0xff] }
 0x228   : > { %v6943_v15 = vld [vmem:[#allocation94_spill] sm:$0xff] }
 0x229   : > { %2498 = vmatmul.msk.f32.vlgmr.msra.gmra.mxu0 %vm1448_vm0, %v5738_v22  ;;  %2573 = vmatmul.msk.f32.vlgmr.msrb.gmra.mxu1 %vm1448_vm0, %v5738_v22  ;;  %v5745_v63 = vrot.slane %v5738_v22, 1  ;;  %v1881_v44 = vrot.slane %v5738_v22, 2 }
 0x22a   : > { %1741 = vmatpush.msra.mxu0 %v5633_v1  ;;  %1862 = vmatpush.msrb.mxu1 %v5257_v18  ;;  %v6916_v18 = vld [vmem:[#allocation66_spill] sm:$0xff]  ;;  %v6926_v1 = vld [vmem:[#allocation7_spill] sm:$0xff] }
 0x22b   : > { %2529 = vmatmul.msk.f32.vlgmr.msra.gmra.mxu3 %vm1448_vm0, %v5745_v63  ;;  %2624 = vmatmul.msk.f32.vlgmr.msrb.gmra.mxu2 %vm1448_vm0, %v1881_v44 }
 0x22c   : > { %1742 = vmatpush.msra.mxu0 %v5650_v20  ;;  %1821 = vmatpush.msra.mxu3 %v4882_v11  ;;  %v6884_v11 = vld [vmem:[#allocation98_spill] sm:$0xff]  ;;  %v6893_v20 = vld [vmem:[#allocation101_spill] sm:$0xff] }
 0x22d   : > { %1863 = vmatpush.msrb.mxu1 %v5272_v26  ;;  %v6917_v26 = vld [vmem:[#allocation117_spill] sm:$0xff] }
 0x22e   : > { %1743 = vmatpush.msra.mxu0 %v5668_v53  ;;  %1822 = vmatpush.msra.mxu3 %v4899_v50  ;;  %v6885_v50 = vld [vmem:[#allocation8_spill] sm:$0xff]  ;;  %v6924_v53 = vld [vmem:[#allocation6_spill] sm:$0xff] }
 0x22f   : > { %1864 = vmatpush.msrb.mxu1 %v5288_v10  ;;  %v6914_v10 = vld [vmem:[#allocation118_spill] sm:$0xff] }
 0x230   : > { %1744 = vmatpush.msra.mxu0 %v5678_v9  ;;  %1823 = vmatpush.msra.mxu3 %v4916_v43  ;;  %v6887_v43 = vld [vmem:[#allocation97_spill] sm:$0xff] }
 0x231   : > { %1865 = vmatpush.msrb.mxu1 %v5301_v32  ;;  %2544 = vmatmul.msk.f32.vlgmr.msrb.gmra.mxu0 %vm1448_vm0, %v1588_v35  ;;  %v6913_v9 = vld [vmem:[#allocation61_spill] sm:$0xff]  ;;  %v6918_v32 = vld [vmem:[#allocation35_spill] sm:$0xff] }
 0x232   : > { %1745 = vmatpush.msra.mxu0 %v5685_v52  ;;  %2619 = vmatmul.msk.f32.vlgmr.msra.gmra.mxu1 %vm1448_vm0, %v1588_v35  ;;  %v6927_v52 = vld [vmem:[#allocation78_spill] sm:$0xff] }
 0x233   : > { %1824 = vmatpush.msra.mxu3 %v4931_v55  ;;  %1866 = vmatpush.msrb.mxu1 %v5314_v49  ;;  %v6888_v55 = vld [vmem:[#allocation10_spill] sm:$0xff]  ;;  %v6919_v49 = vld [vmem:[#allocation65_spill] sm:$0xff] }
 0x234   : > { %2589 = vmatmul.msk.f32.vlgmr.msrb.gmra.mxu3 %vm1448_vm0, %v5087_v42  ;;  %1746 = vmatpush.msra.mxu0 %v5692_v30  ;;  %v6925_v30 = vld [vmem:[#allocation73_spill] sm:$0xff] }
 0x235   : > { %1825 = vmatpush.msra.mxu3 %v4944_v36  ;;  %1867 = vmatpush.msrb.mxu1 %v5332_v13  ;;  %v6889_v36 = vld [vmem:[#allocation23_spill] sm:$0xff]  ;;  %v6920_v13 = vld [vmem:[#allocation121_spill] sm:$0xff] }
 0x236   : > { %2628 = vmatmul.msk.f32.vlgmr.msra.gmra.mxu2 %vm1448_vm0, %v1588_v35  ;;  %1747 = vmatpush.msra.mxu0 %v5698_v45  ;;  %v6928_v45 = vld [vmem:[#allocation9_spill] sm:$0xff] }
 0x237   : > { %1826 = vmatpush.msra.mxu3 %v4957_v16  ;;  %1868 = vmatpush.msrb.mxu1 %v5348_v28  ;;  %v6890_v16 = vld [vmem:[#allocation102_spill] sm:$0xff]  ;;  %v6921_v28 = vld [vmem:[#allocation69_spill] sm:$0xff] }
 0x238   : > { %1748 = vmatpush.msra.mxu0 %v5705_v40  ;;  %v6929_v40 = vld [vmem:[#allocation77_spill] sm:$0xff] }
 0x239   : > { %1827 = vmatpush.msra.mxu3 %v4975_v24  ;;  %1869 = vmatpush.msrb.mxu1 %v5363_v12  ;;  %v6895_v24 = vld [vmem:[#allocation27_spill] sm:$0xff] }
 0x23a   : > { %1749 = vmatpush.msra.mxu0 %v5711_v0  ;;  %v6902_v0 = vld [vmem:[#allocation110_spill] sm:$0xff]  ;;  %v6912_v12 = vld [vmem:[#allocation31_spill] sm:$0xff] }
 0x23b   : > { %1828 = vmatpush.msra.mxu3 %v4988_v34  ;;  %1870 = vmatpush.msrb.mxu1 %v5374_v4  ;;  %v6896_v34 = vld [vmem:[#allocation106_spill] sm:$0xff]  ;;  %v6922_v4 = vld [vmem:[#allocation5_spill] sm:$0xff] }
 0x23c   : > { %1750 = vmatpush.msra.mxu0 %v5718_v5  ;;  %v6930_v5 = vld [vmem:[#allocation11_spill] sm:$0xff] }
 0x23d   : > { %1829 = vmatpush.msra.mxu3 %v5002_v39  ;;  %1871 = vmatpush.msrb.mxu1 %v5390_v33  ;;  %v6897_v39 = vld [vmem:[#allocation16_spill] sm:$0xff]  ;;  %v6911_v33 = vld [vmem:[#allocation113_spill] sm:$0xff] }
 0x23e   : > { %1751 = vmatpush.msra.mxu0 %v2593_v59  ;;  %v6932_v59 = vld [vmem:[#allocation13_spill] sm:$0xff] }
 0x23f   : > { %1830 = vmatpush.msra.mxu3 %v5015_v14  ;;  %1872 = vmatpush.msrb.mxu1 %v5406_v2  ;;  %v6898_v14 = vld [vmem:[#allocation26_spill] sm:$0xff]  ;;  %v6909_v2 = vld [vmem:[#allocation29_spill] sm:$0xff] }
 0x240   : > { %1752 = vmatpush.msra.mxu0 %v2592_v61  ;;  %v6935_v61 = vld [vmem:[#allocation86_spill] sm:$0xff] }
 0x241   : > { %1831 = vmatpush.msra.mxu3 %v5027_v21  ;;  %1873 = vmatpush.msrb.mxu1 %v5422_v51  ;;  %v6899_v21 = vld [vmem:[#allocation105_spill] sm:$0xff]  ;;  %v6908_v51 = vld [vmem:[#allocation114_spill] sm:$0xff] }
 0x242   : > { %1753 = vmatpush.msra.mxu0 %v2591_v31  ;;  %v6937_v31 = vld [vmem:[#allocation85_spill] sm:$0xff] }
 0x243   : > { %1832 = vmatpush.msra.mxu3 %v5039_v54  ;;  %1874 = vmatpush.msrb.mxu1 %v5438_v60  ;;  %v6901_v54 = vld [vmem:[#allocation49_spill] sm:$0xff] }
 0x244   : > { %1754 = vmatpush.msra.mxu0 %v2590_v38  ;;  %v6905_v60 = vld [vmem:[#allocation109_spill] sm:$0xff]  ;;  %v6940_v38 = vld [vmem:[#allocation24_spill] sm:$0xff] }
 0x245   : > { %1833 = vmatpush.msra.mxu3 %v5051_v46  ;;  %1875 = vmatpush.msrb.mxu1 %v5462_v23  ;;  %v6903_v46 = vld [vmem:[#allocation21_spill] sm:$0xff]  ;;  %v6910_v23 = vld [vmem:[#allocation62_spill] sm:$0xff] }
 0x246   : > { %2604 = vmatmul.msk.f32.vlgmr.msra.gmra.mxu0 %vm1448_vm0, %v5745_v63  ;;  %2623 = vmatmul.msk.f32.vlgmr.msrb.gmra.mxu1 %vm1448_vm0, %v1588_v35  ;;  %v6945_v35 = vld [vmem:[#allocation93_spill] sm:$0xff] }
 0x247   : > { %1841 = vmatpush.msrb.mxu0 %v4887_v27  ;;  %1950 = vmatpush.msra.mxu1 %v5468_v3  ;;  %v6886_v27 = vld [vmem:[#allocation19_spill] sm:$0xff]  ;;  %v6907_v3 = vld [vmem:[#allocation57_spill] sm:$0xff] }
 0x248   : > { %1834 = vmatpush.msra.mxu3 %v5065_v58  ;;  %v6906_v58 = vld [vmem:[#allocation25_spill] sm:$0xff] }
 0x249   : > { %2621 = vmatmul.msk.f32.vlgmr.msra.gmra.mxu3 %vm1448_vm0, %v5738_v22  ;;  %1842 = vmatpush.msrb.mxu0 %v4907_v47  ;;  %v6891_v47 = vld [vmem:[#allocation12_spill] sm:$0xff] }
 0x24a   : > { %1910 = vmatpush.msrb.mxu3 %v5252_v17  ;;  %1951 = vmatpush.msra.mxu1 %v5483_v37  ;;  %v6915_v17 = vld [vmem:[#allocation33_spill] sm:$0xff]  ;;  %v6923_v37 = vld [vmem:[#allocation74_spill] sm:$0xff] }
 0x24b   : > { %1843 = vmatpush.msrb.mxu0 %v4925_v25  ;;  %v6894_v25 = vld [vmem:[#allocation14_spill] sm:$0xff] }
 0x24c   : > { %1911 = vmatpush.msrb.mxu3 %v6884_v11  ;;  %1952 = vmatpush.msra.mxu1 %v6885_v50  ;;  %v6946_v11 = vld [vmem:[#allocation32_spill] sm:$0xff]  ;;  %v6947_v50 = vld [vmem:[#allocation34_spill] sm:$0xff] }
 0x24d   : > { %1844 = vmatpush.msrb.mxu0 %v6886_v27  ;;  %v2023_v27 = vld [vmem:[%s6193_s5 + $0x48] sm:$0xff] }
 0x24e   : > { %1912 = vmatpush.msrb.mxu3 %v6887_v43  ;;  %1953 = vmatpush.msra.mxu1 %v6888_v55  ;;  %v2639_v43 = vld [vmem:[%s6193_s5 + $0x98] sm:$0xff]  ;;  %v2022_v55 = vld [vmem:[%s6193_s5 + $0x40] sm:$0xff] }
 0x24f   : > { %1845 = vmatpush.msrb.mxu0 %v6889_v36  ;;  %v2637_v36 = vld [vmem:[%s6193_s5 + $0x88] sm:$0xff] }
 0x250   : > { %1913 = vmatpush.msrb.mxu3 %v6890_v16  ;;  %1954 = vmatpush.msra.mxu1 %v6891_v47  ;;  %v2020_v16 = vld [vmem:[%s6193_s5 + $0x30] sm:$0xff]  ;;  %v2636_v47 = vld [vmem:[%s6193_s5 + $0x80] sm:$0xff] }
 0x251   : > { %1846 = vmatpush.msrb.mxu0 %v6892_v19  ;;  %v2019_v19 = vld [vmem:[%s6193_s5 + $0x28] sm:$0xff] }
 0x252   : > { %1914 = vmatpush.msrb.mxu3 %v6893_v20  ;;  %1955 = vmatpush.msra.mxu1 %v6894_v25  ;;  %v2635_v20 = vld [vmem:[%s6193_s5 + $0x78] sm:$0xff]  ;;  %v2018_v25 = vld [vmem:[%s6193_s5 + $0x20] sm:$0xff] }
 0x253   : > { %1847 = vmatpush.msrb.mxu0 %v6895_v24  ;;  %v2634_v24 = vld [vmem:[%s6193_s5 + $0x70] sm:$0xff] }
 0x254   : > { %1915 = vmatpush.msrb.mxu3 %v6896_v34  ;;  %1956 = vmatpush.msra.mxu1 %v6897_v39  ;;  %v2017_v34 = vld [vmem:[%s6193_s5 + $0x18] sm:$0xff] }
 0x255   : > { %1848 = vmatpush.msrb.mxu0 %v6898_v14  ;;  %v2651_v14 = vld [vmem:[%s6193_s5 + $0xe8] sm:$0xff] }
 0x256   : > { %1916 = vmatpush.msrb.mxu3 %v6899_v21  ;;  %1957 = vmatpush.msra.mxu1 %v6900_v48  ;;  %v5927_v21 = vpop.f32.mrf.mxu1  ;;  %v2633_v48 = vld [vmem:[%s6193_s5 + $0x68] sm:$0xff] }
 0x257   : > { %1849 = vmatpush.msrb.mxu0 %v6901_v54  ;;  %2102 = vmatpush.msrb.mxu2 %v2651_v14  ;;  %v2016_v54 = vld [vmem:[%s6193_s5 + $0x10] sm:$0xff]  ;;  %v2202_v14 = vld [vmem:[%s6195_s7 + $0x60] sm:$0xff] }
 0x258   : > { %1917 = vmatpush.msrb.mxu3 %v6902_v0  ;;  %1958 = vmatpush.msra.mxu1 %v6903_v46  ;;  %v2650_v0 = vld [vmem:[%s6193_s5 + $0xe0] sm:$0xff] }
 0x259   : > { %1850 = vmatpush.msrb.mxu0 %v6904_v29  ;;  %2103 = vmatpush.msrb.mxu2 %v2650_v0  ;;  %v2632_v29 = vld [vmem:[%s6193_s5 + $0x60] sm:$0xff] }
 0x25a   : > { %1918 = vmatpush.msrb.mxu3 %v6905_v60  ;;  %1959 = vmatpush.msra.mxu1 %v6906_v58  ;;  %v2015_v60 = vld [vmem:[%s6193_s5 + $0x8] sm:$0xff]  ;;  %v2649_v58 = vld [vmem:[%s6193_s5 + $0xd8] sm:$0xff]  ;;  %v2718_v0 = vld [vmem:[%s6192_s4] ss:$0 sm:$0xff] }
 0x25b   : > { %1851 = vmatpush.msrb.mxu0 %v6907_v3  ;;  %v2631_v3 = vld [vmem:[%s6193_s5 + $0x58] sm:$0xff]  ;;  %2104 = vmatpush.msrb.mxu2 %v2649_v58 }
 0x25c   : > { %1919 = vmatpush.msrb.mxu3 %v6908_v51  ;;  %1960 = vmatpush.msra.mxu1 %v6909_v2  ;;  %v2014_v51 = vld [vmem:[%s6193_s5] sm:$0xff]  ;;  %v5955_v2 = vpop.f32.mrf.mxu2 }
 0x25d   : > { %1852 = vmatpush.msrb.mxu0 %v6910_v23  ;;  %v2648_v23 = vld [vmem:[%s6193_s5 + $0xd0] sm:$0xff] }
 0x25e   : > { %1920 = vmatpush.msrb.mxu3 %v6911_v33  ;;  %1961 = vmatpush.msra.mxu1 %v6912_v12  ;;  %v2662_v33 = vld [vmem:[%s6193_s5 + $0x138] sm:$0xff]  ;;  %v2630_v12 = vld [vmem:[%s6193_s5 + $0x50] sm:$0xff] }
 0x25f   : > { %1853 = vmatpush.msrb.mxu0 %v6913_v9  ;;  %2105 = vmatpush.msrb.mxu2 %v2648_v23 }
 0x260   : > { %1921 = vmatpush.msrb.mxu3 %v6914_v10  ;;  %1962 = vmatpush.msra.mxu1 %v6915_v17  ;;  %v2647_v10 = vld [vmem:[%s6193_s5 + $0xc8] sm:$0xff]  ;;  %v2661_v17 = vld [vmem:[%s6193_s5 + $0x130] sm:$0xff] }
 0x261   : > { %1854 = vmatpush.msrb.mxu0 %v6916_v18  ;;  %v2673_v18 = vld [vmem:[%s6193_s5 + $0x188] sm:$0xff]  ;;  %2106 = vmatpush.msrb.mxu2 %v2647_v10 }
 0x262   : > { %1922 = vmatpush.msrb.mxu3 %v6917_v26  ;;  %1963 = vmatpush.msra.mxu1 %v6918_v32  ;;  %v2646_v32 = vld [vmem:[%s6193_s5 + $0xc0] sm:$0xff] }
 0x263   : > { %2622 = vmatmul.msk.f32.vlgmr.msrb.gmra.mxu0 %vm1448_vm0, %v5745_v63  ;;  %2627 = vmatmul.msk.f32.vlgmr.msra.gmra.mxu1 %vm1448_vm0, %v5745_v63  ;;  %v6944_v63 = vld [vmem:[#allocation30_spill] sm:$0xff] }
 0x264   : > { %1930 = vmatpush.msra.mxu0 %v6919_v49  ;;  %1923 = vmatpush.msrb.mxu3 %v6920_v13  ;;  %v2660_v49 = vld [vmem:[%s6193_s5 + $0x128] sm:$0xff]  ;;  %v2672_v13 = vld [vmem:[%s6193_s5 + $0x180] sm:$0xff] }
 0x265   : > { %2625 = vmatmul.msk.f32.vlgmr.msrb.gmra.mxu3 %vm1448_vm0, %v5087_v42  ;;  %v6931_v42 = vld [vmem:[#allocation82_spill] sm:$0xff]  ;;  %2107 = vmatpush.msrb.mxu2 %v2646_v32 }
 0x266   : > { %1931 = vmatpush.msra.mxu0 %v6921_v28  ;;  %1992 = vmatpush.msra.mxu3 %v6922_v4  ;;  %v2645_v28 = vld [vmem:[%s6193_s5 + $0xb8] sm:$0xff]  ;;  %v2659_v4 = vld [vmem:[%s6193_s5 + $0x120] sm:$0xff] }
 0x267   : > { %2108 = vmatpush.msrb.mxu2 %v2645_v28 }
 0x268   : > { %1932 = vmatpush.msra.mxu0 %v6923_v37  ;;  %1993 = vmatpush.msra.mxu3 %v6924_v53  ;;  %v2671_v37 = vld [vmem:[%s6193_s5 + $0x178] sm:$0xff]  ;;  %v1685_v53 = vpop.f32.mrf.mxu2 }
 0x26a   : > { %1933 = vmatpush.msra.mxu0 %v6925_v30  ;;  %1994 = vmatpush.msra.mxu3 %v6926_v1  ;;  %v2644_v1 = vld [vmem:[%s6193_s5 + $0xb0] sm:$0xff] }
 0x26b   : > { %2109 = vmatpush.msrb.mxu2 %v2644_v1 }
 0x26c   : > { %1934 = vmatpush.msra.mxu0 %v6927_v52  ;;  %1995 = vmatpush.msra.mxu3 %v6928_v45  ;;  %v2658_v52 = vld [vmem:[%s6193_s5 + $0x118] sm:$0xff]  ;;  %v2670_v45 = vld [vmem:[%s6193_s5 + $0x170] sm:$0xff] }
 0x26e   : > { %1935 = vmatpush.msra.mxu0 %v6929_v40  ;;  %1996 = vmatpush.msra.mxu3 %v6930_v5  ;;  %v2643_v5 = vld [vmem:[%s6193_s5 + $0xa8] sm:$0xff] }
 0x26f   : > { %2110 = vmatpush.msrb.mxu2 %v2643_v5  ;;  %v2197_v5 = vld [vmem:[%s6195_s7 + $0x38] sm:$0xff] }
 0x270   : > { %1936 = vmatpush.msra.mxu0 %v6931_v42  ;;  %1997 = vmatpush.msra.mxu3 %v6932_v59  ;;  %v2657_v42 = vld [vmem:[%s6193_s5 + $0x110] sm:$0xff]  ;;  %v2669_v59 = vld [vmem:[%s6193_s5 + $0x168] sm:$0xff] }
 0x272   : > { %1937 = vmatpush.msra.mxu0 %v6933_v6  ;;  %1998 = vmatpush.msra.mxu3 %v6934_v57  ;;  %v2642_v6 = vld [vmem:[%s6193_s5 + $0xa0] sm:$0xff]  ;;  %v2656_v57 = vld [vmem:[%s6193_s5 + $0x108] sm:$0xff] }
 0x273   : > { %2111 = vmatpush.msrb.mxu2 %v2642_v6  ;;  %v2194_v6 = vld [vmem:[%s6195_s7 + $0x20] sm:$0xff] }
 0x274   : > { %1938 = vmatpush.msra.mxu0 %v6935_v61  ;;  %1999 = vmatpush.msra.mxu3 %v6936_v56  ;;  %v2668_v61 = vld [vmem:[%s6193_s5 + $0x160] sm:$0xff] }
 0x276   : > { %1939 = vmatpush.msra.mxu0 %v6937_v31  ;;  %2000 = vmatpush.msra.mxu3 %v6938_v62  ;;  %v2655_v31 = vld [vmem:[%s6193_s5 + $0x100] sm:$0xff]  ;;  %v2667_v62 = vld [vmem:[%s6193_s5 + $0x158] sm:$0xff] }
 0x278   : > { %1940 = vmatpush.msra.mxu0 %v6939_v8  ;;  %2001 = vmatpush.msra.mxu3 %v6940_v38  ;;  %v2654_v8 = vld [vmem:[%s6193_s5 + $0xf8] sm:$0xff]  ;;  %v1816_v38 = vpop.f32.mrf.mxu2 }
 0x27a   : > { %1941 = vmatpush.msra.mxu0 %v6941_v41  ;;  %2002 = vmatpush.msra.mxu3 %v6942_v7  ;;  %v2666_v7 = vld [vmem:[%s6193_s5 + $0x150] sm:$0xff] }
 0x27c   : > { %1942 = vmatpush.msra.mxu0 %v6943_v15  ;;  %2003 = vmatpush.msra.mxu3 %v6944_v63  ;;  %v2653_v15 = vld [vmem:[%s6193_s5 + $0xf0] sm:$0xff] }
 0x27e   : > { %1943 = vmatpush.msra.mxu0 %v6945_v35  ;;  %2004 = vmatpush.msra.mxu3 %v6946_v11  ;;  %v2665_v35 = vld [vmem:[%s6193_s5 + $0x148] sm:$0xff] }
 0x27f   : > { %2626 = vmatmul.msk.f32.vlgmr.msra.gmra.mxu0 %vm1448_vm0, %v5738_v22  ;;  %v2638_v22 = vld [vmem:[%s6193_s5 + $0x90] sm:$0xff] }
 0x280   : > { %2005 = vmatpush.msra.mxu3 %v6947_v50  ;;  %2046 = vmatpush.msrb.mxu0 %v2639_v43 }
 0x281   : > { %2629 = vmatmul.msk.f32.vlgmr.msra.gmra.mxu3 %vm1448_vm0, %v1881_v44  ;;  %v2021_v44 = vld [vmem:[%s6193_s5 + $0x38] sm:$0xff] }
 0x282   : > { %2068 = vmatpush.msrb.mxu3 %v2023_v27  ;;  %2047 = vmatpush.msrb.mxu0 %v2638_v22  ;;  %v2664_v22 = vld [vmem:[%s6193_s5 + $0x140] sm:$0xff] }
 0x284   : > { %2069 = vmatpush.msrb.mxu3 %v2022_v55  ;;  %2048 = vmatpush.msrb.mxu0 %v2637_v36 }
 0x286   : > { %2070 = vmatpush.msrb.mxu3 %v2021_v44  ;;  %2049 = vmatpush.msrb.mxu0 %v2636_v47  ;;  %v2205_v47 = vld [vmem:[%s6195_s7 + $0x78] sm:$0xff] }
 0x287   : > { %2207 = vmatpush.msrb.mxu1 %v2205_v47  ;;  %v2231_v47 = vld [vmem:[%s6197_s9 + $0x18] sm:$0xff] }
 0x288   : > { %2071 = vmatpush.msrb.mxu3 %v2020_v16  ;;  %2050 = vmatpush.msrb.mxu0 %v2635_v20 }
 0x28a   : > { %2072 = vmatpush.msrb.mxu3 %v2019_v19  ;;  %2051 = vmatpush.msrb.mxu0 %v2634_v24  ;;  %v2204_v19 = vld [vmem:[%s6195_s7 + $0x70] sm:$0xff] }
 0x28b   : > { %2208 = vmatpush.msrb.mxu1 %v2204_v19 }
 0x28c   : > { %2073 = vmatpush.msrb.mxu3 %v2018_v25  ;;  %2052 = vmatpush.msrb.mxu0 %v2633_v48 }
 0x28e   : > { %2074 = vmatpush.msrb.mxu3 %v2017_v34  ;;  %2053 = vmatpush.msrb.mxu0 %v2632_v29  ;;  %v2203_v34 = vld [vmem:[%s6195_s7 + $0x68] sm:$0xff] }
 0x28f   : > { %2209 = vmatpush.msrb.mxu1 %v2203_v34 }
 0x290   : > { %2075 = vmatpush.msrb.mxu3 %v2016_v54  ;;  %2054 = vmatpush.msrb.mxu0 %v2631_v3 }
 0x291   : > { %2210 = vmatpush.msrb.mxu1 %v2202_v14 }
 0x292   : > { %2076 = vmatpush.msrb.mxu3 %v2015_v60  ;;  %2055 = vmatpush.msrb.mxu0 %v2630_v12  ;;  %v2201_v60 = vld [vmem:[%s6195_s7 + $0x58] sm:$0xff] }
 0x293   : > { %2211 = vmatpush.msrb.mxu1 %v2201_v60 }
 0x294   : > { %2077 = vmatpush.msrb.mxu3 %v2014_v51  ;;  %2172 = vmatpush.msra.mxu0 %v2673_v18 }
 0x296   : > { %2137 = vmatpush.msra.mxu3 %v2662_v33  ;;  %2173 = vmatpush.msra.mxu0 %v2672_v13 }
 0x298   : > { %2138 = vmatpush.msra.mxu3 %v2661_v17  ;;  %2174 = vmatpush.msra.mxu0 %v2671_v37 }
 0x29a   : > { %2139 = vmatpush.msra.mxu3 %v2660_v49  ;;  %2175 = vmatpush.msra.mxu0 %v2670_v45  ;;  %v2199_v45 = vld [vmem:[%s6195_s7 + $0x48] sm:$0xff] }
 0x29c   : > { %2140 = vmatpush.msra.mxu3 %v2659_v4  ;;  %2176 = vmatpush.msra.mxu0 %v2669_v59  ;;  %v2195_v59 = vld [vmem:[%s6195_s7 + $0x28] sm:$0xff] }
 0x29e   : > { %2141 = vmatpush.msra.mxu3 %v2658_v52  ;;  %2177 = vmatpush.msra.mxu0 %v2668_v61  ;;  %v2200_v52 = vld [vmem:[%s6195_s7 + $0x50] sm:$0xff] }
 0x29f   : > { %2212 = vmatpush.msrb.mxu1 %v2200_v52  ;;  %v2192_v61 = vld [vmem:[%s6195_s7 + $0x10] sm:$0xff] }
 0x2a0   : > { %2142 = vmatpush.msra.mxu3 %v2657_v42  ;;  %2178 = vmatpush.msra.mxu0 %v2667_v62  ;;  %v2196_v42 = vld [vmem:[%s6195_s7 + $0x30] sm:$0xff]  ;;  %v2243_v62 = vld [vmem:[%s6197_s9 + $0x78] sm:$0xff] }
 0x2a1   : > { %2213 = vmatpush.msrb.mxu1 %v2199_v45  ;;  %2245 = vmatpush.msra.mxu2 %v2243_v62 }
 0x2a2   : > { %2143 = vmatpush.msra.mxu3 %v2656_v57  ;;  %2179 = vmatpush.msra.mxu0 %v2666_v7  ;;  %v2193_v57 = vld [vmem:[%s6195_s7 + $0x18] sm:$0xff] }
 0x2a3   : > { %v2239_v7 = vld [vmem:[%s6197_s9 + $0x58] sm:$0xff] }
 0x2a4   : > { %2144 = vmatpush.msra.mxu3 %v2655_v31  ;;  %2180 = vmatpush.msra.mxu0 %v2665_v35  ;;  %v2190_v31 = vld [vmem:[%s6195_s7] sm:$0xff] }
 0x2a5   : > { %v2236_v35 = vld [vmem:[%s6197_s9 + $0x40] sm:$0xff] }
 0x2a6   : > { %v5922_v39 = vpop.f32.mrf.mxu0  ;;  %v1665_v26 = vpop.f32.mrf.mxu1  ;;  %2145 = vmatpush.msra.mxu3 %v2654_v8  ;;  %2181 = vmatpush.msra.mxu0 %v2664_v22  ;;  %v2242_v8 = vld [vmem:[%s6197_s9 + $0x70] sm:$0xff]  ;;  %v2233_v22 = vld [vmem:[%s6197_s9 + $0x28] sm:$0xff] }
 0x2a7   : > { %v1493_v11 = vadd.f32 %v5927_v21, %v5922_v39  ;;  %v1686_v50 = vadd.f32 %v1685_v53, %v1665_v26  ;;  %2246 = vmatpush.msra.mxu2 %v2242_v8 }
 0x2a8   : > { %2146 = vmatpush.msra.mxu3 %v2653_v15  ;;  %v2238_v15 = vld [vmem:[%s6197_s9 + $0x50] sm:$0xff] }
 0x2a9   : > { %v1533_v36 = vadd.f32 %v5955_v2, %v1493_v11  ;;  %v2235_v11 = vld [vmem:[%s6197_s9 + $0x38] sm:$0xff] }
 0x2ae   : > { %v5938_v46 = vpop.f32.mrf.mxu3  ;;  %v5966_v9 = vpop.f32.mrf.mxu0 }
 0x2af   : > { %v1792_v56 = vpop.f32.mrf.mxu1  ;;  %v1901_v20 = vpop.f32.mrf.mxu2  ;;  %v1572_v25 = vadd.f32 %v5938_v46, %v1533_v36  ;;  %v2232_v36 = vld [vmem:[%s6197_s9 + $0x20] sm:$0xff] }
 0x2b1   : > { %v1611_v54 = vadd.f32 %v5966_v9, %v1572_v25 }
 0x2b3   : > { %v1616_v2 = vadd.f32 %v2718_v0, %v1611_v54  ;;  %v2228_v54 = vld [vmem:[%s6197_s9] sm:$0xff] }
 0x2b5   : > { %v1617_v17 = vmax.f32 %v1616_v2, 0.0 }
 0x2b7   : > { %v1720_v30 = vpop.f32.mrf.mxu3 }
 0x2b8   : > { %v1723_v43 = vadd.f32 %v1720_v30, %v1686_v50 }
 0x2b9   : > { %v1986_v33 = vpop.f32.mrf.mxu2 }
 0x2c3   : > { %v1756_v40 = vpop.f32.mrf.mxu0  ;;  %v1877_v44 = vpop.f32.mrf.mxu1 }
 0x2c4   : > { %v1759_v16 = vadd.f32 %v1756_v40, %v1723_v43  ;;  %v2198_v40 = vld [vmem:[%s6195_s7 + $0x40] sm:$0xff]  ;;  %v2234_v43 = vld [vmem:[%s6197_s9 + $0x30] sm:$0xff] }
 0x2c5   : > { %2214 = vmatpush.msrb.mxu1 %v2198_v40 }
 0x2c6   : > { %v1795_v39 = vadd.f32 %v1792_v56, %v1759_v16  ;;  %v2191_v56 = vld [vmem:[%s6195_s7 + $0x8] sm:$0xff] }
 0x2c7   : > { %2215 = vmatpush.msrb.mxu1 %v2197_v5 }
 0x2c8   : > { %v1796_v3 = vadd.f32 %v2718_v0, %v1795_v39 }
 0x2c9   : > { %2216 = vmatpush.msrb.mxu1 %v2196_v42 }
 0x2ca   : > { %v1797_v12 = vmax.f32 %v1796_v3, 0.0 }
 0x2cb   : > { %2217 = vmatpush.msrb.mxu1 %v2195_v59 }
 0x2cc   : > { %v1836_v41 = vpop.f32.mrf.mxu3  ;;  %v1798_v32 = vmax.f32 %v1617_v17, %v1797_v12 }
 0x2cd   : > { %v1837_v27 = vadd.f32 %v1836_v41, %v1816_v38  ;;  %2218 = vmatpush.msrb.mxu1 %v2194_v6  ;;  %v2241_v38 = vld [vmem:[%s6197_s9 + $0x68] sm:$0xff]  ;;  %v2240_v41 = vld [vmem:[%s6197_s9 + $0x60] sm:$0xff] }
 0x2ce   : > { %2247 = vmatpush.msra.mxu2 %v2241_v38 }
 0x2cf   : > { %2219 = vmatpush.msrb.mxu1 %v2193_v57 }
 0x2d0   : > { %2248 = vmatpush.msra.mxu2 %v2240_v41 }
 0x2d1   : > { %2220 = vmatpush.msrb.mxu1 %v2192_v61 }
 0x2d2   : > { %2249 = vmatpush.msra.mxu2 %v2239_v7 }
 0x2d3   : > { %2221 = vmatpush.msrb.mxu1 %v2191_v56 }
 0x2d4   : > { %2250 = vmatpush.msra.mxu2 %v2238_v15 }
 0x2d5   : > { %2222 = vmatpush.msrb.mxu1 %v2190_v31 }
 0x2e0   : > { %v1856_v63 = vpop.f32.mrf.mxu0  ;;  %v1965_v58 = vpop.f32.mrf.mxu1 }
 0x2e1   : > { %v1859_v55 = vadd.f32 %v1856_v63, %v1837_v27  ;;  %v2237_v63 = vld [vmem:[%s6197_s9 + $0x48] sm:$0xff] }
 0x2e2   : > { %2251 = vmatpush.msra.mxu2 %v2237_v63 }
 0x2e3   : > { %v1880_v24 = vadd.f32 %v1877_v44, %v1859_v55 }
 0x2e4   : > { %2252 = vmatpush.msra.mxu2 %v2236_v35 }
 0x2e5   : > { %v1904_v46 = vadd.f32 %v1901_v20, %v1880_v24  ;;  %v2187_v24 = vld [vmem:[%s6194_s6] sm:$0x1] }
 0x2e6   : > { %2253 = vmatpush.msra.mxu2 %v2235_v11 }
 0x2e7   : > { %v1905_v23 = vadd.f32 %v2718_v0, %v1904_v46 }
 0x2e8   : > { %v1925_v21 = vpop.f32.mrf.mxu3  ;;  %2254 = vmatpush.msra.mxu2 %v2234_v43 }
 0x2e9   : > { %v1906_v18 = vmax.f32 %v1905_v23, 0.0 }
 0x2ea   : > { %2255 = vmatpush.msra.mxu2 %v2233_v22 }
 0x2eb   : > { %v1907_v13 = vmax.f32 %v1798_v32, %v1906_v18 }
 0x2ec   : > { %2256 = vmatpush.msra.mxu2 %v2232_v36 }
 0x2ee   : > { %2257 = vmatpush.msra.mxu2 %v2231_v47 }
 0x2fc   : > { %v1945_v48 = vpop.f32.mrf.mxu0 }
 0x2fd   : > { %v1946_v29 = vadd.f32 %v1945_v48, %v1925_v21  ;;  %v2230_v21 = vld [vmem:[%s6197_s9 + $0x10] sm:$0xff]  ;;  %v2229_v48 = vld [vmem:[%s6197_s9 + $0x8] sm:$0xff] }
 0x2fe   : > { %2258 = vmatpush.msra.mxu2 %v2230_v21 }
 0x2ff   : > { %v1968_v51 = vadd.f32 %v1965_v58, %v1946_v29  ;;  %v2244_v58 = vld [vmem:[%s6198_s10] sm:$0x1] }
 0x300   : > { %2259 = vmatpush.msra.mxu2 %v2229_v48 }
 0x301   : > { %v1989_v9 = vadd.f32 %v1986_v33, %v1968_v51 }
 0x302   : > { %2260 = vmatpush.msra.mxu2 %v2228_v54 }
 0x304   : > { %v2007_v10 = vpop.f32.mrf.mxu3 }
 0x305   : > { %v2010_v26 = vadd.f32 %v2007_v10, %v1989_v9 }
 0x307   : > { %v2011_v49 = vadd.f32 %v2718_v0, %v2010_v26  ;;  %v2206_v0 = vld [vmem:[%s6196_s8] sm:$0x1] }
 0x309   : > { %v2012_v28 = vmax.f32 %v2011_v49, 0.0 }
 0x30b   : > { %v2013_v4 = vmax.f32 %v1907_v13, %v2012_v28 }
 0x30d   : > { %2641 = vmatmul.msk.f32.vlgmr.msrb.gmra.mxu3 %vm2037_vm1, %v2013_v4  ;;  %v2036_v37 = vrot.slane %v2013_v4, 1  ;;  %v2093_v53 = vrot.slane %v2013_v4, 2  ;;  %v2128_v30 = vrot.slane %v2013_v4, 3  ;;  %v2163_v1 = vrot.slane %v2013_v4, 4 }
 0x30f   : > { %2640 = vmatmul.msk.f32.vlgmr.msrb.gmra.mxu0 %vm2037_vm1, %v2036_v37  ;;  %2652 = vmatmul.msk.f32.vlgmr.msrb.gmra.mxu2 %vm2037_vm1, %v2093_v53 }
 0x315   : > { %2663 = vmatmul.msk.f32.vlgmr.msra.gmra.mxu3 %vm2037_vm1, %v2128_v30 }
 0x317   : > { %2674 = vmatmul.msk.f32.vlgmr.msra.gmra.mxu0 %vm2037_vm1, %v2163_v1 }
 0x38c   : > { %v2057_v50 = vpop.f32.mrf.mxu0 }
 0x390   : > { %v2079_v27 = vpop.f32.mrf.mxu3 }
 0x391   : > { %v2080_v55 = vadd.f32 %v2079_v27, %v2057_v50 }
 0x392   : > { %v2113_v44 = vpop.f32.mrf.mxu2 }
 0x393   : > { %v2116_v16 = vadd.f32 %v2113_v44, %v2080_v55 }
 0x394   : > { %v2183_v25 = vpop.f32.mrf.mxu0 }
 0x398   : > { %v2148_v19 = vpop.f32.mrf.mxu3 }
 0x399   : > { %v2151_v20 = vadd.f32 %v2148_v19, %v2116_v16 }
 0x39b   : > { %v2186_v34 = vadd.f32 %v2183_v25, %v2151_v20 }
 0x39d   : > { %v2188_v39 = vadd.f32 %v2187_v24, %v2186_v34 }
 0x39f   : > { %v2189_v14 = vmax.f32 %v2188_v39, 0.0 }
 0x3a1   : > { %2223 = vmatmul.f32.vlgmr.msrb.gmra.mxu1 %v2189_v14 }
 0x41e   : > { %v2224_v46 = vpop.f32.mrf.mxu1 }
 0x41f   : > { %v2225_v29 = vadd.f32 %v2224_v46, %v2206_v0 }
 0x421   : > { %v2227_v60 = vmax.f32 %v2225_v29, 0.0 }
 0x423   : > { %2261 = vmatmul.f32.vlgmr.msra.gmra.mxu2 %v2227_v60 }
 0x4a6   : > { %v2262_v3 = vpop.f32.mrf.mxu2 }
 0x4a7   : > { %v2263_v51 = vadd.f32 %v2262_v3, %v2244_v58 }
 0x4a9   : > { %2265 = vst [vmem:[%s378_s13] sm:$0x1] %v2263_v51 }
 0x4aa   : > { %2899 = shalt.err (!%p2896_p3)
}
 0x4ab   : > { %2678 = dma.vmem_to_hbm [thread:$0]  (%p3034_p5), %s2278_s14, 16, %s2280_s15, %s2267_s16  }
 0x4ac PF: > { %p2684_p4 = scmp.ge.s32.totalorder %s2934_s20, 2  ;;  %s2291_s25 = sand.u32 1, %s2922_s17  }
 0x4ad   : > { %s2292_s30 = scalar_lea.sflag [#allocation3], %s2291_s25 }
 0x4ae   : > { %p2681_p7 = pnand %p2684_p4, %p3038_p6 }
 0x4b0   : > { %p2682_p8 = pneg %p2681_p7 }
 0x4b2   : > { %2917 = dma.done.wait (%p2682_p8), %s2292_s30, 16  }
 0x4b3   : > { %2919 = vsyncadd (%p2682_p8), %s2292_s30, 4294967280  ;;  %p21_p9 = scmp.ge.s32.totalorder %s3021_s23, 4   ;;  %s6948_s17 = smov %s2926_s18 }
 0x4b4   : > { %s6949_s18 = smov %s2930_s19  ;;  %s6950_s19 = smov %s3032_s26 }
 0x4b5   : > { %s6951_s20 = smov %s3021_s23  ;;  %23 = sbr.rel (!%p21_p9) target bundleno = 6 (0x6), region = 121 }
 0x4ba   :  { %2297 = vsyncpa [#allocation3], 1 }
 0x4bb   :  { %2299 = vsyncpa [#allocation3 + $0x1], 1 }

</bundles_post_ra>
